<compile_context>
chip_gen: v7x
topology: tpu7x:2x2x1
jax: 0.10.0
libtpu: 0.0.40
codegen_flags: <defaults>
</compile_context>

<pallas_src>
import functools

import jax
import jax.numpy as jnp
import numpy as np
from jax.experimental import pallas as pl
from jax.experimental.pallas import tpu as pltpu


def _device_kind():
    try:
        return jax.devices()[0].device_kind.lower()
    except Exception:
        return ""


def _global_mask_kernel(idx_ref, feat_ref, vec_ref, out_ref, *, use_select):
    cd = vec_ref.dtype
    tn = idx_ref.shape[0]
    b, c = vec_ref.shape
    idx = idx_ref[...]                                           # (TN, 1) int32

    if use_select:
        # Exact B-way select chain (VALU slack; no MXU pop, no cast passes).
        rows = jnp.zeros((tn, c), cd)
        for bi in range(b):
            v_row = vec_ref[pl.ds(bi, 1), :]                     # (1, C), static row
            rows = jnp.where(idx == bi, jnp.broadcast_to(v_row, (tn, c)), rows)
    else:
        # One-hot MXU gather (MXU is otherwise idle). Build the one-hot
        # directly in the compute dtype and pop the result in that dtype.
        onehot = (idx == jax.lax.broadcasted_iota(jnp.int32, (tn, b), 1)).astype(cd)
        prec = (jax.lax.Precision.HIGHEST if cd == jnp.float32
                else jax.lax.Precision.DEFAULT)
        rows = jax.lax.dot(onehot, vec_ref[...], precision=prec,
                           preferred_element_type=cd)            # (TN, C) in cd

    out_ref[...] = (feat_ref[...].astype(cd) * rows).astype(out_ref.dtype)


@functools.partial(jax.jit, static_argnames=("tile_n",))
def global_mask_layer_v5(features, point_idx, vecter, *, tile_n=None):
    """features: [N, C], point_idx: [N] int32 in [0, B), vecter: [B, C].

    Note: point_idx values outside [0, B) produce all-zero output rows rather
    than an indexing error as in PyTorch.
    """
    n, c = features.shape
    b, c_v = vecter.shape
    assert c == c_v, "input.features.shape[-1] must equal vecter.shape[-1]"

    kind = _device_kind()
    is_v5 = "v5" in kind        # conservative: v5-gen VPU has no bf16 ALUs
    is_v7 = "v7" in kind

    # bf16 elementwise path only where the VPU supports it; otherwise f32
    # compute with a single bf16 downcast at the store (HBM traffic unchanged).
    compute_dtype = (jnp.bfloat16
                     if (features.dtype == jnp.bfloat16 and not is_v5)
                     else jnp.float32)

    # Grid-invariant softmax(vecter) + 1, hoisted out of the kernel.
    v_act = (jax.nn.softmax(vecter.astype(jnp.float32), axis=1) + 1.0).astype(compute_dtype)

    # Lane-dense stores: pad channels to a multiple of 128 only when needed.
    c_pad = (-c) % 128
    if c_pad:
        features = jnp.pad(features, ((0, 0), (0, c_pad)))
        v_act = jnp.pad(v_act, ((0, 0), (0, c_pad)))
    cp = c + c_pad

    feat_itemsize = jnp.dtype(features.dtype).itemsize
    cd_itemsize = jnp.dtype(compute_dtype).itemsize

    if tile_n is None:
        # Target ~1.5 MiB per feature block (85%+ of HBM roofline), rounded to
        # 128 rows, clamped to [512, 8192]; never bigger than N rounded up.
        raw = (3 << 19) // (cp * feat_itemsize)
        tile_n = max(512, min(8192, (raw // 128) * 128))
        tile_n = min(tile_n, ((n + 127) // 128) * 128)
    tile_n = max(8, int(tile_n))

    idx2d = point_idx.astype(jnp.int32).reshape(n, 1)
    grid = (pl.cdiv(n, tile_n),)

    # VMEM budget: double-buffered feature/output/idx blocks + resident vecter,
    # plus gather intermediates (lane-padded one-hot LHS, rows result) + margin.
    blk_bytes = tile_n * cp * feat_itemsize
    vec_bytes = b * cp * cd_itemsize
    rows_bytes = tile_n * cp * max(cd_itemsize, 4)
    onehot_bytes = tile_n * max(b, 128) * cd_itemsize
    vmem_bytes = (2 * (2 * blk_bytes + tile_n * 4 + vec_bytes)
                  + rows_bytes + onehot_bytes + (2 << 20))
    cap = (96 << 20) if (kind and not is_v7) else (48 << 20)
    vmem_limit = int(min(max(vmem_bytes, 16 << 20), cap))

    # Advisory cost estimate for XLA scheduling around this bandwidth-bound call.
    cost = pl.CostEstimate(
        flops=2 * n * cp,
        transcendentals=0,
        bytes_accessed=int(2 * n * cp * feat_itemsize + n * 4 + b * cp * cd_itemsize),
    )

    use_select = b <= 16
    kernel = functools.partial(_global_mask_kernel, use_select=use_select)

    out = pl.pallas_call(
        kernel,
        out_shape=jax.ShapeDtypeStruct((n, cp), features.dtype),
        grid_spec=pltpu.PrefetchScalarGridSpec(
            num_scalar_prefetch=0,
            grid=grid,
            in_specs=[
                pl.BlockSpec((tile_n, 1), lambda i: (i, 0)),    # point_idx tile
                pl.BlockSpec((tile_n, cp), lambda i: (i, 0)),   # features tile
                pl.BlockSpec((b, cp), lambda i: (0, 0)),        # softmax(vecter)+1, resident
            ],
            out_specs=pl.BlockSpec((tile_n, cp), lambda i: (i, 0)),
        ),
        compiler_params=pltpu.CompilerParams(
            # "parallel" lets the runtime shard this independent axis across
            # both TensorCores on v7x; no effect on single-TC v5e/v6e.
            dimension_semantics=("parallel",),
            vmem_limit_bytes=vmem_limit,
        ),
        cost_estimate=cost,
    )(idx2d, features, v_act)

    return out[:, :c] if c_pad else out


def _reference(features, point_idx, vecter):
    v = jax.nn.softmax(vecter.astype(jnp.float32), axis=1) + 1.0
    return (features.astype(jnp.float32) * v[point_idx]).astype(features.dtype)


if __name__ == "__main__":
    key = jax.random.PRNGKey(0)
    k_feat, k_vec, k_idx, k_feat2, k_vec2, k_idx2 = jax.random.split(key, 6)

    # Small synthetic sparse-tensor-like inputs:
    #   N = 300 active points (not a tile multiple -> exercises the ragged
    #   tail block), C = 128 channels, B = 8 batch samples (select-chain path).
    N, C, B = 300, 128, 8
    features = jax.random.normal(k_feat, (N, C), dtype=jnp.float32)
    vecter = jax.random.normal(k_vec, (B, C), dtype=jnp.float32)
    point_idx = jax.random.randint(k_idx, (N,), 0, B, dtype=jnp.int32)

    # f32 path (select-chain gather)
    out = jax.block_until_ready(global_mask_layer_v5(features, point_idx, vecter))
    ref = _reference(features, point_idx, vecter)
    np.testing.assert_allclose(np.asarray(out), np.asarray(ref), rtol=1e-5, atol=1e-5)

    # bf16 path (bf16 compute on v6e/v7x, f32 compute on v5-gen chips)
    feat_bf16 = features.astype(jnp.bfloat16)
    out_bf16 = jax.block_until_ready(global_mask_layer_v5(feat_bf16, point_idx, vecter))
    ref_bf16 = _reference(feat_bf16, point_idx, vecter)
    np.testing.assert_allclose(
        np.asarray(out_bf16, dtype=np.float32),
        np.asarray(ref_bf16, dtype=np.float32),
        rtol=2e-2, atol=2e-2,
    )

    # Larger batch -> exercises the one-hot MXU gather path (B > 16), f32 exact.
    N2, C2, B2 = 200, 128, 24
    features2 = jax.random.normal(k_feat2, (N2, C2), dtype=jnp.float32)
    vecter2 = jax.random.normal(k_vec2, (B2, C2), dtype=jnp.float32)
    point_idx2 = jax.random.randint(k_idx2, (N2,), 0, B2, dtype=jnp.int32)
    out2 = jax.block_until_ready(global_mask_layer_v5(features2, point_idx2, vecter2))
    ref2 = _reference(features2, point_idx2, vecter2)
    np.testing.assert_allclose(np.asarray(out2), np.asarray(ref2), rtol=1e-5, atol=1e-5)

    # TODO(synk): SparseConvNetTensor metadata / spatial_size passthrough has no
    # Pallas equivalent; only the feature math is implemented here.
    print("KERNEL_OK")
</pallas_src>

<mosaic_0001>
module attributes {stable_mosaic.version = 11 : i64} {
  func.func @_global_mask_kernel(%arg0: i32, %arg1: memref<384x1xi32, #tpu.memory_space<vmem>>, %arg2: memref<384x128xf32, #tpu.memory_space<vmem>>, %arg3: memref<8x128xf32, #tpu.memory_space<vmem>>, %arg4: memref<384x128xf32, #tpu.memory_space<vmem>>) attributes {dimension_semantics = [#tpu.dimension_semantics<parallel>], iteration_bounds = array<i64: 1>, scalar_prefetch = 0 : i64, scratch_operands = 0 : i64, tpu.core_type = #tpu.core_type<tc>, window_params = [{transform_indices = @transform_0, window_bounds = array<i64: 384, 1>}, {transform_indices = @transform_1, window_bounds = array<i64: 384, 128>}, {pipeline_mode = #tpu.pipeline_mode<synchronous>, transform_indices = @transform_2, window_bounds = array<i64: 8, 128>}, {transform_indices = @transform_3, window_bounds = array<i64: 384, 128>}]} {
    %c0 = arith.constant 0 : index
    %c0_0 = arith.constant 0 : index
    %0 = vector.load %arg1[%c0, %c0_0] : memref<384x1xi32, #tpu.memory_space<vmem>>, vector<384x1xi32>
    %cst = arith.constant 0.000000e+00 : f32
    %1 = vector.broadcast %cst : f32 to vector<384x128xf32>
    %c0_1 = arith.constant 0 : index
    %c0_2 = arith.constant 0 : index
    %2 = vector.load %arg3[%c0_1, %c0_2] : memref<8x128xf32, #tpu.memory_space<vmem>>, vector<1x128xf32>
    %c0_i32 = arith.constant 0 : i32
    %3 = vector.broadcast %c0_i32 : i32 to vector<384x1xi32>
    %4 = arith.cmpi eq, %0, %3 : vector<384x1xi32>
    %5 = vector.shape_cast %2 : vector<1x128xf32> to vector<1x128xf32>
    %6 = vector.broadcast %5 : vector<1x128xf32> to vector<384x128xf32>
    %7 = vector.shape_cast %4 : vector<384x1xi1> to vector<384x1xi1>
    %8 = vector.broadcast %7 : vector<384x1xi1> to vector<384x128xi1>
    %9 = arith.select %8, %6, %1 : vector<384x128xi1>, vector<384x128xf32>
    %c1 = arith.constant 1 : index
    %c0_3 = arith.constant 0 : index
    %10 = vector.load %arg3[%c1, %c0_3] : memref<8x128xf32, #tpu.memory_space<vmem>>, vector<1x128xf32>
    %c1_i32 = arith.constant 1 : i32
    %11 = vector.broadcast %c1_i32 : i32 to vector<384x1xi32>
    %12 = arith.cmpi eq, %0, %11 : vector<384x1xi32>
    %13 = vector.shape_cast %10 : vector<1x128xf32> to vector<1x128xf32>
    %14 = vector.broadcast %13 : vector<1x128xf32> to vector<384x128xf32>
    %15 = vector.shape_cast %12 : vector<384x1xi1> to vector<384x1xi1>
    %16 = vector.broadcast %15 : vector<384x1xi1> to vector<384x128xi1>
    %17 = arith.select %16, %14, %9 : vector<384x128xi1>, vector<384x128xf32>
    %c2 = arith.constant 2 : index
    %c0_4 = arith.constant 0 : index
    %18 = vector.load %arg3[%c2, %c0_4] : memref<8x128xf32, #tpu.memory_space<vmem>>, vector<1x128xf32>
    %c2_i32 = arith.constant 2 : i32
    %19 = vector.broadcast %c2_i32 : i32 to vector<384x1xi32>
    %20 = arith.cmpi eq, %0, %19 : vector<384x1xi32>
    %21 = vector.shape_cast %18 : vector<1x128xf32> to vector<1x128xf32>
    %22 = vector.broadcast %21 : vector<1x128xf32> to vector<384x128xf32>
    %23 = vector.shape_cast %20 : vector<384x1xi1> to vector<384x1xi1>
    %24 = vector.broadcast %23 : vector<384x1xi1> to vector<384x128xi1>
    %25 = arith.select %24, %22, %17 : vector<384x128xi1>, vector<384x128xf32>
    %c3 = arith.constant 3 : index
    %c0_5 = arith.constant 0 : index
    %26 = vector.load %arg3[%c3, %c0_5] : memref<8x128xf32, #tpu.memory_space<vmem>>, vector<1x128xf32>
    %c3_i32 = arith.constant 3 : i32
    %27 = vector.broadcast %c3_i32 : i32 to vector<384x1xi32>
    %28 = arith.cmpi eq, %0, %27 : vector<384x1xi32>
    %29 = vector.shape_cast %26 : vector<1x128xf32> to vector<1x128xf32>
    %30 = vector.broadcast %29 : vector<1x128xf32> to vector<384x128xf32>
    %31 = vector.shape_cast %28 : vector<384x1xi1> to vector<384x1xi1>
    %32 = vector.broadcast %31 : vector<384x1xi1> to vector<384x128xi1>
    %33 = arith.select %32, %30, %25 : vector<384x128xi1>, vector<384x128xf32>
    %c4 = arith.constant 4 : index
    %c0_6 = arith.constant 0 : index
    %34 = vector.load %arg3[%c4, %c0_6] : memref<8x128xf32, #tpu.memory_space<vmem>>, vector<1x128xf32>
    %c4_i32 = arith.constant 4 : i32
    %35 = vector.broadcast %c4_i32 : i32 to vector<384x1xi32>
    %36 = arith.cmpi eq, %0, %35 : vector<384x1xi32>
    %37 = vector.shape_cast %34 : vector<1x128xf32> to vector<1x128xf32>
    %38 = vector.broadcast %37 : vector<1x128xf32> to vector<384x128xf32>
    %39 = vector.shape_cast %36 : vector<384x1xi1> to vector<384x1xi1>
    %40 = vector.broadcast %39 : vector<384x1xi1> to vector<384x128xi1>
    %41 = arith.select %40, %38, %33 : vector<384x128xi1>, vector<384x128xf32>
    %c5 = arith.constant 5 : index
    %c0_7 = arith.constant 0 : index
    %42 = vector.load %arg3[%c5, %c0_7] : memref<8x128xf32, #tpu.memory_space<vmem>>, vector<1x128xf32>
    %c5_i32 = arith.constant 5 : i32
    %43 = vector.broadcast %c5_i32 : i32 to vector<384x1xi32>
    %44 = arith.cmpi eq, %0, %43 : vector<384x1xi32>
    %45 = vector.shape_cast %42 : vector<1x128xf32> to vector<1x128xf32>
    %46 = vector.broadcast %45 : vector<1x128xf32> to vector<384x128xf32>
    %47 = vector.shape_cast %44 : vector<384x1xi1> to vector<384x1xi1>
    %48 = vector.broadcast %47 : vector<384x1xi1> to vector<384x128xi1>
    %49 = arith.select %48, %46, %41 : vector<384x128xi1>, vector<384x128xf32>
    %c6 = arith.constant 6 : index
    %c0_8 = arith.constant 0 : index
    %50 = vector.load %arg3[%c6, %c0_8] : memref<8x128xf32, #tpu.memory_space<vmem>>, vector<1x128xf32>
    %c6_i32 = arith.constant 6 : i32
    %51 = vector.broadcast %c6_i32 : i32 to vector<384x1xi32>
    %52 = arith.cmpi eq, %0, %51 : vector<384x1xi32>
    %53 = vector.shape_cast %50 : vector<1x128xf32> to vector<1x128xf32>
    %54 = vector.broadcast %53 : vector<1x128xf32> to vector<384x128xf32>
    %55 = vector.shape_cast %52 : vector<384x1xi1> to vector<384x1xi1>
    %56 = vector.broadcast %55 : vector<384x1xi1> to vector<384x128xi1>
    %57 = arith.select %56, %54, %49 : vector<384x128xi1>, vector<384x128xf32>
    %c7 = arith.constant 7 : index
    %c0_9 = arith.constant 0 : index
    %58 = vector.load %arg3[%c7, %c0_9] : memref<8x128xf32, #tpu.memory_space<vmem>>, vector<1x128xf32>
    %c7_i32 = arith.constant 7 : i32
    %59 = vector.broadcast %c7_i32 : i32 to vector<384x1xi32>
    %60 = arith.cmpi eq, %0, %59 : vector<384x1xi32>
    %61 = vector.shape_cast %58 : vector<1x128xf32> to vector<1x128xf32>
    %62 = vector.broadcast %61 : vector<1x128xf32> to vector<384x128xf32>
    %63 = vector.shape_cast %60 : vector<384x1xi1> to vector<384x1xi1>
    %64 = vector.broadcast %63 : vector<384x1xi1> to vector<384x128xi1>
    %65 = arith.select %64, %62, %57 : vector<384x128xi1>, vector<384x128xf32>
    %c0_10 = arith.constant 0 : index
    %c0_11 = arith.constant 0 : index
    %66 = vector.load %arg2[%c0_10, %c0_11] : memref<384x128xf32, #tpu.memory_space<vmem>>, vector<384x128xf32>
    %67 = arith.mulf %66, %65 : vector<384x128xf32>
    %c0_12 = arith.constant 0 : index
    %c0_13 = arith.constant 0 : index
    %68 = vector.load %arg4[%c0_12, %c0_13] : memref<384x128xf32, #tpu.memory_space<vmem>>, vector<384x128xf32>
    tpu.vector_store %arg4[%c0_12, %c0_13], %67 {strides = array<i32>} : memref<384x128xf32, #tpu.memory_space<vmem>>, vector<384x128xf32>,
    return
  }
  func.func @transform_0(%arg0: i32) -> (i32, i32) {
    %c0_i32 = arith.constant 0 : i32
    %c0_i32_0 = arith.constant 0 : i32
    return %arg0, %c0_i32 : i32, i32
  }
  func.func @transform_1(%arg0: i32) -> (i32, i32) {
    %c0_i32 = arith.constant 0 : i32
    %c0_i32_0 = arith.constant 0 : i32
    return %arg0, %c0_i32 : i32, i32
  }
  func.func @transform_2(%arg0: i32) -> (i32, i32) {
    %c0_i32 = arith.constant 0 : i32
    %c0_i32_0 = arith.constant 0 : i32
    %c0_i32_1 = arith.constant 0 : i32
    return %c0_i32, %c0_i32_0 : i32, i32
  }
  func.func @transform_3(%arg0: i32) -> (i32, i32) {
    %c0_i32 = arith.constant 0 : i32
    %c0_i32_0 = arith.constant 0 : i32
    return %arg0, %c0_i32 : i32, i32
  }
}

</mosaic_0001>

<bundles_post_ra>
// kernel: global_mask_layer_v5.1
= control target key start
LH: loop header
LB: loop body
LE: loop exit
PB: predicated region body
PF: predicated region fallthrough
CT: control target
= control target key end

     0   :  { %v7311_v3 = vmov 0   ;;  %s7241_s0 = inlined_call_operand.vmem [shape: s32[300,1], index: 0, kind: input, shape index: {}]   ;;  %s7242_s1 = inlined_call_operand.vmem [shape: f32[300,128], index: 1, kind: input, shape index: {}]   ;;  %s7243_s2 = inlined_call_operand.vmem [shape: f32[8,128], index: 2, kind: input, shape index: {}]   ;;  %s7244_s3 = inlined_call_operand.hbm [shape: f32[300,128], index: 3, kind: output, shape index: {}]  }
   0x1   :  { %v3113_v0 = vld [vmem:[%s7241_s0 + $0x10] sm:$0xff]  ;;  %v3118_v1 = vld [vmem:[%s7241_s0] sm:$0xff]  ;;  %v3123_v2 = vld [vmem:[%s7241_s0 + $0x18] sm:$0xff]  ;;  %2964 = vset.pattern.permute.xlu1 %v7311_v3  ;;  %2963 = vset.pattern.permute.xlu0 %v7311_v3 }
   0x2   :  { %vm66_vm0 = vcmp.eq.s32.totalorder %v3113_v0, 0  ;;  %vm64_vm1 = vcmp.eq.s32.totalorder %v3118_v1, 0  ;;  %vm67_vm2 = vcmp.eq.s32.totalorder %v3123_v2, 0  ;;  %v3133_v4 = vld [vmem:[%s7241_s0 + $0x8] sm:$0xff]  ;;  %v3146_v8 = vld [vmem:[%s7241_s0 + $0x20] sm:$0xff]  ;;  %v3155_v11 = vld [vmem:[%s7241_s0 + $0x38] sm:$0xff] }
   0x3   :  { %v118_v5 = vsel %vm66_vm0, 1, %v7311_v3  ;;  %v116_v6 = vsel %vm64_vm1, 1, %v7311_v3  ;;  %vm65_vm3 = vcmp.eq.s32.totalorder %v3133_v4, 0  ;;  %v3141_v7 = vld [vmem:[%s7241_s0 + $0x28] sm:$0xff]  ;;  %v119_v9 = vsel %vm67_vm2, 1, %v7311_v3  ;;  %v3160_v12 = vld [vmem:[%s7241_s0 + $0x30] sm:$0xff] }
   0x4   :  { %171 = vperm.xlu1 %2964, %v118_v5   ;;  %165 = vperm.xlu0 %2963, %v116_v6   ;;  %v117_v10 = vsel %vm65_vm3, 1, %v7311_v3  ;;  %vm69_vm4 = vcmp.eq.s32.totalorder %v3141_v7, 0  ;;  %vm68_vm5 = vcmp.eq.s32.totalorder %v3146_v8, 0  ;;  %vm71_vm6 = vcmp.eq.s32.totalorder %v3155_v11, 0  ;;  %v3169_v15 = vld [vmem:[%s7241_s0 + $0x48] sm:$0xff]  ;;  %v3174_v16 = vld [vmem:[%s7241_s0 + $0x40] sm:$0xff] }
   0x5   :  { %v121_v13 = vsel %vm69_vm4, 1, %v7311_v3  ;;  %v120_v14 = vsel %vm68_vm5, 1, %v7311_v3  ;;  %vm70_vm7 = vcmp.eq.s32.totalorder %v3160_v12, 0  ;;  %v123_v17 = vsel %vm71_vm6, 1, %v7311_v3  ;;  %v3183_v19 = vld [vmem:[%s7241_s0 + $0x58] sm:$0xff]  ;;  %v3188_v20 = vld [vmem:[%s7241_s0 + $0x50] sm:$0xff] }
   0x6   :  { %v122_v18 = vsel %vm70_vm7, 1, %v7311_v3  ;;  %vm73_vm8 = vcmp.eq.s32.totalorder %v3169_v15, 0  ;;  %vm72_vm9 = vcmp.eq.s32.totalorder %v3174_v16, 0  ;;  %vm75_vm10 = vcmp.eq.s32.totalorder %v3183_v19, 0  ;;  %v3197_v23 = vld [vmem:[%s7241_s0 + $0x68] sm:$0xff]  ;;  %v3202_v24 = vld [vmem:[%s7241_s0 + $0x60] sm:$0xff] }
   0x7   :  { %v125_v21 = vsel %vm73_vm8, 1, %v7311_v3  ;;  %v124_v22 = vsel %vm72_vm9, 1, %v7311_v3  ;;  %vm74_vm11 = vcmp.eq.s32.totalorder %v3188_v20, 0  ;;  %v127_v25 = vsel %vm75_vm10, 1, %v7311_v3  ;;  %v3211_v27 = vld [vmem:[%s7241_s0 + $0x78] sm:$0xff]  ;;  %v3216_v28 = vld [vmem:[%s7241_s0 + $0x70] sm:$0xff] }
   0x8   :  { %174 = vperm.xlu1 %2964, %v119_v9   ;;  %168 = vperm.xlu0 %2963, %v117_v10   ;;  %v126_v26 = vsel %vm74_vm11, 1, %v7311_v3  ;;  %vm77_vm12 = vcmp.eq.s32.totalorder %v3197_v23, 0  ;;  %vm76_vm13 = vcmp.eq.s32.totalorder %v3202_v24, 0 }
   0x9   :  { %v129_v29 = vsel %vm77_vm12, 1, %v7311_v3  ;;  %v128_v30 = vsel %vm76_vm13, 1, %v7311_v3 }
   0xc   :  { %180 = vperm.xlu1 %2964, %v121_v13   ;;  %177 = vperm.xlu0 %2963, %v120_v14  }
  0x10   :  { %186 = vperm.xlu1 %2964, %v123_v17   ;;  %183 = vperm.xlu0 %2963, %v122_v18  }
  0x14   :  { %192 = vperm.xlu1 %2964, %v125_v21   ;;  %189 = vperm.xlu0 %2963, %v124_v22  }
  0x18   :  { %198 = vperm.xlu1 %2964, %v127_v25   ;;  %195 = vperm.xlu0 %2963, %v126_v26  }
  0x19   :  { %8 = vsyncpa [#allocation3], 0  ;;  %vm79_vm14 = vcmp.eq.s32.totalorder %v3211_v27, 0  ;;  %vm78_vm15 = vcmp.eq.s32.totalorder %v3216_v28, 0  ;;  %v3225_v31 = vld [vmem:[%s7241_s0 + $0x88] sm:$0xff]  ;;  %v3230_v32 = vld [vmem:[%s7241_s0 + $0x80] sm:$0xff] }
  0x1a   :  { %v131_v33 = vsel %vm79_vm14, 1, %v7311_v3  ;;  %v130_v34 = vsel %vm78_vm15, 1, %v7311_v3  ;;  %vm81_vm0 = vcmp.eq.s32.totalorder %v3225_v31, 0  ;;  %vm80_vm1 = vcmp.eq.s32.totalorder %v3230_v32, 0  ;;  %v3239_v35 = vld [vmem:[%s7241_s0 + $0x98] sm:$0xff]  ;;  %v3244_v36 = vld [vmem:[%s7241_s0 + $0x90] sm:$0xff] }
  0x1b   :  { %v133_v37 = vsel %vm81_vm0, 1, %v7311_v3  ;;  %v132_v38 = vsel %vm80_vm1, 1, %v7311_v3  ;;  %vm83_vm2 = vcmp.eq.s32.totalorder %v3239_v35, 0  ;;  %vm82_vm3 = vcmp.eq.s32.totalorder %v3244_v36, 0  ;;  %v3253_v39 = vld [vmem:[%s7241_s0 + $0xa8] sm:$0xff]  ;;  %v3258_v40 = vld [vmem:[%s7241_s0 + $0xa0] sm:$0xff] }
  0x1c   :  { %204 = vperm.xlu1 %2964, %v129_v29   ;;  %201 = vperm.xlu0 %2963, %v128_v30   ;;  %v135_v41 = vsel %vm83_vm2, 1, %v7311_v3  ;;  %v134_v42 = vsel %vm82_vm3, 1, %v7311_v3  ;;  %vm85_vm4 = vcmp.eq.s32.totalorder %v3253_v39, 0  ;;  %vm84_vm5 = vcmp.eq.s32.totalorder %v3258_v40, 0  ;;  %v3267_v43 = vld [vmem:[%s7241_s0 + $0xb8] sm:$0xff]  ;;  %v3272_v44 = vld [vmem:[%s7241_s0 + $0xb0] sm:$0xff] }
  0x1d   :  { %v137_v45 = vsel %vm85_vm4, 1, %v7311_v3  ;;  %v136_v46 = vsel %vm84_vm5, 1, %v7311_v3  ;;  %vm87_vm6 = vcmp.eq.s32.totalorder %v3267_v43, 0  ;;  %vm86_vm7 = vcmp.eq.s32.totalorder %v3272_v44, 0  ;;  %v3281_v47 = vld [vmem:[%s7241_s0 + $0xc8] sm:$0xff]  ;;  %v3286_v48 = vld [vmem:[%s7241_s0 + $0xc0] sm:$0xff] }
  0x1e   :  { %v139_v49 = vsel %vm87_vm6, 1, %v7311_v3  ;;  %v138_v50 = vsel %vm86_vm7, 1, %v7311_v3  ;;  %vm89_vm8 = vcmp.eq.s32.totalorder %v3281_v47, 0  ;;  %vm88_vm9 = vcmp.eq.s32.totalorder %v3286_v48, 0  ;;  %v3295_v51 = vld [vmem:[%s7241_s0 + $0xd8] sm:$0xff]  ;;  %v3300_v52 = vld [vmem:[%s7241_s0 + $0xd0] sm:$0xff] }
  0x1f   :  { %v141_v53 = vsel %vm89_vm8, 1, %v7311_v3  ;;  %v140_v54 = vsel %vm88_vm9, 1, %v7311_v3  ;;  %vm91_vm10 = vcmp.eq.s32.totalorder %v3295_v51, 0  ;;  %vm90_vm11 = vcmp.eq.s32.totalorder %v3300_v52, 0  ;;  %v3309_v55 = vld [vmem:[%s7241_s0 + $0xe8] sm:$0xff]  ;;  %v3314_v56 = vld [vmem:[%s7241_s0 + $0xe0] sm:$0xff] }
  0x20   :  { %210 = vperm.xlu1 %2964, %v131_v33   ;;  %207 = vperm.xlu0 %2963, %v130_v34   ;;  %v143_v57 = vsel %vm91_vm10, 1, %v7311_v3  ;;  %v142_v58 = vsel %vm90_vm11, 1, %v7311_v3  ;;  %vm93_vm12 = vcmp.eq.s32.totalorder %v3309_v55, 0  ;;  %vm92_vm13 = vcmp.eq.s32.totalorder %v3314_v56, 0  ;;  %v3323_v59 = vld [vmem:[%s7241_s0 + $0xf8] sm:$0xff]  ;;  %v3328_v60 = vld [vmem:[%s7241_s0 + $0xf0] sm:$0xff] }
  0x21   :  { %v145_v61 = vsel %vm93_vm12, 1, %v7311_v3  ;;  %v144_v62 = vsel %vm92_vm13, 1, %v7311_v3  ;;  %vm95_vm14 = vcmp.eq.s32.totalorder %v3323_v59, 0  ;;  %vm94_vm15 = vcmp.eq.s32.totalorder %v3328_v60, 0  ;;  %v3337_v63 = vld [vmem:[%s7241_s0 + $0x108] sm:$0xff]  ;;  %v3342_v5 = vld [vmem:[%s7241_s0 + $0x100] sm:$0xff] }
  0x22   :  { %v147_v6 = vsel %vm95_vm14, 1, %v7311_v3  ;;  %v146_v9 = vsel %vm94_vm15, 1, %v7311_v3  ;;  %vm97_vm0 = vcmp.eq.s32.totalorder %v3337_v63, 0  ;;  %vm96_vm1 = vcmp.eq.s32.totalorder %v3342_v5, 0  ;;  %v3351_v10 = vld [vmem:[%s7241_s0 + $0x118] sm:$0xff]  ;;  %v3356_v13 = vld [vmem:[%s7241_s0 + $0x110] sm:$0xff] }
  0x23   :  { %v149_v14 = vsel %vm97_vm0, 1, %v7311_v3  ;;  %v148_v17 = vsel %vm96_vm1, 1, %v7311_v3  ;;  %vm99_vm2 = vcmp.eq.s32.totalorder %v3351_v10, 0  ;;  %vm98_vm3 = vcmp.eq.s32.totalorder %v3356_v13, 0  ;;  %v3365_v18 = vld [vmem:[%s7241_s0 + $0x128] sm:$0xff]  ;;  %v3370_v21 = vld [vmem:[%s7241_s0 + $0x120] sm:$0xff] }
  0x24   :  { %216 = vperm.xlu1 %2964, %v133_v37   ;;  %213 = vperm.xlu0 %2963, %v132_v38   ;;  %v151_v22 = vsel %vm99_vm2, 1, %v7311_v3  ;;  %v150_v25 = vsel %vm98_vm3, 1, %v7311_v3  ;;  %vm101_vm4 = vcmp.eq.s32.totalorder %v3365_v18, 0  ;;  %vm100_vm5 = vcmp.eq.s32.totalorder %v3370_v21, 0  ;;  %v3379_v26 = vld [vmem:[%s7241_s0 + $0x138] sm:$0xff]  ;;  %v3384_v29 = vld [vmem:[%s7241_s0 + $0x130] sm:$0xff] }
  0x25   :  { %v153_v30 = vsel %vm101_vm4, 1, %v7311_v3  ;;  %v152_v33 = vsel %vm100_vm5, 1, %v7311_v3  ;;  %vm103_vm6 = vcmp.eq.s32.totalorder %v3379_v26, 0  ;;  %vm102_vm7 = vcmp.eq.s32.totalorder %v3384_v29, 0  ;;  %v3393_v34 = vld [vmem:[%s7241_s0 + $0x148] sm:$0xff]  ;;  %v3398_v37 = vld [vmem:[%s7241_s0 + $0x140] sm:$0xff] }
  0x26   :  { %v155_v38 = vsel %vm103_vm6, 1, %v7311_v3  ;;  %vm105_vm8 = vcmp.eq.s32.totalorder %v3393_v34, 0  ;;  %vm104_vm9 = vcmp.eq.s32.totalorder %v3398_v37, 0  ;;  %vm406_vm0 = vcmp.eq.s32.totalorder %v3133_v4, 1 }
  0x27   :  { %vm405_vm1 = vcmp.eq.s32.totalorder %v3118_v1, 1  ;;  %vm408_vm2 = vcmp.eq.s32.totalorder %v3123_v2, 1  ;;  %vm407_vm3 = vcmp.eq.s32.totalorder %v3113_v0, 1  ;;  %vm410_vm4 = vcmp.eq.s32.totalorder %v3141_v7, 1 }
  0x28   :  { %222 = vperm.xlu1 %2964, %v135_v41   ;;  %219 = vperm.xlu0 %2963, %v134_v42   ;;  %v154_v41 = vsel %vm102_vm7, 1, %v7311_v3  ;;  %v3407_v42 = vld [vmem:[%s7241_s0 + $0x158] sm:$0xff]  ;;  %vm409_vm5 = vcmp.eq.s32.totalorder %v3146_v8, 1  ;;  %vm412_vm6 = vcmp.eq.s32.totalorder %v3155_v11, 1  ;;  %vm411_vm7 = vcmp.eq.s32.totalorder %v3160_v12, 1 }
  0x29   :  { %vm107_vm10 = vcmp.eq.s32.totalorder %v3407_v42, 0 }
  0x2c   :  { %228 = vperm.xlu1 %2964, %v137_v45   ;;  %225 = vperm.xlu0 %2963, %v136_v46   ;;  %v3412_v45 = vld [vmem:[%s7241_s0 + $0x150] sm:$0xff]  ;;  %v157_v46 = vsel %vm105_vm8, 1, %v7311_v3  ;;  %vm414_vm8 = vcmp.eq.s32.totalorder %v3169_v15, 1 }
  0x2d   :  { %vm106_vm11 = vcmp.eq.s32.totalorder %v3412_v45, 0 }
  0x30   :  { %234 = vperm.xlu1 %2964, %v139_v49   ;;  %231 = vperm.xlu0 %2963, %v138_v50   ;;  %v156_v49 = vsel %vm104_vm9, 1, %v7311_v3  ;;  %v3421_v50 = vld [vmem:[%s7241_s0 + $0x168] sm:$0xff]  ;;  %vm413_vm9 = vcmp.eq.s32.totalorder %v3174_v16, 1 }
  0x31   :  { %vm109_vm12 = vcmp.eq.s32.totalorder %v3421_v50, 0 }
  0x34   :  { %240 = vperm.xlu1 %2964, %v141_v53   ;;  %237 = vperm.xlu0 %2963, %v140_v54   ;;  %v3426_v53 = vld [vmem:[%s7241_s0 + $0x160] sm:$0xff]  ;;  %v159_v54 = vsel %vm107_vm10, 1, %v7311_v3  ;;  %vm416_vm10 = vcmp.eq.s32.totalorder %v3183_v19, 1 }
  0x35   :  { %vm108_vm13 = vcmp.eq.s32.totalorder %v3426_v53, 0 }
  0x38   :  { %246 = vperm.xlu1 %2964, %v143_v57   ;;  %243 = vperm.xlu0 %2963, %v142_v58   ;;  %v158_v57 = vsel %vm106_vm11, 1, %v7311_v3  ;;  %v3435_v58 = vld [vmem:[%s7241_s0 + $0x178] sm:$0xff]  ;;  %vm415_vm11 = vcmp.eq.s32.totalorder %v3188_v20, 1 }
  0x39   :  { %vm111_vm14 = vcmp.eq.s32.totalorder %v3435_v58, 0 }
  0x3c   :  { %252 = vperm.xlu1 %2964, %v145_v61   ;;  %249 = vperm.xlu0 %2963, %v144_v62   ;;  %v3440_v61 = vld [vmem:[%s7241_s0 + $0x170] sm:$0xff]  ;;  %v161_v62 = vsel %vm109_vm12, 1, %v7311_v3  ;;  %vm418_vm12 = vcmp.eq.s32.totalorder %v3197_v23, 1 }
  0x3d   :  { %vm110_vm15 = vcmp.eq.s32.totalorder %v3440_v61, 0 }
  0x40   :  { %258 = vperm.xlu1 %2964, %v147_v6   ;;  %255 = vperm.xlu0 %2963, %v146_v9   ;;  %v160_v6 = vsel %vm108_vm13, 1, %v7311_v3  ;;  %v163_v9 = vsel %vm111_vm14, 1, %v7311_v3  ;;  %vm417_vm13 = vcmp.eq.s32.totalorder %v3202_v24, 1  ;;  %vm420_vm14 = vcmp.eq.s32.totalorder %v3211_v27, 1 }
  0x44   :  { %264 = vperm.xlu1 %2964, %v149_v14   ;;  %261 = vperm.xlu0 %2963, %v148_v17   ;;  %v162_v14 = vsel %vm110_vm15, 1, %v7311_v3  ;;  %v458_v17 = vsel %vm406_vm0, 1, %v7311_v3  ;;  %vm419_vm15 = vcmp.eq.s32.totalorder %v3216_v28, 1  ;;  %vm422_vm0 = vcmp.eq.s32.totalorder %v3225_v31, 1 }
  0x48   :  { %270 = vperm.xlu1 %2964, %v151_v22   ;;  %267 = vperm.xlu0 %2963, %v150_v25   ;;  %v457_v22 = vsel %vm405_vm1, 1, %v7311_v3  ;;  %v460_v25 = vsel %vm408_vm2, 1, %v7311_v3  ;;  %vm421_vm1 = vcmp.eq.s32.totalorder %v3230_v32, 1  ;;  %vm424_vm2 = vcmp.eq.s32.totalorder %v3239_v35, 1 }
  0x4c   :  { %276 = vperm.xlu1 %2964, %v153_v30   ;;  %273 = vperm.xlu0 %2963, %v152_v33   ;;  %v459_v30 = vsel %vm407_vm3, 1, %v7311_v3  ;;  %v462_v33 = vsel %vm410_vm4, 1, %v7311_v3  ;;  %vm423_vm3 = vcmp.eq.s32.totalorder %v3244_v36, 1  ;;  %vm426_vm4 = vcmp.eq.s32.totalorder %v3253_v39, 1 }
  0x50   :  { %282 = vperm.xlu1 %2964, %v155_v38   ;;  %279 = vperm.xlu0 %2963, %v154_v41   ;;  %v461_v38 = vsel %vm409_vm5, 1, %v7311_v3  ;;  %v464_v41 = vsel %vm412_vm6, 1, %v7311_v3  ;;  %vm425_vm5 = vcmp.eq.s32.totalorder %v3258_v40, 1  ;;  %vm428_vm6 = vcmp.eq.s32.totalorder %v3267_v43, 1 }
  0x54   :  { %288 = vperm.xlu1 %2964, %v157_v46   ;;  %285 = vperm.xlu0 %2963, %v156_v49   ;;  %v463_v46 = vsel %vm411_vm7, 1, %v7311_v3  ;;  %v466_v49 = vsel %vm414_vm8, 1, %v7311_v3  ;;  %vm427_vm7 = vcmp.eq.s32.totalorder %v3272_v44, 1  ;;  %vm430_vm8 = vcmp.eq.s32.totalorder %v3281_v47, 1 }
  0x58   :  { %294 = vperm.xlu1 %2964, %v159_v54   ;;  %291 = vperm.xlu0 %2963, %v158_v57   ;;  %v465_v54 = vsel %vm413_vm9, 1, %v7311_v3  ;;  %v468_v57 = vsel %vm416_vm10, 1, %v7311_v3  ;;  %vm429_vm9 = vcmp.eq.s32.totalorder %v3286_v48, 1  ;;  %vm432_vm10 = vcmp.eq.s32.totalorder %v3295_v51, 1 }
  0x5c   :  { %300 = vperm.xlu1 %2964, %v161_v62   ;;  %297 = vperm.xlu0 %2963, %v160_v6   ;;  %v467_v62 = vsel %vm415_vm11, 1, %v7311_v3  ;;  %v470_v6 = vsel %vm418_vm12, 1, %v7311_v3  ;;  %vm431_vm11 = vcmp.eq.s32.totalorder %v3300_v52, 1  ;;  %vm434_vm12 = vcmp.eq.s32.totalorder %v3309_v55, 1 }
  0x60   :  { %306 = vperm.xlu1 %2964, %v163_v9   ;;  %303 = vperm.xlu0 %2963, %v162_v14   ;;  %v469_v9 = vsel %vm417_vm13, 1, %v7311_v3  ;;  %v472_v14 = vsel %vm420_vm14, 1, %v7311_v3  ;;  %vm433_vm13 = vcmp.eq.s32.totalorder %v3314_v56, 1  ;;  %vm436_vm14 = vcmp.eq.s32.totalorder %v3323_v59, 1 }
  0x64   :  { %509 = vperm.xlu1 %2964, %v458_v17   ;;  %506 = vperm.xlu0 %2963, %v457_v22   ;;  %v471_v17 = vsel %vm419_vm15, 1, %v7311_v3  ;;  %v474_v22 = vsel %vm422_vm0, 1, %v7311_v3  ;;  %vm435_vm15 = vcmp.eq.s32.totalorder %v3328_v60, 1  ;;  %vm438_vm0 = vcmp.eq.s32.totalorder %v3337_v63, 1 }
  0x68   :  { %515 = vperm.xlu1 %2964, %v460_v25   ;;  %512 = vperm.xlu0 %2963, %v459_v30   ;;  %v473_v25 = vsel %vm421_vm1, 1, %v7311_v3  ;;  %vm437_vm1 = vcmp.eq.s32.totalorder %v3342_v5, 1 }
  0x6c   :  { %521 = vperm.xlu1 %2964, %v462_v33   ;;  %518 = vperm.xlu0 %2963, %v461_v38   ;;  %v476_v38 = vsel %vm424_vm2, 1, %v7311_v3  ;;  %vm440_vm2 = vcmp.eq.s32.totalorder %v3351_v10, 1 }
  0x70   :  { %527 = vperm.xlu1 %2964, %v464_v41   ;;  %524 = vperm.xlu0 %2963, %v463_v46   ;;  %v475_v41 = vsel %vm423_vm3, 1, %v7311_v3  ;;  %vm439_vm3 = vcmp.eq.s32.totalorder %v3356_v13, 1 }
  0x74   :  { %533 = vperm.xlu1 %2964, %v466_v49   ;;  %530 = vperm.xlu0 %2963, %v465_v54   ;;  %v478_v54 = vsel %vm426_vm4, 1, %v7311_v3  ;;  %vm442_vm4 = vcmp.eq.s32.totalorder %v3365_v18, 1 }
  0x78   :  { %539 = vperm.xlu1 %2964, %v468_v57   ;;  %536 = vperm.xlu0 %2963, %v467_v62   ;;  %v477_v57 = vsel %vm425_vm5, 1, %v7311_v3  ;;  %vm441_vm5 = vcmp.eq.s32.totalorder %v3370_v21, 1 }
  0x7c   :  { %545 = vperm.xlu1 %2964, %v470_v6   ;;  %542 = vperm.xlu0 %2963, %v469_v9   ;;  %v480_v9 = vsel %vm428_vm6, 1, %v7311_v3  ;;  %vm444_vm6 = vcmp.eq.s32.totalorder %v3379_v26, 1 }
  0x80   :  { %551 = vperm.xlu1 %2964, %v472_v14   ;;  %548 = vperm.xlu0 %2963, %v471_v17   ;;  %v479_v14 = vsel %vm427_vm7, 1, %v7311_v3  ;;  %vm443_vm7 = vcmp.eq.s32.totalorder %v3384_v29, 1 }
  0x83   :  { %v3486_v30 = vpop.permute.xlu1 %171  ;;  %v3488_v33 = vpop.permute.xlu0 %165 }
  0x84   :  { %557 = vperm.xlu1 %2964, %v474_v22   ;;  %554 = vperm.xlu0 %2963, %v473_v25   ;;  %v482_v25 = vsel %vm430_vm8, 1, %v7311_v3  ;;  %vm446_vm8 = vcmp.eq.s32.totalorder %v3393_v34, 1 }
  0x87   :  { %v3494_v46 = vpop.permute.xlu1 %174  ;;  %v3496_v49 = vpop.permute.xlu0 %168 }
  0x88   :  { %563 = vperm.xlu1 %2964, %v476_v38   ;;  %560 = vperm.xlu0 %2963, %v475_v41   ;;  %v481_v38 = vsel %vm429_vm9, 1, %v7311_v3  ;;  %vm445_vm9 = vcmp.eq.s32.totalorder %v3398_v37, 1 }
  0x8b   :  { %v3502_v62 = vpop.permute.xlu1 %180  ;;  %v3504_v6 = vpop.permute.xlu0 %177 }
  0x8c   :  { %569 = vperm.xlu1 %2964, %v478_v54   ;;  %566 = vperm.xlu0 %2963, %v477_v57   ;;  %v484_v57 = vsel %vm432_vm10, 1, %v7311_v3  ;;  %vm448_vm10 = vcmp.eq.s32.totalorder %v3407_v42, 1 }
  0x8f   :  { %v3510_v17 = vpop.permute.xlu1 %186  ;;  %v3512_v22 = vpop.permute.xlu0 %183 }
  0x90   :  { %7417 = vst [vmem:[#allocation5_spill] sm:$0xff] %v3512_v22  ;;  %575 = vperm.xlu1 %2964, %v480_v9   ;;  %572 = vperm.xlu0 %2963, %v479_v14   ;;  %v483_v22 = vsel %vm431_vm11, 1, %v7311_v3  ;;  %vm447_vm11 = vcmp.eq.s32.totalorder %v3412_v45, 1 }
  0x93   :  { %v3518_v41 = vpop.permute.xlu1 %192  ;;  %v3520_v54 = vpop.permute.xlu0 %189 }
  0x94   :  { %7418 = vst [vmem:[#allocation6_spill] sm:$0xff] %v3518_v41  ;;  %7419 = vst [vmem:[#allocation7_spill] sm:$0xff] %v3520_v54  ;;  %581 = vperm.xlu1 %2964, %v482_v25   ;;  %578 = vperm.xlu0 %2963, %v481_v38   ;;  %v486_v41 = vsel %vm434_vm12, 1, %v7311_v3  ;;  %v485_v54 = vsel %vm433_vm13, 1, %v7311_v3  ;;  %vm450_vm12 = vcmp.eq.s32.totalorder %v3421_v50, 1  ;;  %vm449_vm13 = vcmp.eq.s32.totalorder %v3426_v53, 1 }
  0x97   :  { %v3526_v9 = vpop.permute.xlu1 %198  ;;  %v3528_v14 = vpop.permute.xlu0 %195 }
  0x98   :  { %7420 = vst [vmem:[#allocation8_spill] sm:$0xff] %v3526_v9  ;;  %7421 = vst [vmem:[#allocation9_spill] sm:$0xff] %v3528_v14  ;;  %587 = vperm.xlu1 %2964, %v484_v57   ;;  %584 = vperm.xlu0 %2963, %v483_v22   ;;  %v488_v9 = vsel %vm436_vm14, 1, %v7311_v3  ;;  %v487_v14 = vsel %vm435_vm15, 1, %v7311_v3  ;;  %vm452_vm14 = vcmp.eq.s32.totalorder %v3435_v58, 1  ;;  %vm451_vm15 = vcmp.eq.s32.totalorder %v3440_v61, 1 }
  0x9b   :  { %v3534_v25 = vpop.permute.xlu1 %204  ;;  %v3536_v38 = vpop.permute.xlu0 %201 }
  0x9c   :  { %7422 = vst [vmem:[#allocation10_spill] sm:$0xff] %v3534_v25  ;;  %7423 = vst [vmem:[#allocation11_spill] sm:$0xff] %v3536_v38  ;;  %593 = vperm.xlu1 %2964, %v486_v41   ;;  %590 = vperm.xlu0 %2963, %v485_v54   ;;  %v490_v25 = vsel %vm438_vm0, 1, %v7311_v3  ;;  %v489_v38 = vsel %vm437_vm1, 1, %v7311_v3  ;;  %vm747_vm0 = vcmp.eq.s32.totalorder %v3133_v4, 2  ;;  %vm746_vm1 = vcmp.eq.s32.totalorder %v3118_v1, 2 }
  0x9f   :  { %v3542_v22 = vpop.permute.xlu1 %210  ;;  %v3544_v57 = vpop.permute.xlu0 %207 }
  0xa0   :  { %7424 = vst [vmem:[#allocation12_spill] sm:$0xff] %v3542_v22  ;;  %7425 = vst [vmem:[#allocation13_spill] sm:$0xff] %v3544_v57  ;;  %599 = vperm.xlu1 %2964, %v488_v9   ;;  %596 = vperm.xlu0 %2963, %v487_v14   ;;  %v492_v22 = vsel %vm440_vm2, 1, %v7311_v3  ;;  %v491_v57 = vsel %vm439_vm3, 1, %v7311_v3  ;;  %vm749_vm2 = vcmp.eq.s32.totalorder %v3123_v2, 2  ;;  %vm748_vm3 = vcmp.eq.s32.totalorder %v3113_v0, 2 }
  0xa1   :  { %v801_v1 = vsel %vm749_vm2, 1, %v7311_v3  ;;  %v800_v4 = vsel %vm748_vm3, 1, %v7311_v3  ;;  %vm765_vm2 = vcmp.eq.s32.totalorder %v3239_v35, 2  ;;  %vm764_vm3 = vcmp.eq.s32.totalorder %v3244_v36, 2 }
  0xa3   :  { %v3550_v41 = vpop.permute.xlu1 %216  ;;  %v3552_v54 = vpop.permute.xlu0 %213 }
  0xa4   :  { %7426 = vst [vmem:[#allocation14_spill] sm:$0xff] %v3550_v41  ;;  %7427 = vst [vmem:[#allocation15_spill] sm:$0xff] %v3552_v54  ;;  %605 = vperm.xlu1 %2964, %v490_v25   ;;  %602 = vperm.xlu0 %2963, %v489_v38   ;;  %v494_v41 = vsel %vm442_vm4, 1, %v7311_v3  ;;  %v493_v54 = vsel %vm441_vm5, 1, %v7311_v3  ;;  %vm751_vm4 = vcmp.eq.s32.totalorder %v3141_v7, 2  ;;  %vm750_vm5 = vcmp.eq.s32.totalorder %v3146_v8, 2 }
  0xa5   :  { %v803_v0 = vsel %vm751_vm4, 1, %v7311_v3  ;;  %v802_v2 = vsel %vm750_vm5, 1, %v7311_v3  ;;  %vm767_vm4 = vcmp.eq.s32.totalorder %v3253_v39, 2  ;;  %vm766_vm5 = vcmp.eq.s32.totalorder %v3258_v40, 2 }
  0xa6   :  { %v819_v35 = vsel %vm767_vm4, 1, %v7311_v3  ;;  %v818_v36 = vsel %vm766_vm5, 1, %v7311_v3  ;;  %vm783_vm4 = vcmp.eq.s32.totalorder %v3365_v18, 2  ;;  %vm782_vm5 = vcmp.eq.s32.totalorder %v3370_v21, 2 }
  0xa7   :  { %v3558_v9 = vpop.permute.xlu1 %222  ;;  %v3560_v14 = vpop.permute.xlu0 %219 }
  0xa8   :  { %7428 = vst [vmem:[#allocation16_spill] sm:$0xff] %v3558_v9  ;;  %7429 = vst [vmem:[#allocation17_spill] sm:$0xff] %v3560_v14  ;;  %611 = vperm.xlu1 %2964, %v492_v22   ;;  %608 = vperm.xlu0 %2963, %v491_v57   ;;  %v496_v9 = vsel %vm444_vm6, 1, %v7311_v3  ;;  %v495_v14 = vsel %vm443_vm7, 1, %v7311_v3  ;;  %vm753_vm6 = vcmp.eq.s32.totalorder %v3155_v11, 2  ;;  %vm752_vm7 = vcmp.eq.s32.totalorder %v3160_v12, 2 }
  0xa9   :  { %v805_v7 = vsel %vm753_vm6, 1, %v7311_v3  ;;  %v804_v8 = vsel %vm752_vm7, 1, %v7311_v3  ;;  %vm769_vm6 = vcmp.eq.s32.totalorder %v3267_v43, 2  ;;  %vm768_vm7 = vcmp.eq.s32.totalorder %v3272_v44, 2 }
  0xaa   :  { %v821_v39 = vsel %vm769_vm6, 1, %v7311_v3  ;;  %v820_v40 = vsel %vm768_vm7, 1, %v7311_v3  ;;  %vm785_vm6 = vcmp.eq.s32.totalorder %v3379_v26, 2  ;;  %vm784_vm7 = vcmp.eq.s32.totalorder %v3384_v29, 2 }
  0xab   :  { %v3566_v25 = vpop.permute.xlu1 %228  ;;  %v3568_v38 = vpop.permute.xlu0 %225  ;;  %v837_v18 = vsel %vm785_vm6, 1, %v7311_v3  ;;  %v836_v21 = vsel %vm784_vm7, 1, %v7311_v3 }
  0xac   :  { %7430 = vst [vmem:[#allocation18_spill] sm:$0xff] %v3566_v25  ;;  %7431 = vst [vmem:[#allocation19_spill] sm:$0xff] %v3568_v38  ;;  %617 = vperm.xlu1 %2964, %v494_v41   ;;  %614 = vperm.xlu0 %2963, %v493_v54   ;;  %v498_v25 = vsel %vm446_vm8, 1, %v7311_v3  ;;  %v497_v38 = vsel %vm445_vm9, 1, %v7311_v3  ;;  %vm755_vm8 = vcmp.eq.s32.totalorder %v3169_v15, 2  ;;  %vm754_vm9 = vcmp.eq.s32.totalorder %v3174_v16, 2 }
  0xad   :  { %v807_v11 = vsel %vm755_vm8, 1, %v7311_v3  ;;  %v806_v12 = vsel %vm754_vm9, 1, %v7311_v3  ;;  %vm771_vm8 = vcmp.eq.s32.totalorder %v3281_v47, 2  ;;  %vm770_vm9 = vcmp.eq.s32.totalorder %v3286_v48, 2 }
  0xae   :  { %v823_v43 = vsel %vm771_vm8, 1, %v7311_v3  ;;  %v822_v44 = vsel %vm770_vm9, 1, %v7311_v3  ;;  %vm787_vm8 = vcmp.eq.s32.totalorder %v3393_v34, 2  ;;  %vm786_vm9 = vcmp.eq.s32.totalorder %v3398_v37, 2 }
  0xaf   :  { %v3574_v22 = vpop.permute.xlu1 %234  ;;  %v3576_v57 = vpop.permute.xlu0 %231  ;;  %v839_v26 = vsel %vm787_vm8, 1, %v7311_v3  ;;  %v838_v29 = vsel %vm786_vm9, 1, %v7311_v3 }
  0xb0   :  { %7432 = vst [vmem:[#allocation20_spill] sm:$0xff] %v3574_v22  ;;  %7433 = vst [vmem:[#allocation21_spill] sm:$0xff] %v3576_v57  ;;  %623 = vperm.xlu1 %2964, %v496_v9   ;;  %620 = vperm.xlu0 %2963, %v495_v14   ;;  %v500_v22 = vsel %vm448_vm10, 1, %v7311_v3  ;;  %v499_v57 = vsel %vm447_vm11, 1, %v7311_v3  ;;  %vm757_vm10 = vcmp.eq.s32.totalorder %v3183_v19, 2  ;;  %vm756_vm11 = vcmp.eq.s32.totalorder %v3188_v20, 2 }
  0xb1   :  { %v809_v15 = vsel %vm757_vm10, 1, %v7311_v3  ;;  %v808_v16 = vsel %vm756_vm11, 1, %v7311_v3  ;;  %vm773_vm10 = vcmp.eq.s32.totalorder %v3295_v51, 2  ;;  %vm772_vm11 = vcmp.eq.s32.totalorder %v3300_v52, 2 }
  0xb2   :  { %v825_v47 = vsel %vm773_vm10, 1, %v7311_v3  ;;  %v824_v48 = vsel %vm772_vm11, 1, %v7311_v3  ;;  %vm789_vm10 = vcmp.eq.s32.totalorder %v3407_v42, 2  ;;  %vm788_vm11 = vcmp.eq.s32.totalorder %v3412_v45, 2 }
  0xb3   :  { %v3582_v41 = vpop.permute.xlu1 %240  ;;  %v3584_v54 = vpop.permute.xlu0 %237  ;;  %v841_v34 = vsel %vm789_vm10, 1, %v7311_v3  ;;  %v840_v37 = vsel %vm788_vm11, 1, %v7311_v3 }
  0xb4   :  { %7434 = vst [vmem:[#allocation22_spill] sm:$0xff] %v3582_v41  ;;  %7435 = vst [vmem:[#allocation23_spill] sm:$0xff] %v3584_v54  ;;  %629 = vperm.xlu1 %2964, %v498_v25   ;;  %626 = vperm.xlu0 %2963, %v497_v38   ;;  %v502_v41 = vsel %vm450_vm12, 1, %v7311_v3  ;;  %v501_v54 = vsel %vm449_vm13, 1, %v7311_v3  ;;  %vm759_vm12 = vcmp.eq.s32.totalorder %v3197_v23, 2  ;;  %vm758_vm13 = vcmp.eq.s32.totalorder %v3202_v24, 2 }
  0xb5   :  { %v811_v19 = vsel %vm759_vm12, 1, %v7311_v3  ;;  %v810_v20 = vsel %vm758_vm13, 1, %v7311_v3  ;;  %vm775_vm12 = vcmp.eq.s32.totalorder %v3309_v55, 2  ;;  %vm774_vm13 = vcmp.eq.s32.totalorder %v3314_v56, 2 }
  0xb6   :  { %v827_v51 = vsel %vm775_vm12, 1, %v7311_v3  ;;  %v826_v52 = vsel %vm774_vm13, 1, %v7311_v3  ;;  %vm791_vm12 = vcmp.eq.s32.totalorder %v3421_v50, 2  ;;  %vm790_vm13 = vcmp.eq.s32.totalorder %v3426_v53, 2 }
  0xb7   :  { %v3590_v9 = vpop.permute.xlu1 %246  ;;  %v3592_v14 = vpop.permute.xlu0 %243  ;;  %v843_v42 = vsel %vm791_vm12, 1, %v7311_v3  ;;  %v842_v45 = vsel %vm790_vm13, 1, %v7311_v3 }
  0xb8   :  { %7436 = vst [vmem:[#allocation24_spill] sm:$0xff] %v3590_v9  ;;  %7437 = vst [vmem:[#allocation25_spill] sm:$0xff] %v3592_v14  ;;  %635 = vperm.xlu1 %2964, %v500_v22   ;;  %632 = vperm.xlu0 %2963, %v499_v57   ;;  %v504_v9 = vsel %vm452_vm14, 1, %v7311_v3  ;;  %v503_v14 = vsel %vm451_vm15, 1, %v7311_v3  ;;  %vm761_vm14 = vcmp.eq.s32.totalorder %v3211_v27, 2  ;;  %vm760_vm15 = vcmp.eq.s32.totalorder %v3216_v28, 2 }
  0xb9   :  { %v813_v23 = vsel %vm761_vm14, 1, %v7311_v3  ;;  %v812_v24 = vsel %vm760_vm15, 1, %v7311_v3  ;;  %vm777_vm14 = vcmp.eq.s32.totalorder %v3323_v59, 2  ;;  %vm776_vm15 = vcmp.eq.s32.totalorder %v3328_v60, 2 }
  0xba   :  { %v829_v55 = vsel %vm777_vm14, 1, %v7311_v3  ;;  %v828_v56 = vsel %vm776_vm15, 1, %v7311_v3  ;;  %vm793_vm14 = vcmp.eq.s32.totalorder %v3435_v58, 2  ;;  %vm792_vm15 = vcmp.eq.s32.totalorder %v3440_v61, 2  ;;  %v3805_v58 = vld [vmem:[%s7241_s0] sm:$0xff] }
  0xbb   :  { %v3598_v25 = vpop.permute.xlu1 %252  ;;  %v3600_v38 = vpop.permute.xlu0 %249  ;;  %v845_v50 = vsel %vm793_vm14, 1, %v7311_v3  ;;  %v844_v53 = vsel %vm792_vm15, 1, %v7311_v3 }
  0xbc   :  { %7438 = vst [vmem:[#allocation26_spill] sm:$0xff] %v3598_v25  ;;  %7439 = vst [vmem:[#allocation27_spill] sm:$0xff] %v3600_v38  ;;  %641 = vperm.xlu1 %2964, %v502_v41   ;;  %638 = vperm.xlu0 %2963, %v501_v54   ;;  %v799_v25 = vsel %vm747_vm0, 1, %v7311_v3  ;;  %v798_v38 = vsel %vm746_vm1, 1, %v7311_v3  ;;  %vm763_vm0 = vcmp.eq.s32.totalorder %v3225_v31, 2  ;;  %vm762_vm1 = vcmp.eq.s32.totalorder %v3230_v32, 2 }
  0xbd   :  { %v815_v27 = vsel %vm763_vm0, 1, %v7311_v3  ;;  %v814_v28 = vsel %vm762_vm1, 1, %v7311_v3  ;;  %v817_v31 = vsel %vm765_vm2, 1, %v7311_v3  ;;  %v816_v32 = vsel %vm764_vm3, 1, %v7311_v3 }
  0xbe   :  { %vm779_vm0 = vcmp.eq.s32.totalorder %v3337_v63, 2  ;;  %vm778_vm1 = vcmp.eq.s32.totalorder %v3342_v5, 2  ;;  %vm781_vm2 = vcmp.eq.s32.totalorder %v3351_v10, 2  ;;  %vm780_vm3 = vcmp.eq.s32.totalorder %v3356_v13, 2 }
  0xbf   :  { %v3606_v22 = vpop.permute.xlu1 %258  ;;  %v3608_v57 = vpop.permute.xlu0 %255  ;;  %v831_v59 = vsel %vm779_vm0, 1, %v7311_v3  ;;  %v830_v60 = vsel %vm778_vm1, 1, %v7311_v3  ;;  %v833_v63 = vsel %vm781_vm2, 1, %v7311_v3  ;;  %v832_v5 = vsel %vm780_vm3, 1, %v7311_v3 }
  0xc0   :  { %7440 = vst [vmem:[#allocation28_spill] sm:$0xff] %v3606_v22  ;;  %7441 = vst [vmem:[#allocation29_spill] sm:$0xff] %v3608_v57  ;;  %647 = vperm.xlu1 %2964, %v504_v9   ;;  %644 = vperm.xlu0 %2963, %v503_v14   ;;  %v835_v10 = vsel %vm783_vm4, 1, %v7311_v3  ;;  %v834_v13 = vsel %vm782_vm5, 1, %v7311_v3  ;;  %vm1087_vm1 = vcmp.eq.s32.totalorder %v3805_v58, 3 }
  0xc3   :  { %v3614_v41 = vpop.permute.xlu1 %264  ;;  %v3616_v54 = vpop.permute.xlu0 %261 }
  0xc4   :  { %7442 = vst [vmem:[#allocation30_spill] sm:$0xff] %v3614_v41  ;;  %7443 = vst [vmem:[#allocation31_spill] sm:$0xff] %v3616_v54  ;;  %850 = vperm.xlu1 %2964, %v799_v25   ;;  %847 = vperm.xlu0 %2963, %v798_v38   ;;  %v4213_v54 = vld [vmem:[%s7241_s0 + $0x178] sm:$0xff]  ;;  %v4219_v41 = vld [vmem:[%s7241_s0 + $0x170] sm:$0xff] }
  0xc7   :  { %v3622_v9 = vpop.permute.xlu1 %270  ;;  %v3624_v14 = vpop.permute.xlu0 %267 }
  0xc8   :  { %7444 = vst [vmem:[#allocation32_spill] sm:$0xff] %v3622_v9  ;;  %7445 = vst [vmem:[#allocation33_spill] sm:$0xff] %v3624_v14  ;;  %856 = vperm.xlu1 %2964, %v801_v1   ;;  %853 = vperm.xlu0 %2963, %v800_v4   ;;  %v4195_v14 = vld [vmem:[%s7241_s0 + $0x168] sm:$0xff]  ;;  %v4201_v9 = vld [vmem:[%s7241_s0 + $0x160] sm:$0xff] }
  0xcb   :  { %v3630_v25 = vpop.permute.xlu1 %276  ;;  %v3632_v38 = vpop.permute.xlu0 %273 }
  0xcc   :  { %7446 = vst [vmem:[#allocation34_spill] sm:$0xff] %v3630_v25  ;;  %7447 = vst [vmem:[#allocation35_spill] sm:$0xff] %v3632_v38  ;;  %862 = vperm.xlu1 %2964, %v803_v0   ;;  %859 = vperm.xlu0 %2963, %v802_v2   ;;  %v4177_v38 = vld [vmem:[%s7241_s0 + $0x158] sm:$0xff]  ;;  %v4183_v25 = vld [vmem:[%s7241_s0 + $0x150] sm:$0xff] }
  0xcf   :  { %v3638_v1 = vpop.permute.xlu1 %282  ;;  %v3640_v4 = vpop.permute.xlu0 %279 }
  0xd0   :  { %7448 = vst [vmem:[#allocation36_spill] sm:$0xff] %v3638_v1  ;;  %7449 = vst [vmem:[#allocation37_spill] sm:$0xff] %v3640_v4  ;;  %868 = vperm.xlu1 %2964, %v805_v7   ;;  %865 = vperm.xlu0 %2963, %v804_v8   ;;  %v4159_v4 = vld [vmem:[%s7241_s0 + $0x148] sm:$0xff]  ;;  %v4165_v1 = vld [vmem:[%s7241_s0 + $0x140] sm:$0xff] }
  0xd3   :  { %v3646_v0 = vpop.permute.xlu1 %288  ;;  %v3648_v2 = vpop.permute.xlu0 %285 }
  0xd4   :  { %7450 = vst [vmem:[#allocation38_spill] sm:$0xff] %v3646_v0  ;;  %7451 = vst [vmem:[#allocation39_spill] sm:$0xff] %v3648_v2  ;;  %874 = vperm.xlu1 %2964, %v807_v11   ;;  %871 = vperm.xlu0 %2963, %v806_v12   ;;  %v4141_v2 = vld [vmem:[%s7241_s0 + $0x138] sm:$0xff]  ;;  %v4147_v0 = vld [vmem:[%s7241_s0 + $0x130] sm:$0xff] }
  0xd7   :  { %v3654_v7 = vpop.permute.xlu1 %294  ;;  %v3656_v8 = vpop.permute.xlu0 %291 }
  0xd8   :  { %7452 = vst [vmem:[#allocation40_spill] sm:$0xff] %v3654_v7  ;;  %7453 = vst [vmem:[#allocation41_spill] sm:$0xff] %v3656_v8  ;;  %880 = vperm.xlu1 %2964, %v809_v15   ;;  %877 = vperm.xlu0 %2963, %v808_v16   ;;  %v4123_v8 = vld [vmem:[%s7241_s0 + $0x128] sm:$0xff]  ;;  %v4129_v7 = vld [vmem:[%s7241_s0 + $0x120] sm:$0xff] }
  0xdb   :  { %v3662_v11 = vpop.permute.xlu1 %300  ;;  %v3664_v12 = vpop.permute.xlu0 %297 }
  0xdc   :  { %7454 = vst [vmem:[#allocation42_spill] sm:$0xff] %v3662_v11  ;;  %7455 = vst [vmem:[#allocation43_spill] sm:$0xff] %v3664_v12  ;;  %886 = vperm.xlu1 %2964, %v811_v19   ;;  %883 = vperm.xlu0 %2963, %v810_v20   ;;  %v4105_v12 = vld [vmem:[%s7241_s0 + $0x118] sm:$0xff]  ;;  %v4111_v11 = vld [vmem:[%s7241_s0 + $0x110] sm:$0xff] }
  0xdf   :  { %v3670_v15 = vpop.permute.xlu1 %306  ;;  %v3672_v16 = vpop.permute.xlu0 %303 }
  0xe0   :  { %7456 = vst [vmem:[#allocation44_spill] sm:$0xff] %v3670_v15  ;;  %7457 = vst [vmem:[#allocation45_spill] sm:$0xff] %v3672_v16  ;;  %892 = vperm.xlu1 %2964, %v813_v23   ;;  %889 = vperm.xlu0 %2963, %v812_v24   ;;  %v4087_v16 = vld [vmem:[%s7241_s0 + $0x108] sm:$0xff]  ;;  %v4093_v15 = vld [vmem:[%s7241_s0 + $0x100] sm:$0xff] }
  0xe3   :  { %v3678_v19 = vpop.permute.xlu1 %509  ;;  %v3680_v20 = vpop.permute.xlu0 %506 }
  0xe4   :  { %7458 = vst [vmem:[#allocation46_spill] sm:$0xff] %v3678_v19  ;;  %7459 = vst [vmem:[#allocation47_spill] sm:$0xff] %v3680_v20  ;;  %898 = vperm.xlu1 %2964, %v815_v27   ;;  %895 = vperm.xlu0 %2963, %v814_v28   ;;  %v4069_v20 = vld [vmem:[%s7241_s0 + $0xf8] sm:$0xff]  ;;  %v4075_v19 = vld [vmem:[%s7241_s0 + $0xf0] sm:$0xff] }
  0xe7   :  { %v3686_v23 = vpop.permute.xlu1 %515  ;;  %v3688_v24 = vpop.permute.xlu0 %512 }
  0xe8   :  { %7460 = vst [vmem:[#allocation48_spill] sm:$0xff] %v3686_v23  ;;  %7461 = vst [vmem:[#allocation49_spill] sm:$0xff] %v3688_v24  ;;  %904 = vperm.xlu1 %2964, %v817_v31   ;;  %901 = vperm.xlu0 %2963, %v816_v32   ;;  %v4051_v24 = vld [vmem:[%s7241_s0 + $0xe8] sm:$0xff]  ;;  %v4057_v23 = vld [vmem:[%s7241_s0 + $0xe0] sm:$0xff] }
  0xeb   :  { %v3694_v27 = vpop.permute.xlu1 %521  ;;  %v3696_v28 = vpop.permute.xlu0 %518 }
  0xec   :  { %7462 = vst [vmem:[#allocation50_spill] sm:$0xff] %v3694_v27  ;;  %7463 = vst [vmem:[#allocation51_spill] sm:$0xff] %v3696_v28  ;;  %910 = vperm.xlu1 %2964, %v819_v35   ;;  %907 = vperm.xlu0 %2963, %v818_v36   ;;  %v4033_v28 = vld [vmem:[%s7241_s0 + $0xd8] sm:$0xff]  ;;  %v4039_v27 = vld [vmem:[%s7241_s0 + $0xd0] sm:$0xff] }
  0xef   :  { %v3702_v31 = vpop.permute.xlu1 %527  ;;  %v3704_v32 = vpop.permute.xlu0 %524 }
  0xf0   :  { %7464 = vst [vmem:[#allocation52_spill] sm:$0xff] %v3702_v31  ;;  %7465 = vst [vmem:[#allocation53_spill] sm:$0xff] %v3704_v32  ;;  %916 = vperm.xlu1 %2964, %v821_v39   ;;  %913 = vperm.xlu0 %2963, %v820_v40   ;;  %v4015_v32 = vld [vmem:[%s7241_s0 + $0xc8] sm:$0xff]  ;;  %v4021_v31 = vld [vmem:[%s7241_s0 + $0xc0] sm:$0xff] }
  0xf3   :  { %v3710_v35 = vpop.permute.xlu1 %533  ;;  %v3712_v36 = vpop.permute.xlu0 %530 }
  0xf4   :  { %7466 = vst [vmem:[#allocation54_spill] sm:$0xff] %v3710_v35  ;;  %7467 = vst [vmem:[#allocation55_spill] sm:$0xff] %v3712_v36  ;;  %922 = vperm.xlu1 %2964, %v823_v43   ;;  %919 = vperm.xlu0 %2963, %v822_v44   ;;  %v3997_v36 = vld [vmem:[%s7241_s0 + $0xb8] sm:$0xff]  ;;  %v4003_v35 = vld [vmem:[%s7241_s0 + $0xb0] sm:$0xff] }
  0xf7   :  { %v3718_v39 = vpop.permute.xlu1 %539  ;;  %v3720_v40 = vpop.permute.xlu0 %536 }
  0xf8   :  { %7468 = vst [vmem:[#allocation56_spill] sm:$0xff] %v3718_v39  ;;  %7469 = vst [vmem:[#allocation57_spill] sm:$0xff] %v3720_v40  ;;  %928 = vperm.xlu1 %2964, %v825_v47   ;;  %925 = vperm.xlu0 %2963, %v824_v48   ;;  %v3979_v40 = vld [vmem:[%s7241_s0 + $0xa8] sm:$0xff]  ;;  %v3985_v39 = vld [vmem:[%s7241_s0 + $0xa0] sm:$0xff] }
  0xfb   :  { %v3726_v43 = vpop.permute.xlu1 %545  ;;  %v3728_v44 = vpop.permute.xlu0 %542 }
  0xfc   :  { %7470 = vst [vmem:[#allocation58_spill] sm:$0xff] %v3726_v43  ;;  %7471 = vst [vmem:[#allocation59_spill] sm:$0xff] %v3728_v44  ;;  %934 = vperm.xlu1 %2964, %v827_v51   ;;  %931 = vperm.xlu0 %2963, %v826_v52   ;;  %v3961_v44 = vld [vmem:[%s7241_s0 + $0x98] sm:$0xff]  ;;  %v3967_v43 = vld [vmem:[%s7241_s0 + $0x90] sm:$0xff] }
  0xff   :  { %v3734_v47 = vpop.permute.xlu1 %551  ;;  %v3736_v48 = vpop.permute.xlu0 %548 }
 0x100   :  { %7472 = vst [vmem:[#allocation60_spill] sm:$0xff] %v3734_v47  ;;  %7473 = vst [vmem:[#allocation61_spill] sm:$0xff] %v3736_v48  ;;  %940 = vperm.xlu1 %2964, %v829_v55   ;;  %937 = vperm.xlu0 %2963, %v828_v56   ;;  %v3943_v48 = vld [vmem:[%s7241_s0 + $0x88] sm:$0xff]  ;;  %v3949_v47 = vld [vmem:[%s7241_s0 + $0x80] sm:$0xff] }
 0x103   :  { %v3742_v51 = vpop.permute.xlu1 %557  ;;  %v3744_v52 = vpop.permute.xlu0 %554 }
 0x104   :  { %7474 = vst [vmem:[#allocation62_spill] sm:$0xff] %v3742_v51  ;;  %7475 = vst [vmem:[#allocation63_spill] sm:$0xff] %v3744_v52  ;;  %946 = vperm.xlu1 %2964, %v831_v59   ;;  %943 = vperm.xlu0 %2963, %v830_v60   ;;  %v3925_v52 = vld [vmem:[%s7241_s0 + $0x78] sm:$0xff]  ;;  %v3931_v51 = vld [vmem:[%s7241_s0 + $0x70] sm:$0xff] }
 0x105   :  { %vm1102_vm14 = vcmp.eq.s32.totalorder %v3925_v52, 3  ;;  %vm1101_vm15 = vcmp.eq.s32.totalorder %v3931_v51, 3 }
 0x107   :  { %v3750_v55 = vpop.permute.xlu1 %563  ;;  %v3752_v56 = vpop.permute.xlu0 %560 }
 0x108   :  { %7476 = vst [vmem:[#allocation64_spill] sm:$0xff] %v3750_v55  ;;  %7477 = vst [vmem:[#allocation65_spill] sm:$0xff] %v3752_v56  ;;  %952 = vperm.xlu1 %2964, %v833_v63   ;;  %949 = vperm.xlu0 %2963, %v832_v5   ;;  %v3907_v56 = vld [vmem:[%s7241_s0 + $0x68] sm:$0xff]  ;;  %v3913_v55 = vld [vmem:[%s7241_s0 + $0x60] sm:$0xff] }
 0x109   :  { %vm1100_vm12 = vcmp.eq.s32.totalorder %v3907_v56, 3  ;;  %vm1099_vm13 = vcmp.eq.s32.totalorder %v3913_v55, 3 }
 0x10b   :  { %v3758_v59 = vpop.permute.xlu1 %569  ;;  %v3760_v60 = vpop.permute.xlu0 %566 }
 0x10c   :  { %7478 = vst [vmem:[#allocation66_spill] sm:$0xff] %v3758_v59  ;;  %7479 = vst [vmem:[#allocation67_spill] sm:$0xff] %v3760_v60  ;;  %958 = vperm.xlu1 %2964, %v835_v10   ;;  %955 = vperm.xlu0 %2963, %v834_v13   ;;  %v3889_v60 = vld [vmem:[%s7241_s0 + $0x58] sm:$0xff]  ;;  %v3895_v59 = vld [vmem:[%s7241_s0 + $0x50] sm:$0xff] }
 0x10d   :  { %vm1098_vm10 = vcmp.eq.s32.totalorder %v3889_v60, 3  ;;  %vm1097_vm11 = vcmp.eq.s32.totalorder %v3895_v59, 3 }
 0x10f   :  { %v3766_v63 = vpop.permute.xlu1 %575  ;;  %v3768_v5 = vpop.permute.xlu0 %572 }
 0x110   :  { %7480 = vst [vmem:[#allocation68_spill] sm:$0xff] %v3766_v63  ;;  %7481 = vst [vmem:[#allocation69_spill] sm:$0xff] %v3768_v5  ;;  %964 = vperm.xlu1 %2964, %v837_v18   ;;  %961 = vperm.xlu0 %2963, %v836_v21   ;;  %v3871_v5 = vld [vmem:[%s7241_s0 + $0x48] sm:$0xff]  ;;  %v3877_v63 = vld [vmem:[%s7241_s0 + $0x40] sm:$0xff] }
 0x111   :  { %vm1096_vm8 = vcmp.eq.s32.totalorder %v3871_v5, 3  ;;  %vm1095_vm9 = vcmp.eq.s32.totalorder %v3877_v63, 3 }
 0x113   :  { %v3774_v10 = vpop.permute.xlu1 %581  ;;  %v3776_v13 = vpop.permute.xlu0 %578 }
 0x114   :  { %7482 = vst [vmem:[#allocation70_spill] sm:$0xff] %v3774_v10  ;;  %7483 = vst [vmem:[#allocation71_spill] sm:$0xff] %v3776_v13  ;;  %970 = vperm.xlu1 %2964, %v839_v26   ;;  %967 = vperm.xlu0 %2963, %v838_v29   ;;  %v3853_v13 = vld [vmem:[%s7241_s0 + $0x38] sm:$0xff]  ;;  %v3859_v10 = vld [vmem:[%s7241_s0 + $0x30] sm:$0xff] }
 0x115   :  { %vm1094_vm6 = vcmp.eq.s32.totalorder %v3853_v13, 3  ;;  %vm1093_vm7 = vcmp.eq.s32.totalorder %v3859_v10, 3 }
 0x117   :  { %v3782_v18 = vpop.permute.xlu1 %587  ;;  %v3784_v21 = vpop.permute.xlu0 %584 }
 0x118   :  { %7484 = vst [vmem:[#allocation72_spill] sm:$0xff] %v3782_v18  ;;  %7485 = vst [vmem:[#allocation73_spill] sm:$0xff] %v3784_v21  ;;  %976 = vperm.xlu1 %2964, %v841_v34   ;;  %973 = vperm.xlu0 %2963, %v840_v37   ;;  %v3799_v34 = vld [vmem:[%s7241_s0 + $0x8] sm:$0xff]  ;;  %v3841_v18 = vld [vmem:[%s7241_s0 + $0x20] sm:$0xff] }
 0x119   :  { %vm1088_vm0 = vcmp.eq.s32.totalorder %v3799_v34, 3  ;;  %v3835_v21 = vld [vmem:[%s7241_s0 + $0x28] sm:$0xff]  ;;  %vm1091_vm5 = vcmp.eq.s32.totalorder %v3841_v18, 3 }
 0x11a   :  { %vm1092_vm4 = vcmp.eq.s32.totalorder %v3835_v21, 3 }
 0x11b   :  { %v3790_v26 = vpop.permute.xlu1 %593  ;;  %v3792_v29 = vpop.permute.xlu0 %590 }
 0x11c   :  { %7486 = vst [vmem:[#allocation74_spill] sm:$0xff] %v3790_v26  ;;  %7487 = vst [vmem:[#allocation75_spill] sm:$0xff] %v3792_v29  ;;  %982 = vperm.xlu1 %2964, %v843_v42   ;;  %979 = vperm.xlu0 %2963, %v842_v45   ;;  %v1140_v42 = vsel %vm1088_vm0, 1, %v7311_v3  ;;  %v1139_v45 = vsel %vm1087_vm1, 1, %v7311_v3  ;;  %v3817_v29 = vld [vmem:[%s7241_s0 + $0x18] sm:$0xff]  ;;  %v3823_v26 = vld [vmem:[%s7241_s0 + $0x10] sm:$0xff] }
 0x11d   :  { %vm1090_vm2 = vcmp.eq.s32.totalorder %v3817_v29, 3  ;;  %vm1089_vm3 = vcmp.eq.s32.totalorder %v3823_v26, 3  ;;  %vm1104_vm0 = vcmp.eq.s32.totalorder %v3943_v48, 3  ;;  %vm1103_vm1 = vcmp.eq.s32.totalorder %v3949_v47, 3 }
 0x11f   :  { %v3808_v61 = vpop.permute.xlu1 %599  ;;  %v3810_v37 = vpop.permute.xlu0 %596 }
 0x120   :  { %7488 = vst [vmem:[#allocation76_spill] sm:$0xff] %v3808_v61  ;;  %7489 = vst [vmem:[#allocation77_spill] sm:$0xff] %v3810_v37  ;;  %988 = vperm.xlu1 %2964, %v845_v50   ;;  %985 = vperm.xlu0 %2963, %v844_v53   ;;  %v1142_v37 = vsel %vm1090_vm2, 1, %v7311_v3  ;;  %v1141_v61 = vsel %vm1089_vm3, 1, %v7311_v3  ;;  %vm1106_vm2 = vcmp.eq.s32.totalorder %v3961_v44, 3  ;;  %vm1105_vm3 = vcmp.eq.s32.totalorder %v3967_v43, 3 }
 0x123   :  { %v3826_v50 = vpop.permute.xlu1 %605  ;;  %v3828_v53 = vpop.permute.xlu0 %602 }
 0x124   :  { %7490 = vst [vmem:[#allocation78_spill] sm:$0xff] %v3826_v50  ;;  %7491 = vst [vmem:[#allocation79_spill] sm:$0xff] %v3828_v53  ;;  %1191 = vperm.xlu1 %2964, %v1140_v42   ;;  %1188 = vperm.xlu0 %2963, %v1139_v45   ;;  %v1144_v53 = vsel %vm1092_vm4, 1, %v7311_v3  ;;  %v1143_v50 = vsel %vm1091_vm5, 1, %v7311_v3  ;;  %vm1108_vm4 = vcmp.eq.s32.totalorder %v3979_v40, 3  ;;  %vm1107_vm5 = vcmp.eq.s32.totalorder %v3985_v39, 3 }
 0x127   :  { %v3844_v42 = vpop.permute.xlu1 %611  ;;  %v3846_v45 = vpop.permute.xlu0 %608 }
 0x128   :  { %7492 = vst [vmem:[#allocation80_spill] sm:$0xff] %v3844_v42  ;;  %7493 = vst [vmem:[#allocation81_spill] sm:$0xff] %v3846_v45  ;;  %1197 = vperm.xlu1 %2964, %v1142_v37   ;;  %1194 = vperm.xlu0 %2963, %v1141_v61   ;;  %v1146_v45 = vsel %vm1094_vm6, 1, %v7311_v3  ;;  %v1145_v42 = vsel %vm1093_vm7, 1, %v7311_v3  ;;  %vm1110_vm6 = vcmp.eq.s32.totalorder %v3997_v36, 3  ;;  %vm1109_vm7 = vcmp.eq.s32.totalorder %v4003_v35, 3 }
 0x12b   :  { %v3862_v37 = vpop.permute.xlu1 %617  ;;  %v3864_v61 = vpop.permute.xlu0 %614 }
 0x12c   :  { %7494 = vst [vmem:[#allocation82_spill] sm:$0xff] %v3862_v37  ;;  %7495 = vst [vmem:[#allocation83_spill] sm:$0xff] %v3864_v61  ;;  %1203 = vperm.xlu1 %2964, %v1144_v53   ;;  %1200 = vperm.xlu0 %2963, %v1143_v50   ;;  %v1148_v61 = vsel %vm1096_vm8, 1, %v7311_v3  ;;  %v1147_v37 = vsel %vm1095_vm9, 1, %v7311_v3  ;;  %vm1112_vm8 = vcmp.eq.s32.totalorder %v4015_v32, 3  ;;  %vm1111_vm9 = vcmp.eq.s32.totalorder %v4021_v31, 3 }
 0x12f   :  { %v3880_v53 = vpop.permute.xlu1 %623  ;;  %v3882_v50 = vpop.permute.xlu0 %620 }
 0x130   :  { %7496 = vst [vmem:[#allocation84_spill] sm:$0xff] %v3880_v53  ;;  %7497 = vst [vmem:[#allocation85_spill] sm:$0xff] %v3882_v50  ;;  %1209 = vperm.xlu1 %2964, %v1146_v45   ;;  %1206 = vperm.xlu0 %2963, %v1145_v42   ;;  %v1150_v50 = vsel %vm1098_vm10, 1, %v7311_v3  ;;  %v1149_v53 = vsel %vm1097_vm11, 1, %v7311_v3  ;;  %vm1114_vm10 = vcmp.eq.s32.totalorder %v4033_v28, 3  ;;  %vm1113_vm11 = vcmp.eq.s32.totalorder %v4039_v27, 3 }
 0x133   :  { %v3898_v45 = vpop.permute.xlu1 %629  ;;  %v3900_v42 = vpop.permute.xlu0 %626 }
 0x134   :  { %7498 = vst [vmem:[#allocation86_spill] sm:$0xff] %v3898_v45  ;;  %7499 = vst [vmem:[#allocation87_spill] sm:$0xff] %v3900_v42  ;;  %1215 = vperm.xlu1 %2964, %v1148_v61   ;;  %1212 = vperm.xlu0 %2963, %v1147_v37   ;;  %v1152_v42 = vsel %vm1100_vm12, 1, %v7311_v3  ;;  %v1151_v45 = vsel %vm1099_vm13, 1, %v7311_v3  ;;  %vm1116_vm12 = vcmp.eq.s32.totalorder %v4051_v24, 3  ;;  %vm1115_vm13 = vcmp.eq.s32.totalorder %v4057_v23, 3 }
 0x137   :  { %v3916_v61 = vpop.permute.xlu1 %635  ;;  %v3918_v37 = vpop.permute.xlu0 %632 }
 0x138   :  { %7500 = vst [vmem:[#allocation88_spill] sm:$0xff] %v3916_v61  ;;  %7501 = vst [vmem:[#allocation89_spill] sm:$0xff] %v3918_v37  ;;  %1221 = vperm.xlu1 %2964, %v1150_v50   ;;  %1218 = vperm.xlu0 %2963, %v1149_v53   ;;  %v1154_v37 = vsel %vm1102_vm14, 1, %v7311_v3  ;;  %v1153_v61 = vsel %vm1101_vm15, 1, %v7311_v3  ;;  %vm1118_vm14 = vcmp.eq.s32.totalorder %v4069_v20, 3  ;;  %vm1117_vm15 = vcmp.eq.s32.totalorder %v4075_v19, 3 }
 0x13b   :  { %v3934_v50 = vpop.permute.xlu1 %641  ;;  %v3936_v53 = vpop.permute.xlu0 %638 }
 0x13c   :  { %7502 = vst [vmem:[#allocation90_spill] sm:$0xff] %v3934_v50  ;;  %7503 = vst [vmem:[#allocation91_spill] sm:$0xff] %v3936_v53  ;;  %1227 = vperm.xlu1 %2964, %v1152_v42   ;;  %1224 = vperm.xlu0 %2963, %v1151_v45   ;;  %v1156_v53 = vsel %vm1104_vm0, 1, %v7311_v3  ;;  %v1155_v50 = vsel %vm1103_vm1, 1, %v7311_v3  ;;  %vm1120_vm0 = vcmp.eq.s32.totalorder %v4087_v16, 3  ;;  %vm1119_vm1 = vcmp.eq.s32.totalorder %v4093_v15, 3 }
 0x13f   :  { %v3952_v42 = vpop.permute.xlu1 %647  ;;  %v3954_v45 = vpop.permute.xlu0 %644 }
 0x140   :  { %7504 = vst [vmem:[#allocation92_spill] sm:$0xff] %v3952_v42  ;;  %7505 = vst [vmem:[#allocation93_spill] sm:$0xff] %v3954_v45  ;;  %1233 = vperm.xlu1 %2964, %v1154_v37   ;;  %1230 = vperm.xlu0 %2963, %v1153_v61   ;;  %v1158_v45 = vsel %vm1106_vm2, 1, %v7311_v3  ;;  %v1157_v42 = vsel %vm1105_vm3, 1, %v7311_v3  ;;  %vm1122_vm2 = vcmp.eq.s32.totalorder %v4105_v12, 3  ;;  %vm1121_vm3 = vcmp.eq.s32.totalorder %v4111_v11, 3 }
 0x143   :  { %v3970_v37 = vpop.permute.xlu1 %850  ;;  %v3972_v61 = vpop.permute.xlu0 %847 }
 0x144   :  { %7506 = vst [vmem:[#allocation94_spill] sm:$0xff] %v3970_v37  ;;  %7507 = vst [vmem:[#allocation95_spill] sm:$0xff] %v3972_v61  ;;  %1239 = vperm.xlu1 %2964, %v1156_v53   ;;  %1236 = vperm.xlu0 %2963, %v1155_v50   ;;  %v1160_v61 = vsel %vm1108_vm4, 1, %v7311_v3  ;;  %v1159_v37 = vsel %vm1107_vm5, 1, %v7311_v3  ;;  %vm1124_vm4 = vcmp.eq.s32.totalorder %v4123_v8, 3  ;;  %vm1123_vm5 = vcmp.eq.s32.totalorder %v4129_v7, 3 }
 0x147   :  { %v3988_v53 = vpop.permute.xlu1 %856  ;;  %v3990_v50 = vpop.permute.xlu0 %853 }
 0x148   :  { %7508 = vst [vmem:[#allocation96_spill] sm:$0xff] %v3988_v53  ;;  %7509 = vst [vmem:[#allocation97_spill] sm:$0xff] %v3990_v50  ;;  %1245 = vperm.xlu1 %2964, %v1158_v45   ;;  %1242 = vperm.xlu0 %2963, %v1157_v42   ;;  %v1162_v50 = vsel %vm1110_vm6, 1, %v7311_v3  ;;  %v1161_v53 = vsel %vm1109_vm7, 1, %v7311_v3  ;;  %vm1126_vm6 = vcmp.eq.s32.totalorder %v4141_v2, 3  ;;  %vm1125_vm7 = vcmp.eq.s32.totalorder %v4147_v0, 3 }
 0x14b   :  { %v4006_v45 = vpop.permute.xlu1 %862  ;;  %v4008_v42 = vpop.permute.xlu0 %859 }
 0x14c   :  { %7510 = vst [vmem:[#allocation98_spill] sm:$0xff] %v4006_v45  ;;  %7511 = vst [vmem:[#allocation99_spill] sm:$0xff] %v4008_v42  ;;  %1251 = vperm.xlu1 %2964, %v1160_v61   ;;  %1248 = vperm.xlu0 %2963, %v1159_v37   ;;  %v1164_v42 = vsel %vm1112_vm8, 1, %v7311_v3  ;;  %v1163_v45 = vsel %vm1111_vm9, 1, %v7311_v3  ;;  %vm1128_vm8 = vcmp.eq.s32.totalorder %v4159_v4, 3  ;;  %vm1127_vm9 = vcmp.eq.s32.totalorder %v4165_v1, 3 }
 0x14f   :  { %v4024_v61 = vpop.permute.xlu1 %868  ;;  %v4026_v37 = vpop.permute.xlu0 %865 }
 0x150   :  { %7512 = vst [vmem:[#allocation100_spill] sm:$0xff] %v4024_v61  ;;  %7513 = vst [vmem:[#allocation101_spill] sm:$0xff] %v4026_v37  ;;  %1257 = vperm.xlu1 %2964, %v1162_v50   ;;  %1254 = vperm.xlu0 %2963, %v1161_v53   ;;  %v1166_v37 = vsel %vm1114_vm10, 1, %v7311_v3  ;;  %v1165_v61 = vsel %vm1113_vm11, 1, %v7311_v3  ;;  %vm1130_vm10 = vcmp.eq.s32.totalorder %v4177_v38, 3  ;;  %vm1129_vm11 = vcmp.eq.s32.totalorder %v4183_v25, 3 }
 0x153   :  { %v4042_v50 = vpop.permute.xlu1 %874  ;;  %v4044_v53 = vpop.permute.xlu0 %871 }
 0x154   :  { %7514 = vst [vmem:[#allocation102_spill] sm:$0xff] %v4042_v50  ;;  %7515 = vst [vmem:[#allocation103_spill] sm:$0xff] %v4044_v53  ;;  %1263 = vperm.xlu1 %2964, %v1164_v42   ;;  %1260 = vperm.xlu0 %2963, %v1163_v45   ;;  %v1168_v53 = vsel %vm1116_vm12, 1, %v7311_v3  ;;  %v1167_v50 = vsel %vm1115_vm13, 1, %v7311_v3  ;;  %vm1132_vm12 = vcmp.eq.s32.totalorder %v4195_v14, 3  ;;  %vm1131_vm13 = vcmp.eq.s32.totalorder %v4201_v9, 3 }
 0x157   :  { %v4060_v42 = vpop.permute.xlu1 %880  ;;  %v4062_v45 = vpop.permute.xlu0 %877 }
 0x158   :  { %7516 = vst [vmem:[#allocation104_spill] sm:$0xff] %v4060_v42  ;;  %7517 = vst [vmem:[#allocation105_spill] sm:$0xff] %v4062_v45  ;;  %1269 = vperm.xlu1 %2964, %v1166_v37   ;;  %1266 = vperm.xlu0 %2963, %v1165_v61   ;;  %v1170_v45 = vsel %vm1118_vm14, 1, %v7311_v3  ;;  %v1169_v42 = vsel %vm1117_vm15, 1, %v7311_v3  ;;  %vm1134_vm14 = vcmp.eq.s32.totalorder %v4213_v54, 3  ;;  %vm1133_vm15 = vcmp.eq.s32.totalorder %v4219_v41, 3 }
 0x15b   :  { %v4078_v37 = vpop.permute.xlu1 %886  ;;  %v4080_v61 = vpop.permute.xlu0 %883 }
 0x15c   :  { %7518 = vst [vmem:[#allocation106_spill] sm:$0xff] %v4078_v37  ;;  %7519 = vst [vmem:[#allocation107_spill] sm:$0xff] %v4080_v61  ;;  %1275 = vperm.xlu1 %2964, %v1168_v53   ;;  %1272 = vperm.xlu0 %2963, %v1167_v50   ;;  %v1172_v61 = vsel %vm1120_vm0, 1, %v7311_v3  ;;  %v1171_v37 = vsel %vm1119_vm1, 1, %v7311_v3  ;;  %vm1429_vm0 = vcmp.eq.s32.totalorder %v3799_v34, 4  ;;  %vm1428_vm1 = vcmp.eq.s32.totalorder %v3805_v58, 4 }
 0x15f   :  { %v4096_v53 = vpop.permute.xlu1 %892  ;;  %v4098_v50 = vpop.permute.xlu0 %889 }
 0x160   :  { %7520 = vst [vmem:[#allocation108_spill] sm:$0xff] %v4096_v53  ;;  %7521 = vst [vmem:[#allocation109_spill] sm:$0xff] %v4098_v50  ;;  %1281 = vperm.xlu1 %2964, %v1170_v45   ;;  %1278 = vperm.xlu0 %2963, %v1169_v42   ;;  %v1174_v50 = vsel %vm1122_vm2, 1, %v7311_v3  ;;  %v1173_v53 = vsel %vm1121_vm3, 1, %v7311_v3  ;;  %vm1431_vm2 = vcmp.eq.s32.totalorder %v3817_v29, 4  ;;  %vm1430_vm3 = vcmp.eq.s32.totalorder %v3823_v26, 4 }
 0x163   :  { %v4114_v45 = vpop.permute.xlu1 %898  ;;  %v4116_v42 = vpop.permute.xlu0 %895 }
 0x164   :  { %7522 = vst [vmem:[#allocation110_spill] sm:$0xff] %v4114_v45  ;;  %7523 = vst [vmem:[#allocation111_spill] sm:$0xff] %v4116_v42  ;;  %1287 = vperm.xlu1 %2964, %v1172_v61   ;;  %1284 = vperm.xlu0 %2963, %v1171_v37   ;;  %v1176_v42 = vsel %vm1124_vm4, 1, %v7311_v3  ;;  %v1175_v45 = vsel %vm1123_vm5, 1, %v7311_v3  ;;  %vm1433_vm4 = vcmp.eq.s32.totalorder %v3835_v21, 4  ;;  %vm1432_vm5 = vcmp.eq.s32.totalorder %v3841_v18, 4 }
 0x167   :  { %v4132_v61 = vpop.permute.xlu1 %904  ;;  %v4134_v37 = vpop.permute.xlu0 %901 }
 0x168   :  { %7524 = vst [vmem:[#allocation112_spill] sm:$0xff] %v4132_v61  ;;  %7525 = vst [vmem:[#allocation113_spill] sm:$0xff] %v4134_v37  ;;  %1293 = vperm.xlu1 %2964, %v1174_v50   ;;  %1290 = vperm.xlu0 %2963, %v1173_v53   ;;  %v1178_v37 = vsel %vm1126_vm6, 1, %v7311_v3  ;;  %v1177_v61 = vsel %vm1125_vm7, 1, %v7311_v3  ;;  %vm1435_vm6 = vcmp.eq.s32.totalorder %v3853_v13, 4  ;;  %vm1434_vm7 = vcmp.eq.s32.totalorder %v3859_v10, 4 }
 0x16b   :  { %v4150_v50 = vpop.permute.xlu1 %910  ;;  %v4152_v53 = vpop.permute.xlu0 %907 }
 0x16c   :  { %7526 = vst [vmem:[#allocation114_spill] sm:$0xff] %v4150_v50  ;;  %7527 = vst [vmem:[#allocation115_spill] sm:$0xff] %v4152_v53  ;;  %1299 = vperm.xlu1 %2964, %v1176_v42   ;;  %1296 = vperm.xlu0 %2963, %v1175_v45   ;;  %v1180_v53 = vsel %vm1128_vm8, 1, %v7311_v3  ;;  %v1179_v50 = vsel %vm1127_vm9, 1, %v7311_v3  ;;  %vm1437_vm8 = vcmp.eq.s32.totalorder %v3871_v5, 4  ;;  %vm1436_vm9 = vcmp.eq.s32.totalorder %v3877_v63, 4 }
 0x16f   :  { %v4168_v42 = vpop.permute.xlu1 %916  ;;  %v4170_v45 = vpop.permute.xlu0 %913 }
 0x170   :  { %7528 = vst [vmem:[#allocation116_spill] sm:$0xff] %v4168_v42  ;;  %7529 = vst [vmem:[#allocation117_spill] sm:$0xff] %v4170_v45  ;;  %1305 = vperm.xlu1 %2964, %v1178_v37   ;;  %1302 = vperm.xlu0 %2963, %v1177_v61   ;;  %v1182_v45 = vsel %vm1130_vm10, 1, %v7311_v3  ;;  %v1181_v42 = vsel %vm1129_vm11, 1, %v7311_v3  ;;  %vm1439_vm10 = vcmp.eq.s32.totalorder %v3889_v60, 4  ;;  %vm1438_vm11 = vcmp.eq.s32.totalorder %v3895_v59, 4 }
 0x173   :  { %v4186_v37 = vpop.permute.xlu1 %922  ;;  %v4188_v61 = vpop.permute.xlu0 %919 }
 0x174   :  { %7530 = vst [vmem:[#allocation118_spill] sm:$0xff] %v4186_v37  ;;  %7531 = vst [vmem:[#allocation119_spill] sm:$0xff] %v4188_v61  ;;  %1311 = vperm.xlu1 %2964, %v1180_v53   ;;  %1308 = vperm.xlu0 %2963, %v1179_v50   ;;  %v1184_v61 = vsel %vm1132_vm12, 1, %v7311_v3  ;;  %v1183_v37 = vsel %vm1131_vm13, 1, %v7311_v3  ;;  %vm1441_vm12 = vcmp.eq.s32.totalorder %v3907_v56, 4  ;;  %vm1440_vm13 = vcmp.eq.s32.totalorder %v3913_v55, 4 }
 0x177   :  { %v4204_v53 = vpop.permute.xlu1 %928  ;;  %v4206_v50 = vpop.permute.xlu0 %925 }
 0x178   :  { %7532 = vst [vmem:[#allocation120_spill] sm:$0xff] %v4204_v53  ;;  %7533 = vst [vmem:[#allocation121_spill] sm:$0xff] %v4206_v50  ;;  %1317 = vperm.xlu1 %2964, %v1182_v45   ;;  %1314 = vperm.xlu0 %2963, %v1181_v42   ;;  %v1186_v50 = vsel %vm1134_vm14, 1, %v7311_v3  ;;  %v1185_v53 = vsel %vm1133_vm15, 1, %v7311_v3  ;;  %vm1443_vm14 = vcmp.eq.s32.totalorder %v3925_v52, 4  ;;  %vm1442_vm15 = vcmp.eq.s32.totalorder %v3931_v51, 4 }
 0x17b   :  { %v4222_v45 = vpop.permute.xlu1 %934  ;;  %v4224_v42 = vpop.permute.xlu0 %931 }
 0x17c   :  { %7534 = vst [vmem:[#allocation122_spill] sm:$0xff] %v4222_v45  ;;  %7535 = vst [vmem:[#allocation123_spill] sm:$0xff] %v4224_v42  ;;  %1323 = vperm.xlu1 %2964, %v1184_v61   ;;  %1320 = vperm.xlu0 %2963, %v1183_v37   ;;  %v1481_v45 = vsel %vm1429_vm0, 1, %v7311_v3  ;;  %v1480_v42 = vsel %vm1428_vm1, 1, %v7311_v3  ;;  %vm1445_vm0 = vcmp.eq.s32.totalorder %v3943_v48, 4  ;;  %vm1444_vm1 = vcmp.eq.s32.totalorder %v3949_v47, 4 }
 0x17f   :  { %v4230_v57 = vpop.permute.xlu1 %940  ;;  %v4232_v22 = vpop.permute.xlu0 %937 }
 0x180   :  { %7536 = vst [vmem:[#allocation124_spill] sm:$0xff] %v4230_v57  ;;  %7537 = vst [vmem:[#allocation125_spill] sm:$0xff] %v4232_v22  ;;  %1329 = vperm.xlu1 %2964, %v1186_v50   ;;  %1326 = vperm.xlu0 %2963, %v1185_v53   ;;  %v1483_v57 = vsel %vm1431_vm2, 1, %v7311_v3  ;;  %v1482_v22 = vsel %vm1430_vm3, 1, %v7311_v3  ;;  %vm1447_vm2 = vcmp.eq.s32.totalorder %v3961_v44, 4  ;;  %vm1446_vm3 = vcmp.eq.s32.totalorder %v3967_v43, 4 }
 0x183   :  { %v4238_v37 = vpop.permute.xlu1 %946  ;;  %v4240_v61 = vpop.permute.xlu0 %943 }
 0x184   :  { %7538 = vst [vmem:[#allocation126_spill] sm:$0xff] %v4238_v37  ;;  %7539 = vst [vmem:[#allocation127_spill] sm:$0xff] %v4240_v61  ;;  %1532 = vperm.xlu1 %2964, %v1481_v45   ;;  %1529 = vperm.xlu0 %2963, %v1480_v42   ;;  %v1485_v37 = vsel %vm1433_vm4, 1, %v7311_v3  ;;  %v1484_v61 = vsel %vm1432_vm5, 1, %v7311_v3  ;;  %vm1449_vm4 = vcmp.eq.s32.totalorder %v3979_v40, 4  ;;  %vm1448_vm5 = vcmp.eq.s32.totalorder %v3985_v39, 4 }
 0x187   :  { %v4246_v53 = vpop.permute.xlu1 %952  ;;  %v4248_v50 = vpop.permute.xlu0 %949 }
 0x188   :  { %7540 = vst [vmem:[#allocation128_spill] sm:$0xff] %v4246_v53  ;;  %7541 = vst [vmem:[#allocation129_spill] sm:$0xff] %v4248_v50  ;;  %1538 = vperm.xlu1 %2964, %v1483_v57   ;;  %1535 = vperm.xlu0 %2963, %v1482_v22   ;;  %v1487_v53 = vsel %vm1435_vm6, 1, %v7311_v3  ;;  %v1486_v50 = vsel %vm1434_vm7, 1, %v7311_v3  ;;  %vm1451_vm6 = vcmp.eq.s32.totalorder %v3997_v36, 4  ;;  %vm1450_vm7 = vcmp.eq.s32.totalorder %v4003_v35, 4 }
 0x18b   :  { %v4254_v45 = vpop.permute.xlu1 %958  ;;  %v4256_v42 = vpop.permute.xlu0 %955 }
 0x18c   :  { %7542 = vst [vmem:[#allocation130_spill] sm:$0xff] %v4254_v45  ;;  %7543 = vst [vmem:[#allocation131_spill] sm:$0xff] %v4256_v42  ;;  %1544 = vperm.xlu1 %2964, %v1485_v37   ;;  %1541 = vperm.xlu0 %2963, %v1484_v61   ;;  %v1489_v45 = vsel %vm1437_vm8, 1, %v7311_v3  ;;  %v1488_v42 = vsel %vm1436_vm9, 1, %v7311_v3  ;;  %vm1453_vm8 = vcmp.eq.s32.totalorder %v4015_v32, 4  ;;  %vm1452_vm9 = vcmp.eq.s32.totalorder %v4021_v31, 4 }
 0x18f   :  { %v4262_v22 = vpop.permute.xlu1 %964  ;;  %v4264_v57 = vpop.permute.xlu0 %961 }
 0x190   :  { %7544 = vst [vmem:[#allocation132_spill] sm:$0xff] %v4262_v22  ;;  %7545 = vst [vmem:[#allocation133_spill] sm:$0xff] %v4264_v57  ;;  %1550 = vperm.xlu1 %2964, %v1487_v53   ;;  %1547 = vperm.xlu0 %2963, %v1486_v50   ;;  %v1491_v22 = vsel %vm1439_vm10, 1, %v7311_v3  ;;  %v1490_v57 = vsel %vm1438_vm11, 1, %v7311_v3  ;;  %vm1455_vm10 = vcmp.eq.s32.totalorder %v4033_v28, 4  ;;  %vm1454_vm11 = vcmp.eq.s32.totalorder %v4039_v27, 4 }
 0x193   :  { %v4270_v37 = vpop.permute.xlu1 %970  ;;  %v4272_v61 = vpop.permute.xlu0 %967 }
 0x194   :  { %7546 = vst [vmem:[#allocation134_spill] sm:$0xff] %v4270_v37  ;;  %7547 = vst [vmem:[#allocation135_spill] sm:$0xff] %v4272_v61  ;;  %1556 = vperm.xlu1 %2964, %v1489_v45   ;;  %1553 = vperm.xlu0 %2963, %v1488_v42   ;;  %v1493_v37 = vsel %vm1441_vm12, 1, %v7311_v3  ;;  %v1492_v61 = vsel %vm1440_vm13, 1, %v7311_v3  ;;  %vm1457_vm12 = vcmp.eq.s32.totalorder %v4051_v24, 4  ;;  %vm1456_vm13 = vcmp.eq.s32.totalorder %v4057_v23, 4 }
 0x197   :  { %v4278_v53 = vpop.permute.xlu1 %976  ;;  %v4280_v50 = vpop.permute.xlu0 %973 }
 0x198   :  { %7548 = vst [vmem:[#allocation136_spill] sm:$0xff] %v4278_v53  ;;  %7549 = vst [vmem:[#allocation137_spill] sm:$0xff] %v4280_v50  ;;  %1562 = vperm.xlu1 %2964, %v1491_v22   ;;  %1559 = vperm.xlu0 %2963, %v1490_v57   ;;  %v1495_v53 = vsel %vm1443_vm14, 1, %v7311_v3  ;;  %v1494_v50 = vsel %vm1442_vm15, 1, %v7311_v3  ;;  %vm1459_vm14 = vcmp.eq.s32.totalorder %v4069_v20, 4  ;;  %vm1458_vm15 = vcmp.eq.s32.totalorder %v4075_v19, 4 }
 0x19b   :  { %v4286_v45 = vpop.permute.xlu1 %982  ;;  %v4288_v42 = vpop.permute.xlu0 %979 }
 0x19c   :  { %7550 = vst [vmem:[#allocation138_spill] sm:$0xff] %v4286_v45  ;;  %7551 = vst [vmem:[#allocation139_spill] sm:$0xff] %v4288_v42  ;;  %1568 = vperm.xlu1 %2964, %v1493_v37   ;;  %1565 = vperm.xlu0 %2963, %v1492_v61   ;;  %v1497_v45 = vsel %vm1445_vm0, 1, %v7311_v3  ;;  %v1496_v42 = vsel %vm1444_vm1, 1, %v7311_v3  ;;  %vm1461_vm0 = vcmp.eq.s32.totalorder %v4087_v16, 4  ;;  %vm1460_vm1 = vcmp.eq.s32.totalorder %v4093_v15, 4 }
 0x19f   :  { %v4294_v22 = vpop.permute.xlu1 %988  ;;  %v4296_v57 = vpop.permute.xlu0 %985 }
 0x1a0   :  { %7552 = vst [vmem:[#allocation140_spill] sm:$0xff] %v4294_v22  ;;  %7553 = vst [vmem:[#allocation141_spill] sm:$0xff] %v4296_v57  ;;  %1574 = vperm.xlu1 %2964, %v1495_v53   ;;  %1571 = vperm.xlu0 %2963, %v1494_v50   ;;  %v1499_v22 = vsel %vm1447_vm2, 1, %v7311_v3  ;;  %v1498_v57 = vsel %vm1446_vm3, 1, %v7311_v3  ;;  %vm1463_vm2 = vcmp.eq.s32.totalorder %v4105_v12, 4  ;;  %vm1462_vm3 = vcmp.eq.s32.totalorder %v4111_v11, 4 }
 0x1a3   :  { %v4302_v37 = vpop.permute.xlu1 %1191  ;;  %v4304_v61 = vpop.permute.xlu0 %1188 }
 0x1a4   :  { %7554 = vst [vmem:[#allocation142_spill] sm:$0xff] %v4302_v37  ;;  %7555 = vst [vmem:[#allocation143_spill] sm:$0xff] %v4304_v61  ;;  %1580 = vperm.xlu1 %2964, %v1497_v45   ;;  %1577 = vperm.xlu0 %2963, %v1496_v42   ;;  %v1501_v37 = vsel %vm1449_vm4, 1, %v7311_v3  ;;  %v1500_v61 = vsel %vm1448_vm5, 1, %v7311_v3  ;;  %vm1465_vm4 = vcmp.eq.s32.totalorder %v4123_v8, 4  ;;  %vm1464_vm5 = vcmp.eq.s32.totalorder %v4129_v7, 4 }
 0x1a7   :  { %v4310_v53 = vpop.permute.xlu1 %1197  ;;  %v4312_v50 = vpop.permute.xlu0 %1194 }
 0x1a8   :  { %7556 = vst [vmem:[#allocation144_spill] sm:$0xff] %v4310_v53  ;;  %7557 = vst [vmem:[#allocation145_spill] sm:$0xff] %v4312_v50  ;;  %1586 = vperm.xlu1 %2964, %v1499_v22   ;;  %1583 = vperm.xlu0 %2963, %v1498_v57   ;;  %v1503_v53 = vsel %vm1451_vm6, 1, %v7311_v3  ;;  %v1502_v50 = vsel %vm1450_vm7, 1, %v7311_v3  ;;  %vm1467_vm6 = vcmp.eq.s32.totalorder %v4141_v2, 4  ;;  %vm1466_vm7 = vcmp.eq.s32.totalorder %v4147_v0, 4 }
 0x1ab   :  { %v4318_v45 = vpop.permute.xlu1 %1203  ;;  %v4320_v42 = vpop.permute.xlu0 %1200 }
 0x1ac   :  { %7558 = vst [vmem:[#allocation146_spill] sm:$0xff] %v4318_v45  ;;  %7559 = vst [vmem:[#allocation147_spill] sm:$0xff] %v4320_v42  ;;  %1592 = vperm.xlu1 %2964, %v1501_v37   ;;  %1589 = vperm.xlu0 %2963, %v1500_v61   ;;  %v1505_v45 = vsel %vm1453_vm8, 1, %v7311_v3  ;;  %v1504_v42 = vsel %vm1452_vm9, 1, %v7311_v3  ;;  %vm1469_vm8 = vcmp.eq.s32.totalorder %v4159_v4, 4  ;;  %vm1468_vm9 = vcmp.eq.s32.totalorder %v4165_v1, 4 }
 0x1af   :  { %v4326_v22 = vpop.permute.xlu1 %1209  ;;  %v4328_v57 = vpop.permute.xlu0 %1206 }
 0x1b0   :  { %7560 = vst [vmem:[#allocation148_spill] sm:$0xff] %v4326_v22  ;;  %7561 = vst [vmem:[#allocation149_spill] sm:$0xff] %v4328_v57  ;;  %1598 = vperm.xlu1 %2964, %v1503_v53   ;;  %1595 = vperm.xlu0 %2963, %v1502_v50   ;;  %v1507_v22 = vsel %vm1455_vm10, 1, %v7311_v3  ;;  %v1506_v57 = vsel %vm1454_vm11, 1, %v7311_v3  ;;  %vm1471_vm10 = vcmp.eq.s32.totalorder %v4177_v38, 4  ;;  %vm1470_vm11 = vcmp.eq.s32.totalorder %v4183_v25, 4 }
 0x1b3   :  { %v4334_v37 = vpop.permute.xlu1 %1215  ;;  %v4336_v61 = vpop.permute.xlu0 %1212 }
 0x1b4   :  { %7562 = vst [vmem:[#allocation150_spill] sm:$0xff] %v4334_v37  ;;  %7563 = vst [vmem:[#allocation151_spill] sm:$0xff] %v4336_v61  ;;  %1604 = vperm.xlu1 %2964, %v1505_v45   ;;  %1601 = vperm.xlu0 %2963, %v1504_v42   ;;  %v1509_v37 = vsel %vm1457_vm12, 1, %v7311_v3  ;;  %v1508_v61 = vsel %vm1456_vm13, 1, %v7311_v3  ;;  %vm1473_vm12 = vcmp.eq.s32.totalorder %v4195_v14, 4  ;;  %vm1472_vm13 = vcmp.eq.s32.totalorder %v4201_v9, 4 }
 0x1b7   :  { %v4342_v53 = vpop.permute.xlu1 %1221  ;;  %v4344_v50 = vpop.permute.xlu0 %1218 }
 0x1b8   :  { %7564 = vst [vmem:[#allocation152_spill] sm:$0xff] %v4342_v53  ;;  %7565 = vst [vmem:[#allocation153_spill] sm:$0xff] %v4344_v50  ;;  %1610 = vperm.xlu1 %2964, %v1507_v22   ;;  %1607 = vperm.xlu0 %2963, %v1506_v57   ;;  %v1511_v53 = vsel %vm1459_vm14, 1, %v7311_v3  ;;  %v1510_v50 = vsel %vm1458_vm15, 1, %v7311_v3  ;;  %vm1475_vm14 = vcmp.eq.s32.totalorder %v4213_v54, 4  ;;  %vm1474_vm15 = vcmp.eq.s32.totalorder %v4219_v41, 4 }
 0x1bb   :  { %v4350_v45 = vpop.permute.xlu1 %1227  ;;  %v4352_v42 = vpop.permute.xlu0 %1224 }
 0x1bc   :  { %7566 = vst [vmem:[#allocation154_spill] sm:$0xff] %v4350_v45  ;;  %7567 = vst [vmem:[#allocation155_spill] sm:$0xff] %v4352_v42  ;;  %1616 = vperm.xlu1 %2964, %v1509_v37   ;;  %1613 = vperm.xlu0 %2963, %v1508_v61   ;;  %v1513_v45 = vsel %vm1461_vm0, 1, %v7311_v3  ;;  %v1512_v42 = vsel %vm1460_vm1, 1, %v7311_v3  ;;  %vm1770_vm0 = vcmp.eq.s32.totalorder %v3799_v34, 5  ;;  %vm1769_vm1 = vcmp.eq.s32.totalorder %v3805_v58, 5 }
 0x1bf   :  { %v4358_v22 = vpop.permute.xlu1 %1233  ;;  %v4360_v57 = vpop.permute.xlu0 %1230 }
 0x1c0   :  { %7568 = vst [vmem:[#allocation156_spill] sm:$0xff] %v4358_v22  ;;  %7569 = vst [vmem:[#allocation157_spill] sm:$0xff] %v4360_v57  ;;  %1622 = vperm.xlu1 %2964, %v1511_v53   ;;  %1619 = vperm.xlu0 %2963, %v1510_v50   ;;  %v1515_v22 = vsel %vm1463_vm2, 1, %v7311_v3  ;;  %v1514_v57 = vsel %vm1462_vm3, 1, %v7311_v3  ;;  %vm1772_vm2 = vcmp.eq.s32.totalorder %v3817_v29, 5  ;;  %vm1771_vm3 = vcmp.eq.s32.totalorder %v3823_v26, 5 }
 0x1c1   :  { %v1824_v34 = vsel %vm1772_vm2, 1, %v7311_v3  ;;  %v1823_v58 = vsel %vm1771_vm3, 1, %v7311_v3  ;;  %vm1788_vm2 = vcmp.eq.s32.totalorder %v3961_v44, 5  ;;  %vm1787_vm3 = vcmp.eq.s32.totalorder %v3967_v43, 5 }
 0x1c3   :  { %v4366_v37 = vpop.permute.xlu1 %1239  ;;  %v4368_v61 = vpop.permute.xlu0 %1236 }
 0x1c4   :  { %7570 = vst [vmem:[#allocation158_spill] sm:$0xff] %v4366_v37  ;;  %7571 = vst [vmem:[#allocation159_spill] sm:$0xff] %v4368_v61  ;;  %1628 = vperm.xlu1 %2964, %v1513_v45   ;;  %1625 = vperm.xlu0 %2963, %v1512_v42   ;;  %v1517_v37 = vsel %vm1465_vm4, 1, %v7311_v3  ;;  %v1516_v61 = vsel %vm1464_vm5, 1, %v7311_v3  ;;  %vm1774_vm4 = vcmp.eq.s32.totalorder %v3835_v21, 5  ;;  %vm1773_vm5 = vcmp.eq.s32.totalorder %v3841_v18, 5 }
 0x1c5   :  { %v1826_v26 = vsel %vm1774_vm4, 1, %v7311_v3  ;;  %v1825_v29 = vsel %vm1773_vm5, 1, %v7311_v3  ;;  %vm1790_vm4 = vcmp.eq.s32.totalorder %v3979_v40, 5  ;;  %vm1789_vm5 = vcmp.eq.s32.totalorder %v3985_v39, 5 }
 0x1c6   :  { %v1842_v43 = vsel %vm1790_vm4, 1, %v7311_v3  ;;  %v1841_v44 = vsel %vm1789_vm5, 1, %v7311_v3  ;;  %vm1806_vm4 = vcmp.eq.s32.totalorder %v4123_v8, 5  ;;  %vm1805_vm5 = vcmp.eq.s32.totalorder %v4129_v7, 5 }
 0x1c7   :  { %v4374_v53 = vpop.permute.xlu1 %1245  ;;  %v4376_v50 = vpop.permute.xlu0 %1242 }
 0x1c8   :  { %7572 = vst [vmem:[#allocation160_spill] sm:$0xff] %v4374_v53  ;;  %7573 = vst [vmem:[#allocation161_spill] sm:$0xff] %v4376_v50  ;;  %1634 = vperm.xlu1 %2964, %v1515_v22   ;;  %1631 = vperm.xlu0 %2963, %v1514_v57   ;;  %v1519_v53 = vsel %vm1467_vm6, 1, %v7311_v3  ;;  %v1518_v50 = vsel %vm1466_vm7, 1, %v7311_v3  ;;  %vm1776_vm6 = vcmp.eq.s32.totalorder %v3853_v13, 5  ;;  %vm1775_vm7 = vcmp.eq.s32.totalorder %v3859_v10, 5 }
 0x1c9   :  { %v1828_v18 = vsel %vm1776_vm6, 1, %v7311_v3  ;;  %v1827_v21 = vsel %vm1775_vm7, 1, %v7311_v3  ;;  %vm1792_vm6 = vcmp.eq.s32.totalorder %v3997_v36, 5  ;;  %vm1791_vm7 = vcmp.eq.s32.totalorder %v4003_v35, 5 }
 0x1ca   :  { %v1844_v39 = vsel %vm1792_vm6, 1, %v7311_v3  ;;  %v1843_v40 = vsel %vm1791_vm7, 1, %v7311_v3  ;;  %vm1808_vm6 = vcmp.eq.s32.totalorder %v4141_v2, 5  ;;  %vm1807_vm7 = vcmp.eq.s32.totalorder %v4147_v0, 5 }
 0x1cb   :  { %v4382_v45 = vpop.permute.xlu1 %1251  ;;  %v4384_v42 = vpop.permute.xlu0 %1248  ;;  %v1860_v7 = vsel %vm1808_vm6, 1, %v7311_v3  ;;  %v1859_v8 = vsel %vm1807_vm7, 1, %v7311_v3 }
 0x1cc   :  { %7574 = vst [vmem:[#allocation162_spill] sm:$0xff] %v4382_v45  ;;  %7575 = vst [vmem:[#allocation163_spill] sm:$0xff] %v4384_v42  ;;  %1640 = vperm.xlu1 %2964, %v1517_v37   ;;  %1637 = vperm.xlu0 %2963, %v1516_v61   ;;  %v1521_v45 = vsel %vm1469_vm8, 1, %v7311_v3  ;;  %v1520_v42 = vsel %vm1468_vm9, 1, %v7311_v3  ;;  %vm1778_vm8 = vcmp.eq.s32.totalorder %v3871_v5, 5  ;;  %vm1777_vm9 = vcmp.eq.s32.totalorder %v3877_v63, 5 }
 0x1cd   :  { %v1830_v10 = vsel %vm1778_vm8, 1, %v7311_v3  ;;  %v1829_v13 = vsel %vm1777_vm9, 1, %v7311_v3  ;;  %vm1794_vm8 = vcmp.eq.s32.totalorder %v4015_v32, 5  ;;  %vm1793_vm9 = vcmp.eq.s32.totalorder %v4021_v31, 5 }
 0x1ce   :  { %v1846_v35 = vsel %vm1794_vm8, 1, %v7311_v3  ;;  %v1845_v36 = vsel %vm1793_vm9, 1, %v7311_v3  ;;  %vm1810_vm8 = vcmp.eq.s32.totalorder %v4159_v4, 5  ;;  %vm1809_vm9 = vcmp.eq.s32.totalorder %v4165_v1, 5 }
 0x1cf   :  { %v4390_v22 = vpop.permute.xlu1 %1257  ;;  %v4392_v57 = vpop.permute.xlu0 %1254  ;;  %v1862_v0 = vsel %vm1810_vm8, 1, %v7311_v3  ;;  %v1861_v2 = vsel %vm1809_vm9, 1, %v7311_v3 }
 0x1d0   :  { %7576 = vst [vmem:[#allocation164_spill] sm:$0xff] %v4390_v22  ;;  %7577 = vst [vmem:[#allocation165_spill] sm:$0xff] %v4392_v57  ;;  %1646 = vperm.xlu1 %2964, %v1519_v53   ;;  %1643 = vperm.xlu0 %2963, %v1518_v50   ;;  %v1523_v22 = vsel %vm1471_vm10, 1, %v7311_v3  ;;  %v1522_v57 = vsel %vm1470_vm11, 1, %v7311_v3  ;;  %vm1780_vm10 = vcmp.eq.s32.totalorder %v3889_v60, 5  ;;  %vm1779_vm11 = vcmp.eq.s32.totalorder %v3895_v59, 5 }
 0x1d1   :  { %v1832_v63 = vsel %vm1780_vm10, 1, %v7311_v3  ;;  %v1831_v5 = vsel %vm1779_vm11, 1, %v7311_v3  ;;  %vm1796_vm10 = vcmp.eq.s32.totalorder %v4033_v28, 5  ;;  %vm1795_vm11 = vcmp.eq.s32.totalorder %v4039_v27, 5 }
 0x1d2   :  { %v1848_v31 = vsel %vm1796_vm10, 1, %v7311_v3  ;;  %v1847_v32 = vsel %vm1795_vm11, 1, %v7311_v3  ;;  %vm1812_vm10 = vcmp.eq.s32.totalorder %v4177_v38, 5  ;;  %vm1811_vm11 = vcmp.eq.s32.totalorder %v4183_v25, 5 }
 0x1d3   :  { %v4398_v37 = vpop.permute.xlu1 %1263  ;;  %v4400_v61 = vpop.permute.xlu0 %1260  ;;  %v1864_v1 = vsel %vm1812_vm10, 1, %v7311_v3  ;;  %v1863_v4 = vsel %vm1811_vm11, 1, %v7311_v3 }
 0x1d4   :  { %7578 = vst [vmem:[#allocation166_spill] sm:$0xff] %v4398_v37  ;;  %7579 = vst [vmem:[#allocation167_spill] sm:$0xff] %v4400_v61  ;;  %1652 = vperm.xlu1 %2964, %v1521_v45   ;;  %1649 = vperm.xlu0 %2963, %v1520_v42   ;;  %v1525_v37 = vsel %vm1473_vm12, 1, %v7311_v3  ;;  %v1524_v61 = vsel %vm1472_vm13, 1, %v7311_v3  ;;  %vm1782_vm12 = vcmp.eq.s32.totalorder %v3907_v56, 5  ;;  %vm1781_vm13 = vcmp.eq.s32.totalorder %v3913_v55, 5 }
 0x1d5   :  { %v1834_v59 = vsel %vm1782_vm12, 1, %v7311_v3  ;;  %v1833_v60 = vsel %vm1781_vm13, 1, %v7311_v3  ;;  %vm1798_vm12 = vcmp.eq.s32.totalorder %v4051_v24, 5  ;;  %vm1797_vm13 = vcmp.eq.s32.totalorder %v4057_v23, 5 }
 0x1d6   :  { %v1850_v27 = vsel %vm1798_vm12, 1, %v7311_v3  ;;  %v1849_v28 = vsel %vm1797_vm13, 1, %v7311_v3  ;;  %vm1814_vm12 = vcmp.eq.s32.totalorder %v4195_v14, 5  ;;  %vm1813_vm13 = vcmp.eq.s32.totalorder %v4201_v9, 5 }
 0x1d7   :  { %v4406_v53 = vpop.permute.xlu1 %1269  ;;  %v4408_v50 = vpop.permute.xlu0 %1266  ;;  %v1866_v25 = vsel %vm1814_vm12, 1, %v7311_v3  ;;  %v1865_v38 = vsel %vm1813_vm13, 1, %v7311_v3 }
 0x1d8   :  { %7580 = vst [vmem:[#allocation168_spill] sm:$0xff] %v4406_v53  ;;  %7581 = vst [vmem:[#allocation169_spill] sm:$0xff] %v4408_v50  ;;  %1658 = vperm.xlu1 %2964, %v1523_v22   ;;  %1655 = vperm.xlu0 %2963, %v1522_v57   ;;  %v1527_v53 = vsel %vm1475_vm14, 1, %v7311_v3  ;;  %v1526_v50 = vsel %vm1474_vm15, 1, %v7311_v3  ;;  %vm1784_vm14 = vcmp.eq.s32.totalorder %v3925_v52, 5  ;;  %vm1783_vm15 = vcmp.eq.s32.totalorder %v3931_v51, 5 }
 0x1d9   :  { %v1836_v55 = vsel %vm1784_vm14, 1, %v7311_v3  ;;  %v1835_v56 = vsel %vm1783_vm15, 1, %v7311_v3  ;;  %vm1800_vm14 = vcmp.eq.s32.totalorder %v4069_v20, 5  ;;  %vm1799_vm15 = vcmp.eq.s32.totalorder %v4075_v19, 5 }
 0x1da   :  { %v1852_v23 = vsel %vm1800_vm14, 1, %v7311_v3  ;;  %v1851_v24 = vsel %vm1799_vm15, 1, %v7311_v3  ;;  %vm1816_vm14 = vcmp.eq.s32.totalorder %v4213_v54, 5  ;;  %vm1815_vm15 = vcmp.eq.s32.totalorder %v4219_v41, 5  ;;  %v4621_v41 = vld [vmem:[%s7241_s0] sm:$0xff] }
 0x1db   :  { %v4414_v45 = vpop.permute.xlu1 %1275  ;;  %v4416_v42 = vpop.permute.xlu0 %1272  ;;  %v1868_v9 = vsel %vm1816_vm14, 1, %v7311_v3  ;;  %v1867_v14 = vsel %vm1815_vm15, 1, %v7311_v3 }
 0x1dc   :  { %7582 = vst [vmem:[#allocation170_spill] sm:$0xff] %v4414_v45  ;;  %7583 = vst [vmem:[#allocation171_spill] sm:$0xff] %v4416_v42  ;;  %1664 = vperm.xlu1 %2964, %v1525_v37   ;;  %1661 = vperm.xlu0 %2963, %v1524_v61   ;;  %v1822_v45 = vsel %vm1770_vm0, 1, %v7311_v3  ;;  %v1821_v42 = vsel %vm1769_vm1, 1, %v7311_v3  ;;  %vm1786_vm0 = vcmp.eq.s32.totalorder %v3943_v48, 5  ;;  %vm1785_vm1 = vcmp.eq.s32.totalorder %v3949_v47, 5 }
 0x1dd   :  { %v1838_v51 = vsel %vm1786_vm0, 1, %v7311_v3  ;;  %v1837_v52 = vsel %vm1785_vm1, 1, %v7311_v3  ;;  %v1840_v47 = vsel %vm1788_vm2, 1, %v7311_v3  ;;  %v1839_v48 = vsel %vm1787_vm3, 1, %v7311_v3 }
 0x1de   :  { %vm1802_vm0 = vcmp.eq.s32.totalorder %v4087_v16, 5  ;;  %vm1801_vm1 = vcmp.eq.s32.totalorder %v4093_v15, 5  ;;  %vm1804_vm2 = vcmp.eq.s32.totalorder %v4105_v12, 5  ;;  %vm1803_vm3 = vcmp.eq.s32.totalorder %v4111_v11, 5 }
 0x1df   :  { %v4422_v22 = vpop.permute.xlu1 %1281  ;;  %v4424_v57 = vpop.permute.xlu0 %1278  ;;  %v1854_v19 = vsel %vm1802_vm0, 1, %v7311_v3  ;;  %v1853_v20 = vsel %vm1801_vm1, 1, %v7311_v3  ;;  %v1856_v15 = vsel %vm1804_vm2, 1, %v7311_v3  ;;  %v1855_v16 = vsel %vm1803_vm3, 1, %v7311_v3 }
 0x1e0   :  { %7584 = vst [vmem:[#allocation172_spill] sm:$0xff] %v4422_v22  ;;  %7585 = vst [vmem:[#allocation173_spill] sm:$0xff] %v4424_v57  ;;  %1670 = vperm.xlu1 %2964, %v1527_v53   ;;  %1667 = vperm.xlu0 %2963, %v1526_v50   ;;  %v1858_v11 = vsel %vm1806_vm4, 1, %v7311_v3  ;;  %v1857_v12 = vsel %vm1805_vm5, 1, %v7311_v3  ;;  %vm2110_vm1 = vcmp.eq.s32.totalorder %v4621_v41, 6 }
 0x1e3   :  { %v4430_v37 = vpop.permute.xlu1 %1287  ;;  %v4432_v61 = vpop.permute.xlu0 %1284 }
 0x1e4   :  { %7586 = vst [vmem:[#allocation174_spill] sm:$0xff] %v4430_v37  ;;  %7587 = vst [vmem:[#allocation175_spill] sm:$0xff] %v4432_v61  ;;  %1873 = vperm.xlu1 %2964, %v1822_v45   ;;  %1870 = vperm.xlu0 %2963, %v1821_v42   ;;  %v7703_v37 = vld [vmem:[#allocation5_spill] sm:$0xff] }
 0x1e7   :  { %v4438_v53 = vpop.permute.xlu1 %1293  ;;  %v4440_v50 = vpop.permute.xlu0 %1290 }
 0x1e8   :  { %7588 = vst [vmem:[#allocation176_spill] sm:$0xff] %v4438_v53  ;;  %7589 = vst [vmem:[#allocation177_spill] sm:$0xff] %v4440_v50  ;;  %1879 = vperm.xlu1 %2964, %v1824_v34   ;;  %1876 = vperm.xlu0 %2963, %v1823_v58   ;;  %v5011_v50 = vld [vmem:[%s7241_s0 + $0x168] sm:$0xff]  ;;  %v5017_v53 = vld [vmem:[%s7241_s0 + $0x160] sm:$0xff] }
 0x1e9   :  { %7694 = vst [vmem:[#allocation282_spill] sm:$0xff] %v5011_v50  ;;  %7695 = vst [vmem:[#allocation283_spill] sm:$0xff] %v5017_v53 }
 0x1eb   :  { %v4446_v45 = vpop.permute.xlu1 %1299  ;;  %v4448_v42 = vpop.permute.xlu0 %1296 }
 0x1ec   :  { %7590 = vst [vmem:[#allocation178_spill] sm:$0xff] %v4446_v45  ;;  %7591 = vst [vmem:[#allocation179_spill] sm:$0xff] %v4448_v42  ;;  %1885 = vperm.xlu1 %2964, %v1826_v26   ;;  %1882 = vperm.xlu0 %2963, %v1825_v29   ;;  %v4993_v42 = vld [vmem:[%s7241_s0 + $0x158] sm:$0xff]  ;;  %v4999_v45 = vld [vmem:[%s7241_s0 + $0x150] sm:$0xff] }
 0x1ed   :  { %7690 = vst [vmem:[#allocation278_spill] sm:$0xff] %v4993_v42  ;;  %7691 = vst [vmem:[#allocation279_spill] sm:$0xff] %v4999_v45 }
 0x1ef   :  { %v4454_v34 = vpop.permute.xlu1 %1305  ;;  %v4456_v58 = vpop.permute.xlu0 %1302 }
 0x1f0   :  { %7592 = vst [vmem:[#allocation180_spill] sm:$0xff] %v4454_v34  ;;  %7593 = vst [vmem:[#allocation181_spill] sm:$0xff] %v4456_v58  ;;  %1891 = vperm.xlu1 %2964, %v1828_v18   ;;  %1888 = vperm.xlu0 %2963, %v1827_v21   ;;  %v4975_v58 = vld [vmem:[%s7241_s0 + $0x148] sm:$0xff]  ;;  %v4981_v34 = vld [vmem:[%s7241_s0 + $0x140] sm:$0xff] }
 0x1f1   :  { %7686 = vst [vmem:[#allocation274_spill] sm:$0xff] %v4975_v58  ;;  %7687 = vst [vmem:[#allocation275_spill] sm:$0xff] %v4981_v34 }
 0x1f3   :  { %v4462_v26 = vpop.permute.xlu1 %1311  ;;  %v4464_v29 = vpop.permute.xlu0 %1308 }
 0x1f4   :  { %7594 = vst [vmem:[#allocation182_spill] sm:$0xff] %v4462_v26  ;;  %7595 = vst [vmem:[#allocation183_spill] sm:$0xff] %v4464_v29  ;;  %1897 = vperm.xlu1 %2964, %v1830_v10   ;;  %1894 = vperm.xlu0 %2963, %v1829_v13   ;;  %v4957_v29 = vld [vmem:[%s7241_s0 + $0x138] sm:$0xff]  ;;  %v4963_v26 = vld [vmem:[%s7241_s0 + $0x130] sm:$0xff] }
 0x1f5   :  { %7682 = vst [vmem:[#allocation270_spill] sm:$0xff] %v4957_v29  ;;  %7683 = vst [vmem:[#allocation271_spill] sm:$0xff] %v4963_v26 }
 0x1f7   :  { %v4470_v18 = vpop.permute.xlu1 %1317  ;;  %v4472_v21 = vpop.permute.xlu0 %1314 }
 0x1f8   :  { %7596 = vst [vmem:[#allocation184_spill] sm:$0xff] %v4470_v18  ;;  %7597 = vst [vmem:[#allocation185_spill] sm:$0xff] %v4472_v21  ;;  %1903 = vperm.xlu1 %2964, %v1832_v63   ;;  %1900 = vperm.xlu0 %2963, %v1831_v5   ;;  %v4939_v21 = vld [vmem:[%s7241_s0 + $0x128] sm:$0xff]  ;;  %v4945_v18 = vld [vmem:[%s7241_s0 + $0x120] sm:$0xff] }
 0x1f9   :  { %7678 = vst [vmem:[#allocation266_spill] sm:$0xff] %v4939_v21  ;;  %7679 = vst [vmem:[#allocation267_spill] sm:$0xff] %v4945_v18 }
 0x1fb   :  { %v4478_v10 = vpop.permute.xlu1 %1323  ;;  %v4480_v13 = vpop.permute.xlu0 %1320 }
 0x1fc   :  { %7598 = vst [vmem:[#allocation186_spill] sm:$0xff] %v4478_v10  ;;  %7599 = vst [vmem:[#allocation187_spill] sm:$0xff] %v4480_v13  ;;  %1909 = vperm.xlu1 %2964, %v1834_v59   ;;  %1906 = vperm.xlu0 %2963, %v1833_v60   ;;  %v4921_v13 = vld [vmem:[%s7241_s0 + $0x118] sm:$0xff]  ;;  %v4927_v10 = vld [vmem:[%s7241_s0 + $0x110] sm:$0xff] }
 0x1fd   :  { %7674 = vst [vmem:[#allocation262_spill] sm:$0xff] %v4921_v13  ;;  %7675 = vst [vmem:[#allocation263_spill] sm:$0xff] %v4927_v10 }
 0x1ff   :  { %v4486_v63 = vpop.permute.xlu1 %1329  ;;  %v4488_v5 = vpop.permute.xlu0 %1326 }
 0x200   :  { %7600 = vst [vmem:[#allocation188_spill] sm:$0xff] %v4486_v63  ;;  %7601 = vst [vmem:[#allocation189_spill] sm:$0xff] %v4488_v5  ;;  %1915 = vperm.xlu1 %2964, %v1836_v55   ;;  %1912 = vperm.xlu0 %2963, %v1835_v56   ;;  %v4903_v5 = vld [vmem:[%s7241_s0 + $0x108] sm:$0xff]  ;;  %v4909_v63 = vld [vmem:[%s7241_s0 + $0x100] sm:$0xff] }
 0x201   :  { %7670 = vst [vmem:[#allocation258_spill] sm:$0xff] %v4903_v5  ;;  %7671 = vst [vmem:[#allocation259_spill] sm:$0xff] %v4909_v63 }
 0x203   :  { %v4494_v59 = vpop.permute.xlu1 %1532  ;;  %v4496_v60 = vpop.permute.xlu0 %1529 }
 0x204   :  { %7602 = vst [vmem:[#allocation190_spill] sm:$0xff] %v4494_v59  ;;  %7603 = vst [vmem:[#allocation191_spill] sm:$0xff] %v4496_v60  ;;  %1921 = vperm.xlu1 %2964, %v1838_v51   ;;  %1918 = vperm.xlu0 %2963, %v1837_v52   ;;  %v4885_v60 = vld [vmem:[%s7241_s0 + $0xf8] sm:$0xff]  ;;  %v4891_v59 = vld [vmem:[%s7241_s0 + $0xf0] sm:$0xff] }
 0x205   :  { %7666 = vst [vmem:[#allocation254_spill] sm:$0xff] %v4885_v60  ;;  %7667 = vst [vmem:[#allocation255_spill] sm:$0xff] %v4891_v59 }
 0x207   :  { %v4502_v55 = vpop.permute.xlu1 %1538  ;;  %v4504_v56 = vpop.permute.xlu0 %1535 }
 0x208   :  { %7604 = vst [vmem:[#allocation192_spill] sm:$0xff] %v4502_v55  ;;  %7605 = vst [vmem:[#allocation193_spill] sm:$0xff] %v4504_v56  ;;  %1927 = vperm.xlu1 %2964, %v1840_v47   ;;  %1924 = vperm.xlu0 %2963, %v1839_v48   ;;  %v4867_v56 = vld [vmem:[%s7241_s0 + $0xe8] sm:$0xff]  ;;  %v4873_v55 = vld [vmem:[%s7241_s0 + $0xe0] sm:$0xff] }
 0x209   :  { %7662 = vst [vmem:[#allocation250_spill] sm:$0xff] %v4867_v56  ;;  %7663 = vst [vmem:[#allocation251_spill] sm:$0xff] %v4873_v55 }
 0x20b   :  { %v4510_v51 = vpop.permute.xlu1 %1544  ;;  %v4512_v52 = vpop.permute.xlu0 %1541 }
 0x20c   :  { %7606 = vst [vmem:[#allocation194_spill] sm:$0xff] %v4510_v51  ;;  %7607 = vst [vmem:[#allocation195_spill] sm:$0xff] %v4512_v52  ;;  %1933 = vperm.xlu1 %2964, %v1842_v43   ;;  %1930 = vperm.xlu0 %2963, %v1841_v44   ;;  %v4849_v52 = vld [vmem:[%s7241_s0 + $0xd8] sm:$0xff]  ;;  %v4855_v51 = vld [vmem:[%s7241_s0 + $0xd0] sm:$0xff] }
 0x20d   :  { %7658 = vst [vmem:[#allocation246_spill] sm:$0xff] %v4849_v52  ;;  %7659 = vst [vmem:[#allocation247_spill] sm:$0xff] %v4855_v51 }
 0x20f   :  { %v4518_v47 = vpop.permute.xlu1 %1550  ;;  %v4520_v48 = vpop.permute.xlu0 %1547 }
 0x210   :  { %7608 = vst [vmem:[#allocation196_spill] sm:$0xff] %v4518_v47  ;;  %7609 = vst [vmem:[#allocation197_spill] sm:$0xff] %v4520_v48  ;;  %1939 = vperm.xlu1 %2964, %v1844_v39   ;;  %1936 = vperm.xlu0 %2963, %v1843_v40   ;;  %v4831_v48 = vld [vmem:[%s7241_s0 + $0xc8] sm:$0xff]  ;;  %v4837_v47 = vld [vmem:[%s7241_s0 + $0xc0] sm:$0xff] }
 0x213   :  { %v4526_v43 = vpop.permute.xlu1 %1556  ;;  %v4528_v44 = vpop.permute.xlu0 %1553 }
 0x214   :  { %7610 = vst [vmem:[#allocation198_spill] sm:$0xff] %v4526_v43  ;;  %7611 = vst [vmem:[#allocation199_spill] sm:$0xff] %v4528_v44  ;;  %1945 = vperm.xlu1 %2964, %v1846_v35   ;;  %1942 = vperm.xlu0 %2963, %v1845_v36   ;;  %v4813_v44 = vld [vmem:[%s7241_s0 + $0xb8] sm:$0xff]  ;;  %v4819_v43 = vld [vmem:[%s7241_s0 + $0xb0] sm:$0xff] }
 0x217   :  { %v4534_v39 = vpop.permute.xlu1 %1562  ;;  %v4536_v40 = vpop.permute.xlu0 %1559 }
 0x218   :  { %7612 = vst [vmem:[#allocation200_spill] sm:$0xff] %v4534_v39  ;;  %7613 = vst [vmem:[#allocation201_spill] sm:$0xff] %v4536_v40  ;;  %1951 = vperm.xlu1 %2964, %v1848_v31   ;;  %1948 = vperm.xlu0 %2963, %v1847_v32   ;;  %v4795_v40 = vld [vmem:[%s7241_s0 + $0xa8] sm:$0xff]  ;;  %v4801_v39 = vld [vmem:[%s7241_s0 + $0xa0] sm:$0xff] }
 0x21b   :  { %v4542_v35 = vpop.permute.xlu1 %1568  ;;  %v4544_v36 = vpop.permute.xlu0 %1565 }
 0x21c   :  { %7614 = vst [vmem:[#allocation202_spill] sm:$0xff] %v4542_v35  ;;  %7615 = vst [vmem:[#allocation203_spill] sm:$0xff] %v4544_v36  ;;  %1957 = vperm.xlu1 %2964, %v1850_v27   ;;  %1954 = vperm.xlu0 %2963, %v1849_v28   ;;  %v4777_v36 = vld [vmem:[%s7241_s0 + $0x98] sm:$0xff]  ;;  %v4783_v35 = vld [vmem:[%s7241_s0 + $0x90] sm:$0xff] }
 0x21f   :  { %v4550_v31 = vpop.permute.xlu1 %1574  ;;  %v4552_v32 = vpop.permute.xlu0 %1571 }
 0x220   :  { %7616 = vst [vmem:[#allocation204_spill] sm:$0xff] %v4550_v31  ;;  %7617 = vst [vmem:[#allocation205_spill] sm:$0xff] %v4552_v32  ;;  %1963 = vperm.xlu1 %2964, %v1852_v23   ;;  %1960 = vperm.xlu0 %2963, %v1851_v24   ;;  %v4759_v32 = vld [vmem:[%s7241_s0 + $0x88] sm:$0xff]  ;;  %v4765_v31 = vld [vmem:[%s7241_s0 + $0x80] sm:$0xff] }
 0x223   :  { %v4558_v27 = vpop.permute.xlu1 %1580  ;;  %v4560_v28 = vpop.permute.xlu0 %1577 }
 0x224   :  { %7618 = vst [vmem:[#allocation206_spill] sm:$0xff] %v4558_v27  ;;  %7619 = vst [vmem:[#allocation207_spill] sm:$0xff] %v4560_v28  ;;  %1969 = vperm.xlu1 %2964, %v1854_v19   ;;  %1966 = vperm.xlu0 %2963, %v1853_v20   ;;  %v4741_v28 = vld [vmem:[%s7241_s0 + $0x78] sm:$0xff]  ;;  %v4747_v27 = vld [vmem:[%s7241_s0 + $0x70] sm:$0xff] }
 0x225   :  { %vm2125_vm14 = vcmp.eq.s32.totalorder %v4741_v28, 6  ;;  %vm2124_vm15 = vcmp.eq.s32.totalorder %v4747_v27, 6 }
 0x227   :  { %v4566_v23 = vpop.permute.xlu1 %1586  ;;  %v4568_v24 = vpop.permute.xlu0 %1583 }
 0x228   :  { %7620 = vst [vmem:[#allocation208_spill] sm:$0xff] %v4566_v23  ;;  %7621 = vst [vmem:[#allocation209_spill] sm:$0xff] %v4568_v24  ;;  %1975 = vperm.xlu1 %2964, %v1856_v15   ;;  %1972 = vperm.xlu0 %2963, %v1855_v16   ;;  %v4723_v24 = vld [vmem:[%s7241_s0 + $0x68] sm:$0xff]  ;;  %v4729_v23 = vld [vmem:[%s7241_s0 + $0x60] sm:$0xff] }
 0x229   :  { %vm2123_vm12 = vcmp.eq.s32.totalorder %v4723_v24, 6  ;;  %vm2122_vm13 = vcmp.eq.s32.totalorder %v4729_v23, 6 }
 0x22b   :  { %v4574_v19 = vpop.permute.xlu1 %1592  ;;  %v4576_v20 = vpop.permute.xlu0 %1589 }
 0x22c   :  { %7622 = vst [vmem:[#allocation210_spill] sm:$0xff] %v4574_v19  ;;  %7623 = vst [vmem:[#allocation211_spill] sm:$0xff] %v4576_v20  ;;  %1981 = vperm.xlu1 %2964, %v1858_v11   ;;  %1978 = vperm.xlu0 %2963, %v1857_v12   ;;  %v4705_v20 = vld [vmem:[%s7241_s0 + $0x58] sm:$0xff]  ;;  %v4711_v19 = vld [vmem:[%s7241_s0 + $0x50] sm:$0xff] }
 0x22d   :  { %vm2121_vm10 = vcmp.eq.s32.totalorder %v4705_v20, 6  ;;  %vm2120_vm11 = vcmp.eq.s32.totalorder %v4711_v19, 6 }
 0x22f   :  { %v4582_v15 = vpop.permute.xlu1 %1598  ;;  %v4584_v16 = vpop.permute.xlu0 %1595 }
 0x230   :  { %7624 = vst [vmem:[#allocation212_spill] sm:$0xff] %v4582_v15  ;;  %7625 = vst [vmem:[#allocation213_spill] sm:$0xff] %v4584_v16  ;;  %1987 = vperm.xlu1 %2964, %v1860_v7   ;;  %1984 = vperm.xlu0 %2963, %v1859_v8   ;;  %v4687_v16 = vld [vmem:[%s7241_s0 + $0x48] sm:$0xff]  ;;  %v4693_v15 = vld [vmem:[%s7241_s0 + $0x40] sm:$0xff] }
 0x231   :  { %vm2119_vm8 = vcmp.eq.s32.totalorder %v4687_v16, 6  ;;  %vm2118_vm9 = vcmp.eq.s32.totalorder %v4693_v15, 6 }
 0x233   :  { %v4590_v11 = vpop.permute.xlu1 %1604  ;;  %v4592_v12 = vpop.permute.xlu0 %1601 }
 0x234   :  { %7626 = vst [vmem:[#allocation214_spill] sm:$0xff] %v4590_v11  ;;  %7627 = vst [vmem:[#allocation215_spill] sm:$0xff] %v4592_v12  ;;  %1993 = vperm.xlu1 %2964, %v1862_v0   ;;  %1990 = vperm.xlu0 %2963, %v1861_v2   ;;  %v4669_v12 = vld [vmem:[%s7241_s0 + $0x38] sm:$0xff]  ;;  %v4675_v11 = vld [vmem:[%s7241_s0 + $0x30] sm:$0xff] }
 0x235   :  { %vm2117_vm6 = vcmp.eq.s32.totalorder %v4669_v12, 6  ;;  %vm2116_vm7 = vcmp.eq.s32.totalorder %v4675_v11, 6 }
 0x237   :  { %v4598_v7 = vpop.permute.xlu1 %1610  ;;  %v4600_v8 = vpop.permute.xlu0 %1607 }
 0x238   :  { %7628 = vst [vmem:[#allocation216_spill] sm:$0xff] %v4598_v7  ;;  %7629 = vst [vmem:[#allocation217_spill] sm:$0xff] %v4600_v8  ;;  %1999 = vperm.xlu1 %2964, %v1864_v1   ;;  %1996 = vperm.xlu0 %2963, %v1863_v4   ;;  %v4615_v1 = vld [vmem:[%s7241_s0 + $0x8] sm:$0xff]  ;;  %v4657_v7 = vld [vmem:[%s7241_s0 + $0x20] sm:$0xff] }
 0x239   :  { %vm2111_vm0 = vcmp.eq.s32.totalorder %v4615_v1, 6  ;;  %v4651_v8 = vld [vmem:[%s7241_s0 + $0x28] sm:$0xff]  ;;  %vm2114_vm5 = vcmp.eq.s32.totalorder %v4657_v7, 6 }
 0x23a   :  { %vm2115_vm4 = vcmp.eq.s32.totalorder %v4651_v8, 6 }
 0x23b   :  { %v4606_v0 = vpop.permute.xlu1 %1616  ;;  %v4608_v2 = vpop.permute.xlu0 %1613 }
 0x23c   :  { %7630 = vst [vmem:[#allocation218_spill] sm:$0xff] %v4606_v0  ;;  %7631 = vst [vmem:[#allocation219_spill] sm:$0xff] %v4608_v2  ;;  %2005 = vperm.xlu1 %2964, %v1866_v25   ;;  %2002 = vperm.xlu0 %2963, %v1865_v38   ;;  %v2163_v25 = vsel %vm2111_vm0, 1, %v7311_v3  ;;  %v2162_v38 = vsel %vm2110_vm1, 1, %v7311_v3  ;;  %v4633_v2 = vld [vmem:[%s7241_s0 + $0x18] sm:$0xff]  ;;  %v4639_v0 = vld [vmem:[%s7241_s0 + $0x10] sm:$0xff] }
 0x23d   :  { %vm2113_vm2 = vcmp.eq.s32.totalorder %v4633_v2, 6  ;;  %vm2112_vm3 = vcmp.eq.s32.totalorder %v4639_v0, 6  ;;  %vm2127_vm0 = vcmp.eq.s32.totalorder %v4759_v32, 6  ;;  %vm2126_vm1 = vcmp.eq.s32.totalorder %v4765_v31, 6 }
 0x23f   :  { %v4624_v54 = vpop.permute.xlu1 %1622  ;;  %v4626_v4 = vpop.permute.xlu0 %1619 }
 0x240   :  { %7632 = vst [vmem:[#allocation220_spill] sm:$0xff] %v4624_v54  ;;  %7633 = vst [vmem:[#allocation221_spill] sm:$0xff] %v4626_v4  ;;  %2011 = vperm.xlu1 %2964, %v1868_v9   ;;  %2008 = vperm.xlu0 %2963, %v1867_v14   ;;  %v2165_v4 = vsel %vm2113_vm2, 1, %v7311_v3  ;;  %v2164_v54 = vsel %vm2112_vm3, 1, %v7311_v3  ;;  %vm2129_vm2 = vcmp.eq.s32.totalorder %v4777_v36, 6  ;;  %vm2128_vm3 = vcmp.eq.s32.totalorder %v4783_v35, 6 }
 0x243   :  { %v4642_v9 = vpop.permute.xlu1 %1628  ;;  %v4644_v14 = vpop.permute.xlu0 %1625 }
 0x244   :  { %7634 = vst [vmem:[#allocation222_spill] sm:$0xff] %v4642_v9  ;;  %7635 = vst [vmem:[#allocation223_spill] sm:$0xff] %v4644_v14  ;;  %2214 = vperm.xlu1 %2964, %v2163_v25   ;;  %2211 = vperm.xlu0 %2963, %v2162_v38   ;;  %v2167_v14 = vsel %vm2115_vm4, 1, %v7311_v3  ;;  %v2166_v9 = vsel %vm2114_vm5, 1, %v7311_v3  ;;  %vm2131_vm4 = vcmp.eq.s32.totalorder %v4795_v40, 6  ;;  %vm2130_vm5 = vcmp.eq.s32.totalorder %v4801_v39, 6 }
 0x247   :  { %v4660_v25 = vpop.permute.xlu1 %1634  ;;  %v4662_v38 = vpop.permute.xlu0 %1631 }
 0x248   :  { %7636 = vst [vmem:[#allocation224_spill] sm:$0xff] %v4660_v25  ;;  %7637 = vst [vmem:[#allocation225_spill] sm:$0xff] %v4662_v38  ;;  %2220 = vperm.xlu1 %2964, %v2165_v4   ;;  %2217 = vperm.xlu0 %2963, %v2164_v54   ;;  %v2169_v38 = vsel %vm2117_vm6, 1, %v7311_v3  ;;  %v2168_v25 = vsel %vm2116_vm7, 1, %v7311_v3  ;;  %vm2133_vm6 = vcmp.eq.s32.totalorder %v4813_v44, 6  ;;  %vm2132_vm7 = vcmp.eq.s32.totalorder %v4819_v43, 6 }
 0x24b   :  { %v4678_v4 = vpop.permute.xlu1 %1640  ;;  %v4680_v54 = vpop.permute.xlu0 %1637 }
 0x24c   :  { %7638 = vst [vmem:[#allocation226_spill] sm:$0xff] %v4678_v4  ;;  %7639 = vst [vmem:[#allocation227_spill] sm:$0xff] %v4680_v54  ;;  %2226 = vperm.xlu1 %2964, %v2167_v14   ;;  %2223 = vperm.xlu0 %2963, %v2166_v9   ;;  %v2171_v54 = vsel %vm2119_vm8, 1, %v7311_v3  ;;  %v2170_v4 = vsel %vm2118_vm9, 1, %v7311_v3  ;;  %vm2135_vm8 = vcmp.eq.s32.totalorder %v4831_v48, 6  ;;  %vm2134_vm9 = vcmp.eq.s32.totalorder %v4837_v47, 6 }
 0x24f   :  { %v4696_v14 = vpop.permute.xlu1 %1646  ;;  %v4698_v9 = vpop.permute.xlu0 %1643 }
 0x250   :  { %7640 = vst [vmem:[#allocation228_spill] sm:$0xff] %v4696_v14  ;;  %7641 = vst [vmem:[#allocation229_spill] sm:$0xff] %v4698_v9  ;;  %2232 = vperm.xlu1 %2964, %v2169_v38   ;;  %2229 = vperm.xlu0 %2963, %v2168_v25   ;;  %v2173_v9 = vsel %vm2121_vm10, 1, %v7311_v3  ;;  %v2172_v14 = vsel %vm2120_vm11, 1, %v7311_v3  ;;  %vm2137_vm10 = vcmp.eq.s32.totalorder %v4849_v52, 6  ;;  %vm2136_vm11 = vcmp.eq.s32.totalorder %v4855_v51, 6 }
 0x251   :  { %v7745_v51 = vld [vmem:[#allocation36_spill] sm:$0xff]  ;;  %v7746_v52 = vld [vmem:[#allocation37_spill] sm:$0xff] }
 0x253   :  { %v4714_v38 = vpop.permute.xlu1 %1652  ;;  %v4716_v25 = vpop.permute.xlu0 %1649 }
 0x254   :  { %7642 = vst [vmem:[#allocation230_spill] sm:$0xff] %v4714_v38  ;;  %7643 = vst [vmem:[#allocation231_spill] sm:$0xff] %v4716_v25  ;;  %2238 = vperm.xlu1 %2964, %v2171_v54   ;;  %2235 = vperm.xlu0 %2963, %v2170_v4   ;;  %v2175_v25 = vsel %vm2123_vm12, 1, %v7311_v3  ;;  %v2174_v38 = vsel %vm2122_vm13, 1, %v7311_v3  ;;  %vm2139_vm12 = vcmp.eq.s32.totalorder %v4867_v56, 6  ;;  %vm2138_vm13 = vcmp.eq.s32.totalorder %v4873_v55, 6 }
 0x255   :  { %v7743_v55 = vld [vmem:[#allocation34_spill] sm:$0xff]  ;;  %v7744_v56 = vld [vmem:[#allocation35_spill] sm:$0xff] }
 0x257   :  { %v4732_v54 = vpop.permute.xlu1 %1658  ;;  %v4734_v4 = vpop.permute.xlu0 %1655 }
 0x258   :  { %7644 = vst [vmem:[#allocation232_spill] sm:$0xff] %v4732_v54  ;;  %7645 = vst [vmem:[#allocation233_spill] sm:$0xff] %v4734_v4  ;;  %2244 = vperm.xlu1 %2964, %v2173_v9   ;;  %2241 = vperm.xlu0 %2963, %v2172_v14   ;;  %v2177_v4 = vsel %vm2125_vm14, 1, %v7311_v3  ;;  %v2176_v54 = vsel %vm2124_vm15, 1, %v7311_v3  ;;  %vm2141_vm14 = vcmp.eq.s32.totalorder %v4885_v60, 6  ;;  %vm2140_vm15 = vcmp.eq.s32.totalorder %v4891_v59, 6 }
 0x259   :  { %v7736_v59 = vld [vmem:[#allocation30_spill] sm:$0xff]  ;;  %v7737_v60 = vld [vmem:[#allocation31_spill] sm:$0xff] }
 0x25b   :  { %v4750_v9 = vpop.permute.xlu1 %1664  ;;  %v4752_v14 = vpop.permute.xlu0 %1661 }
 0x25c   :  { %7646 = vst [vmem:[#allocation234_spill] sm:$0xff] %v4750_v9  ;;  %7647 = vst [vmem:[#allocation235_spill] sm:$0xff] %v4752_v14  ;;  %2250 = vperm.xlu1 %2964, %v2175_v25   ;;  %2247 = vperm.xlu0 %2963, %v2174_v38   ;;  %v2179_v14 = vsel %vm2127_vm0, 1, %v7311_v3  ;;  %v2178_v9 = vsel %vm2126_vm1, 1, %v7311_v3  ;;  %vm2143_vm0 = vcmp.eq.s32.totalorder %v4903_v5, 6  ;;  %vm2142_vm1 = vcmp.eq.s32.totalorder %v4909_v63, 6 }
 0x25d   :  { %v7734_v63 = vld [vmem:[#allocation28_spill] sm:$0xff]  ;;  %v7735_v5 = vld [vmem:[#allocation29_spill] sm:$0xff] }
 0x25f   :  { %v4768_v25 = vpop.permute.xlu1 %1670  ;;  %v4770_v38 = vpop.permute.xlu0 %1667 }
 0x260   :  { %7648 = vst [vmem:[#allocation236_spill] sm:$0xff] %v4768_v25  ;;  %7649 = vst [vmem:[#allocation237_spill] sm:$0xff] %v4770_v38  ;;  %2256 = vperm.xlu1 %2964, %v2177_v4   ;;  %2253 = vperm.xlu0 %2963, %v2176_v54   ;;  %v2181_v38 = vsel %vm2129_vm2, 1, %v7311_v3  ;;  %v2180_v25 = vsel %vm2128_vm3, 1, %v7311_v3  ;;  %vm2145_vm2 = vcmp.eq.s32.totalorder %v4921_v13, 6  ;;  %vm2144_vm3 = vcmp.eq.s32.totalorder %v4927_v10, 6 }
 0x261   :  { %v7732_v10 = vld [vmem:[#allocation26_spill] sm:$0xff]  ;;  %v7733_v13 = vld [vmem:[#allocation27_spill] sm:$0xff] }
 0x263   :  { %v4786_v4 = vpop.permute.xlu1 %1873  ;;  %v4788_v54 = vpop.permute.xlu0 %1870 }
 0x264   :  { %7650 = vst [vmem:[#allocation238_spill] sm:$0xff] %v4786_v4  ;;  %7651 = vst [vmem:[#allocation239_spill] sm:$0xff] %v4788_v54  ;;  %2262 = vperm.xlu1 %2964, %v2179_v14   ;;  %2259 = vperm.xlu0 %2963, %v2178_v9   ;;  %v2183_v54 = vsel %vm2131_vm4, 1, %v7311_v3  ;;  %v2182_v4 = vsel %vm2130_vm5, 1, %v7311_v3  ;;  %vm2147_vm4 = vcmp.eq.s32.totalorder %v4939_v21, 6  ;;  %vm2146_vm5 = vcmp.eq.s32.totalorder %v4945_v18, 6 }
 0x265   :  { %v7726_v18 = vld [vmem:[#allocation22_spill] sm:$0xff]  ;;  %v7727_v21 = vld [vmem:[#allocation23_spill] sm:$0xff] }
 0x267   :  { %v4804_v14 = vpop.permute.xlu1 %1879  ;;  %v4806_v9 = vpop.permute.xlu0 %1876 }
 0x268   :  { %7652 = vst [vmem:[#allocation240_spill] sm:$0xff] %v4804_v14  ;;  %7653 = vst [vmem:[#allocation241_spill] sm:$0xff] %v4806_v9  ;;  %2268 = vperm.xlu1 %2964, %v2181_v38   ;;  %2265 = vperm.xlu0 %2963, %v2180_v25   ;;  %v2185_v9 = vsel %vm2133_vm6, 1, %v7311_v3  ;;  %v2184_v14 = vsel %vm2132_vm7, 1, %v7311_v3  ;;  %vm2149_vm6 = vcmp.eq.s32.totalorder %v4957_v29, 6  ;;  %vm2148_vm7 = vcmp.eq.s32.totalorder %v4963_v26, 6 }
 0x269   :  { %v7720_v26 = vld [vmem:[#allocation18_spill] sm:$0xff]  ;;  %v7721_v29 = vld [vmem:[#allocation19_spill] sm:$0xff] }
 0x26b   :  { %v4822_v38 = vpop.permute.xlu1 %1885  ;;  %v4824_v25 = vpop.permute.xlu0 %1882 }
 0x26c   :  { %7654 = vst [vmem:[#allocation242_spill] sm:$0xff] %v4822_v38  ;;  %7655 = vst [vmem:[#allocation243_spill] sm:$0xff] %v4824_v25  ;;  %2274 = vperm.xlu1 %2964, %v2183_v54   ;;  %2271 = vperm.xlu0 %2963, %v2182_v4   ;;  %v2187_v25 = vsel %vm2135_vm8, 1, %v7311_v3  ;;  %v2186_v38 = vsel %vm2134_vm9, 1, %v7311_v3  ;;  %vm2151_vm8 = vcmp.eq.s32.totalorder %v4975_v58, 6  ;;  %vm2150_vm9 = vcmp.eq.s32.totalorder %v4981_v34, 6 }
 0x26d   :  { %v7718_v34 = vld [vmem:[#allocation16_spill] sm:$0xff]  ;;  %v7719_v58 = vld [vmem:[#allocation17_spill] sm:$0xff] }
 0x26f   :  { %v4840_v54 = vpop.permute.xlu1 %1891  ;;  %v4842_v4 = vpop.permute.xlu0 %1888 }
 0x270   :  { %7656 = vst [vmem:[#allocation244_spill] sm:$0xff] %v4840_v54  ;;  %7657 = vst [vmem:[#allocation245_spill] sm:$0xff] %v4842_v4  ;;  %2280 = vperm.xlu1 %2964, %v2185_v9   ;;  %2277 = vperm.xlu0 %2963, %v2184_v14   ;;  %v2189_v4 = vsel %vm2137_vm10, 1, %v7311_v3  ;;  %v2188_v54 = vsel %vm2136_vm11, 1, %v7311_v3  ;;  %vm2153_vm10 = vcmp.eq.s32.totalorder %v4993_v42, 6  ;;  %vm2152_vm11 = vcmp.eq.s32.totalorder %v4999_v45, 6 }
 0x271   :  { %v7712_v45 = vld [vmem:[#allocation12_spill] sm:$0xff]  ;;  %v7713_v42 = vld [vmem:[#allocation13_spill] sm:$0xff] }
 0x273   :  { %v4858_v9 = vpop.permute.xlu1 %1897  ;;  %v4860_v14 = vpop.permute.xlu0 %1894 }
 0x274   :  { %7660 = vst [vmem:[#allocation248_spill] sm:$0xff] %v4858_v9  ;;  %7661 = vst [vmem:[#allocation249_spill] sm:$0xff] %v4860_v14  ;;  %2286 = vperm.xlu1 %2964, %v2187_v25   ;;  %2283 = vperm.xlu0 %2963, %v2186_v38   ;;  %v2191_v14 = vsel %vm2139_vm12, 1, %v7311_v3  ;;  %v2190_v9 = vsel %vm2138_vm13, 1, %v7311_v3  ;;  %vm2155_vm12 = vcmp.eq.s32.totalorder %v5011_v50, 6  ;;  %vm2154_vm13 = vcmp.eq.s32.totalorder %v5017_v53, 6 }
 0x275   :  { %v7710_v53 = vld [vmem:[#allocation10_spill] sm:$0xff]  ;;  %v7711_v50 = vld [vmem:[#allocation11_spill] sm:$0xff] }
 0x277   :  { %v4876_v25 = vpop.permute.xlu1 %1903  ;;  %v4878_v38 = vpop.permute.xlu0 %1900 }
 0x278   :  { %7664 = vst [vmem:[#allocation252_spill] sm:$0xff] %v4876_v25  ;;  %7665 = vst [vmem:[#allocation253_spill] sm:$0xff] %v4878_v38  ;;  %2292 = vperm.xlu1 %2964, %v2189_v4   ;;  %2289 = vperm.xlu0 %2963, %v2188_v54   ;;  %v2193_v38 = vsel %vm2141_vm14, 1, %v7311_v3  ;;  %v2192_v25 = vsel %vm2140_vm15, 1, %v7311_v3  ;;  %vm310_vm14 = vcmp.eq.s32.totalorder %v3486_v30, 1  ;;  %vm308_vm15 = vcmp.eq.s32.totalorder %v3488_v33, 1 }
 0x279   :  { %v5044_v30 = vld [vmem:[%s7241_s0 + $0x170] sm:$0xff] }
 0x27a   :  { %7700 = vst [vmem:[#allocation287_spill] sm:$0xff] %v5044_v30 }
 0x27b   :  { %v4894_v4 = vpop.permute.xlu1 %1909  ;;  %v4896_v54 = vpop.permute.xlu0 %1906 }
 0x27c   :  { %7668 = vst [vmem:[#allocation256_spill] sm:$0xff] %v4894_v4  ;;  %7669 = vst [vmem:[#allocation257_spill] sm:$0xff] %v4896_v54  ;;  %2298 = vperm.xlu1 %2964, %v2191_v14   ;;  %2295 = vperm.xlu0 %2963, %v2190_v9   ;;  %v2195_v54 = vsel %vm2143_vm0, 1, %v7311_v3  ;;  %v2194_v4 = vsel %vm2142_vm1, 1, %v7311_v3  ;;  %vm311_vm0 = vcmp.eq.s32.totalorder %v3494_v46, 1  ;;  %vm309_vm1 = vcmp.eq.s32.totalorder %v3496_v49, 1 }
 0x27f   :  { %v4912_v14 = vpop.permute.xlu1 %1915  ;;  %v4914_v9 = vpop.permute.xlu0 %1912 }
 0x280   :  { %7672 = vst [vmem:[#allocation260_spill] sm:$0xff] %v4912_v14  ;;  %7673 = vst [vmem:[#allocation261_spill] sm:$0xff] %v4914_v9  ;;  %2304 = vperm.xlu1 %2964, %v2193_v38   ;;  %2301 = vperm.xlu0 %2963, %v2192_v25   ;;  %v2197_v9 = vsel %vm2145_vm2, 1, %v7311_v3  ;;  %v2196_v14 = vsel %vm2144_vm3, 1, %v7311_v3  ;;  %vm2156_vm3 = vcmp.eq.s32.totalorder %v5044_v30, 6  ;;  %v7708_v30 = vld [vmem:[#allocation8_spill] sm:$0xff] }
 0x283   :  { %v4930_v38 = vpop.permute.xlu1 %1921  ;;  %v4932_v25 = vpop.permute.xlu0 %1918 }
 0x284   :  { %7676 = vst [vmem:[#allocation264_spill] sm:$0xff] %v4930_v38  ;;  %7677 = vst [vmem:[#allocation265_spill] sm:$0xff] %v4932_v25  ;;  %2310 = vperm.xlu1 %2964, %v2195_v54   ;;  %2307 = vperm.xlu0 %2963, %v2194_v4   ;;  %v2199_v25 = vsel %vm2147_vm4, 1, %v7311_v3  ;;  %v2198_v38 = vsel %vm2146_vm5, 1, %v7311_v3  ;;  %vm313_vm4 = vcmp.eq.s32.totalorder %v3502_v62, 1  ;;  %vm312_vm5 = vcmp.eq.s32.totalorder %v3504_v6, 1 }
 0x287   :  { %v4948_v54 = vpop.permute.xlu1 %1927  ;;  %v4950_v4 = vpop.permute.xlu0 %1924 }
 0x288   :  { %7680 = vst [vmem:[#allocation268_spill] sm:$0xff] %v4948_v54  ;;  %7681 = vst [vmem:[#allocation269_spill] sm:$0xff] %v4950_v4  ;;  %2316 = vperm.xlu1 %2964, %v2197_v9   ;;  %2313 = vperm.xlu0 %2963, %v2196_v14   ;;  %v2201_v4 = vsel %vm2149_vm6, 1, %v7311_v3  ;;  %v2200_v54 = vsel %vm2148_vm7, 1, %v7311_v3  ;;  %vm315_vm6 = vcmp.eq.s32.totalorder %v3510_v17, 1  ;;  %vm314_vm7 = vcmp.eq.s32.totalorder %v7703_v37, 1 }
 0x28b   :  { %v4966_v9 = vpop.permute.xlu1 %1933  ;;  %v4968_v14 = vpop.permute.xlu0 %1930 }
 0x28c   :  { %7684 = vst [vmem:[#allocation272_spill] sm:$0xff] %v4966_v9  ;;  %7685 = vst [vmem:[#allocation273_spill] sm:$0xff] %v4968_v14  ;;  %2322 = vperm.xlu1 %2964, %v2199_v25   ;;  %2319 = vperm.xlu0 %2963, %v2198_v38   ;;  %v2203_v14 = vsel %vm2151_vm8, 1, %v7311_v3  ;;  %v2202_v9 = vsel %vm2150_vm9, 1, %v7311_v3  ;;  %vm2452_vm8 = vcmp.eq.s32.totalorder %v4615_v1, 7  ;;  %vm2451_vm9 = vcmp.eq.s32.totalorder %v4621_v41, 7 }
 0x28f   :  { %v4984_v25 = vpop.permute.xlu1 %1939  ;;  %v4986_v38 = vpop.permute.xlu0 %1936 }
 0x290   :  { %7688 = vst [vmem:[#allocation276_spill] sm:$0xff] %v4984_v25  ;;  %7689 = vst [vmem:[#allocation277_spill] sm:$0xff] %v4986_v38  ;;  %2328 = vperm.xlu1 %2964, %v2201_v4   ;;  %2325 = vperm.xlu0 %2963, %v2200_v54   ;;  %v2205_v38 = vsel %vm2153_vm10, 1, %v7311_v3  ;;  %v2204_v25 = vsel %vm2152_vm11, 1, %v7311_v3  ;;  %v5027_v3 = vld [vmem:[%s7243_s2] ss:$0 sm:$0xff] }
 0x291   :  { %v5064_v62 = vsel %vm311_vm0, %v5027_v3, 0.0  ;;  %v5069_v6 = vsel %vm309_vm1, %v5027_v3, 0.0  ;;  %v5074_v17 = vsel %vm313_vm4, %v5027_v3, 0.0  ;;  %v5077_v37 = vsel %vm312_vm5, %v5027_v3, 0.0 }
 0x292   :  { %v5082_v46 = vsel %vm315_vm6, %v5027_v3, 0.0  ;;  %v5085_v49 = vsel %vm314_vm7, %v5027_v3, 0.0  ;;  %vm323_vm0 = vcmp.eq.s32.totalorder %v7712_v45, 1  ;;  %vm322_vm1 = vcmp.eq.s32.totalorder %v7713_v42, 1 }
 0x293   :  { %v5002_v4 = vpop.permute.xlu1 %1945  ;;  %v5004_v54 = vpop.permute.xlu0 %1942  ;;  %vm327_vm6 = vcmp.eq.s32.totalorder %v7718_v34, 1  ;;  %vm326_vm7 = vcmp.eq.s32.totalorder %v7719_v58, 1  ;;  %v7722_v34 = vld [vmem:[#allocation20_spill] sm:$0xff]  ;;  %v7723_v58 = vld [vmem:[#allocation21_spill] sm:$0xff] }
 0x294   :  { %7692 = vst [vmem:[#allocation280_spill] sm:$0xff] %v5002_v4  ;;  %7693 = vst [vmem:[#allocation281_spill] sm:$0xff] %v5004_v54  ;;  %2334 = vperm.xlu1 %2964, %v2203_v14   ;;  %2331 = vperm.xlu0 %2963, %v2202_v9   ;;  %v7698_v54 = vmov 0  }
 0x295   :  { %v2207_v4 = vsel %vm2155_vm12, 1, %v7698_v54  ;;  %v2206_v61 = vsel %vm2154_vm13, 1, %v7698_v54  ;;  %vm319_vm12 = vcmp.eq.s32.totalorder %v7708_v30, 1  ;;  %v2503_v30 = vsel %vm2451_vm9, 1, %v7698_v54 }
 0x296   :  { %vm328_vm9 = vcmp.eq.s32.totalorder %v7721_v29, 1 }
 0x297   :  { %v5020_v14 = vpop.permute.xlu1 %1951  ;;  %v5022_v9 = vpop.permute.xlu0 %1948 }
 0x298   :  { %7696 = vst [vmem:[#allocation284_spill] sm:$0xff] %v5020_v14  ;;  %7697 = vst [vmem:[#allocation285_spill] sm:$0xff] %v5022_v9  ;;  %2340 = vperm.xlu1 %2964, %v2205_v38   ;;  %2337 = vperm.xlu0 %2963, %v2204_v25   ;;  %v5038_v25 = vld [vmem:[%s7241_s0 + $0x178] sm:$0xff]  ;;  %v5054_v9 = vsel %vm310_vm14, %v5027_v3, 0.0  ;;  %v5057_v14 = vsel %vm308_vm15, %v5027_v3, 0.0  ;;  %vm321_vm14 = vcmp.eq.s32.totalorder %v7710_v53, 1 }
 0x299   :  { %7699 = vst [vmem:[#allocation286_spill] sm:$0xff] %v5038_v25  ;;  %vm2157_vm2 = vcmp.eq.s32.totalorder %v5038_v25, 6  ;;  %v7709_v25 = vld [vmem:[#allocation9_spill] sm:$0xff]  ;;  %vm320_vm15 = vcmp.eq.s32.totalorder %v7711_v50, 1  ;;  %v5114_v50 = vsel %vm319_vm12, %v5027_v3, 0.0  ;;  %v5120_v42 = vsel %vm321_vm14, %v5027_v3, 0.0 }
 0x29a   :  { %vm318_vm13 = vcmp.eq.s32.totalorder %v7709_v25, 1  ;;  %v5123_v1 = vsel %vm320_vm15, %v5027_v3, 0.0  ;;  %vm331_vm12 = vcmp.eq.s32.totalorder %v7722_v34, 1  ;;  %vm333_vm14 = vcmp.eq.s32.totalorder %v7726_v18, 1 }
 0x29b   :  { %v5049_v33 = vpop.permute.xlu1 %1957  ;;  %v5051_v38 = vpop.permute.xlu0 %1954  ;;  %v5117_v45 = vsel %vm318_vm13, %v5027_v3, 0.0  ;;  %vm330_vm13 = vcmp.eq.s32.totalorder %v7723_v58, 1  ;;  %vm332_vm15 = vcmp.eq.s32.totalorder %v7727_v21, 1  ;;  %v5177_v58 = vsel %vm328_vm9, %v5027_v3, 0.0 }
 0x29c   :  { %7701 = vst [vmem:[#allocation288_spill] sm:$0xff] %v5049_v33  ;;  %7702 = vst [vmem:[#allocation289_spill] sm:$0xff] %v5051_v38  ;;  %2346 = vperm.xlu1 %2964, %v2207_v4   ;;  %2343 = vperm.xlu0 %2963, %v2206_v61   ;;  %v2209_v38 = vsel %vm2157_vm2, 1, %v7698_v54  ;;  %v2208_v33 = vsel %vm2156_vm3, 1, %v7698_v54  ;;  %v7704_v61 = vld [vmem:[#allocation6_spill] sm:$0xff]  ;;  %v7705_v4 = vld [vmem:[#allocation7_spill] sm:$0xff] }
 0x29d   :  { %vm317_vm10 = vcmp.eq.s32.totalorder %v7704_v61, 1  ;;  %vm316_vm11 = vcmp.eq.s32.totalorder %v7705_v4, 1  ;;  %v2504_v61 = vsel %vm2452_vm8, 1, %v7698_v54  ;;  %vm2454_vm2 = vcmp.eq.s32.totalorder %v4633_v2, 7 }
 0x29e   :  { %v5106_v25 = vsel %vm317_vm10, %v5027_v3, 0.0  ;;  %v5109_v53 = vsel %vm316_vm11, %v5027_v3, 0.0  ;;  %vm2453_vm3 = vcmp.eq.s32.totalorder %v4639_v0, 7  ;;  %v5133_v4 = vsel %vm322_vm1, %v5027_v3, 0.0 }
 0x29f   :  { %v5089_v57 = vpop.permute.xlu1 %1963  ;;  %v5091_v22 = vpop.permute.xlu0 %1960  ;;  %vm329_vm8 = vcmp.eq.s32.totalorder %v7720_v26, 1  ;;  %vm2456_vm10 = vcmp.eq.s32.totalorder %v4651_v8, 7  ;;  %vm2455_vm11 = vcmp.eq.s32.totalorder %v4657_v7, 7  ;;  %v5186_v21 = vsel %vm331_vm12, %v5027_v3, 0.0  ;;  %v7729_v7 = vld [vmem:[#allocation25_spill] sm:$0xff] }
 0x2a0   :  { %7706 = vst [vmem:[#allocation5_spill] sm:$0xff] %v5089_v57  ;;  %7707 = vst [vmem:[#allocation6_spill] sm:$0xff] %v5091_v22  ;;  %2352 = vperm.xlu1 %2964, %v2209_v38   ;;  %2349 = vperm.xlu0 %2963, %v2208_v33   ;;  %v5130_v38 = vsel %vm323_vm0, %v5027_v3, 0.0  ;;  %v7716_v22 = vld [vmem:[#allocation14_spill] sm:$0xff]  ;;  %v7717_v57 = vld [vmem:[#allocation15_spill] sm:$0xff]  ;;  %v5172_v34 = vsel %vm329_vm8, %v5027_v3, 0.0 }
 0x2a1   :  { %vm325_vm4 = vcmp.eq.s32.totalorder %v7716_v22, 1  ;;  %vm324_vm5 = vcmp.eq.s32.totalorder %v7717_v57, 1  ;;  %v2507_v18 = vsel %vm2455_vm11, 1, %v7698_v54  ;;  %v5189_v26 = vsel %vm330_vm13, %v5027_v3, 0.0 }
 0x2a2   :  { %v5150_v22 = vsel %vm325_vm4, %v5027_v3, 0.0  ;;  %v5153_v57 = vsel %vm324_vm5, %v5027_v3, 0.0  ;;  %vm2458_vm0 = vcmp.eq.s32.totalorder %v4669_v12, 7  ;;  %vm2457_vm1 = vcmp.eq.s32.totalorder %v4675_v11, 7 }
 0x2a3   :  { %v5125_v41 = vpop.permute.xlu1 %1969  ;;  %v5127_v33 = vpop.permute.xlu0 %1966  ;;  %v5194_v29 = vsel %vm333_vm14, %v5027_v3, 0.0  ;;  %v5197_v8 = vsel %vm332_vm15, %v5027_v3, 0.0  ;;  %vm337_vm4 = vcmp.eq.s32.totalorder %v7732_v10, 1  ;;  %vm336_vm5 = vcmp.eq.s32.totalorder %v7733_v13, 1 }
 0x2a4   :  { %7714 = vst [vmem:[#allocation7_spill] sm:$0xff] %v5125_v41  ;;  %7715 = vst [vmem:[#allocation8_spill] sm:$0xff] %v5127_v33  ;;  %2555 = vperm.xlu1 %2964, %v2504_v61   ;;  %2552 = vperm.xlu0 %2963, %v2503_v30   ;;  %v2506_v33 = vsel %vm2454_vm2, 1, %v7698_v54  ;;  %v2505_v41 = vsel %vm2453_vm3, 1, %v7698_v54  ;;  %v5162_v61 = vsel %vm327_vm6, %v5027_v3, 0.0  ;;  %v5165_v30 = vsel %vm326_vm7, %v5027_v3, 0.0 }
 0x2a5   :  { %vm334_vm3 = vcmp.eq.s32.totalorder %v7729_v7, 1  ;;  %vm339_vm6 = vcmp.eq.s32.totalorder %v7734_v63, 1  ;;  %vm338_vm7 = vcmp.eq.s32.totalorder %v7735_v5, 1  ;;  %vm341_vm8 = vcmp.eq.s32.totalorder %v7736_v59, 1 }
 0x2a6   :  { %vm340_vm9 = vcmp.eq.s32.totalorder %v7737_v60, 1  ;;  %v2509_v10 = vsel %vm2457_vm1, 1, %v7698_v54  ;;  %v5221_v63 = vsel %vm334_vm3, %v5027_v3, 0.0  ;;  %vm2459_vm11 = vcmp.eq.s32.totalorder %v4693_v15, 7 }
 0x2a7   :  { %v5157_v0 = vpop.permute.xlu1 %1975  ;;  %v5159_v2 = vpop.permute.xlu0 %1972  ;;  %v5226_v5 = vsel %vm337_vm4, %v5027_v3, 0.0  ;;  %v5229_v59 = vsel %vm336_vm5, %v5027_v3, 0.0  ;;  %v5232_v60 = vsel %vm339_vm6, %v5027_v3, 0.0  ;;  %v5235_v11 = vsel %vm338_vm7, %v5027_v3, 0.0 }
 0x2a8   :  { %7724 = vst [vmem:[#allocation9_spill] sm:$0xff] %v5157_v0  ;;  %7725 = vst [vmem:[#allocation10_spill] sm:$0xff] %v5159_v2  ;;  %2561 = vperm.xlu1 %2964, %v2506_v33   ;;  %2558 = vperm.xlu0 %2963, %v2505_v41   ;;  %v2508_v2 = vsel %vm2456_vm10, 1, %v7698_v54  ;;  %v7728_v41 = vld [vmem:[#allocation24_spill] sm:$0xff]  ;;  %vm2460_vm10 = vcmp.eq.s32.totalorder %v4687_v16, 7  ;;  %v5245_v7 = vsel %vm340_vm9, %v5027_v3, 0.0 }
 0x2a9   :  { %vm335_vm2 = vcmp.eq.s32.totalorder %v7728_v41, 1  ;;  %v2510_v41 = vsel %vm2458_vm0, 1, %v7698_v54  ;;  %7740 = vst [vmem:[#allocation15_spill] sm:$0xff] %v5245_v7  ;;  %vm345_vm14 = vcmp.eq.s32.totalorder %v7743_v55, 1  ;;  %vm344_vm15 = vcmp.eq.s32.totalorder %v7744_v56, 1  ;;  %v7748_v16 = vld [vmem:[#allocation38_spill] sm:$0xff] }
 0x2aa   :  { %v5218_v13 = vsel %vm335_vm2, %v5027_v3, 0.0  ;;  %vm347_vm0 = vcmp.eq.s32.totalorder %v7745_v51, 1  ;;  %vm346_vm1 = vcmp.eq.s32.totalorder %v7746_v52, 1  ;;  %vm2462_vm2 = vcmp.eq.s32.totalorder %v4705_v20, 7  ;;  %v7752_v7 = vld [vmem:[#allocation40_spill] sm:$0xff] }
 0x2ab   :  { %v5201_v33 = vpop.permute.xlu1 %1981  ;;  %v5203_v0 = vpop.permute.xlu0 %1978  ;;  %vm2461_vm3 = vcmp.eq.s32.totalorder %v4711_v19, 7  ;;  %vm349_vm4 = vcmp.eq.s32.totalorder %v7748_v16, 1  ;;  %vm351_vm6 = vcmp.eq.s32.totalorder %v7752_v7, 1  ;;  %v5284_v16 = vsel %vm347_vm0, %v5027_v3, 0.0  ;;  %v7760_v19 = vld [vmem:[#allocation43_spill] sm:$0xff] }
 0x2ac   :  { %7730 = vst [vmem:[#allocation11_spill] sm:$0xff] %v5201_v33  ;;  %7731 = vst [vmem:[#allocation12_spill] sm:$0xff] %v5203_v0  ;;  %2567 = vperm.xlu1 %2964, %v2508_v2   ;;  %2564 = vperm.xlu0 %2963, %v2507_v18   ;;  %v5242_v18 = vsel %vm341_vm8, %v5027_v3, 0.0  ;;  %v7741_v0 = vld [vmem:[#allocation32_spill] sm:$0xff]  ;;  %v7742_v33 = vld [vmem:[#allocation33_spill] sm:$0xff]  ;;  %v2513_v7 = vsel %vm2461_vm3, 1, %v7698_v54 }
 0x2ad   :  { %vm343_vm12 = vcmp.eq.s32.totalorder %v7741_v0, 1  ;;  %vm342_vm13 = vcmp.eq.s32.totalorder %v7742_v33, 1  ;;  %v7749_v0 = vld [vmem:[#allocation39_spill] sm:$0xff]  ;;  %vm2464_vm8 = vcmp.eq.s32.totalorder %v4723_v24, 7  ;;  %vm2463_vm9 = vcmp.eq.s32.totalorder %v4729_v23, 7 }
 0x2ae   :  { %v5262_v55 = vsel %vm343_vm12, %v5027_v3, 0.0  ;;  %v5265_v56 = vsel %vm342_vm13, %v5027_v3, 0.0  ;;  %vm348_vm5 = vcmp.eq.s32.totalorder %v7749_v0, 1  ;;  %v5289_v0 = vsel %vm346_vm1, %v5027_v3, 0.0 }
 0x2af   :  { %v5237_v12 = vpop.permute.xlu1 %1987  ;;  %v5239_v2 = vpop.permute.xlu0 %1984  ;;  %7747 = vst [vmem:[#allocation16_spill] sm:$0xff] %v5262_v55  ;;  %v7753_v55 = vld [vmem:[#allocation41_spill] sm:$0xff]  ;;  %7754 = vst [vmem:[#allocation19_spill] sm:$0xff] %v5289_v0  ;;  %v5301_v51 = vsel %vm348_vm5, %v5027_v3, 0.0  ;;  %v5306_v52 = vsel %vm351_vm6, %v5027_v3, 0.0  ;;  %vm2465_vm3 = vcmp.eq.s32.totalorder %v4747_v27, 7 }
 0x2b0   :  { %7738 = vst [vmem:[#allocation13_spill] sm:$0xff] %v5237_v12  ;;  %7739 = vst [vmem:[#allocation14_spill] sm:$0xff] %v5239_v2  ;;  %2573 = vperm.xlu1 %2964, %v2510_v41   ;;  %2570 = vperm.xlu0 %2963, %v2509_v10   ;;  %v2512_v2 = vsel %vm2460_vm10, 1, %v7698_v54  ;;  %v2511_v12 = vsel %vm2459_vm11, 1, %v7698_v54  ;;  %v5274_v41 = vsel %vm345_vm14, %v5027_v3, 0.0  ;;  %v5277_v10 = vsel %vm344_vm15, %v5027_v3, 0.0 }
 0x2b1   :  { %vm350_vm7 = vcmp.eq.s32.totalorder %v7753_v55, 1  ;;  %7756 = vst [vmem:[#allocation21_spill] sm:$0xff] %v5301_v51  ;;  %7757 = vst [vmem:[#allocation22_spill] sm:$0xff] %v5306_v52  ;;  %vm352_vm11 = vcmp.eq.s32.totalorder %v7760_v19, 1  ;;  %v7764_v51 = vld [vmem:[#allocation45_spill] sm:$0xff]  ;;  %v7765_v52 = vld [vmem:[#allocation46_spill] sm:$0xff] }
 0x2b2   :  { %v5309_v20 = vsel %vm350_vm7, %v5027_v3, 0.0  ;;  %vm354_vm13 = vcmp.eq.s32.totalorder %v7764_v51, 1  ;;  %v5322_v0 = vld [vmem:[%s7243_s2 + $0x1] ss:$0 sm:$0xff]  ;;  %vm650_vm14 = vcmp.eq.s32.totalorder %v7765_v52, 1  ;;  %v2515_v51 = vsel %vm2463_vm9, 1, %v7698_v54 }
 0x2b3   :  { %v5269_v15 = vpop.permute.xlu1 %1993  ;;  %v5271_v33 = vpop.permute.xlu0 %1990  ;;  %7758 = vst [vmem:[#allocation23_spill] sm:$0xff] %v5309_v20  ;;  %v7766_v20 = vld [vmem:[#allocation47_spill] sm:$0xff]  ;;  %v7768_v19 = vld [vmem:[#allocation49_spill] sm:$0xff]  ;;  %v5338_v52 = vsel %vm352_vm11, %v5027_v3, 0.0  ;;  %v5346_v24 = vsel %vm354_vm13, %v5027_v3, 0.0  ;;  %v5350_v23 = vsel %vm650_vm14, %v5322_v0, %v5069_v6  ;;  %vm2467_vm11 = vcmp.eq.s32.totalorder %v4765_v31, 7 }
 0x2b4   :  { %7750 = vst [vmem:[#allocation17_spill] sm:$0xff] %v5269_v15  ;;  %7751 = vst [vmem:[#allocation18_spill] sm:$0xff] %v5271_v33  ;;  %2579 = vperm.xlu1 %2964, %v2512_v2   ;;  %2576 = vperm.xlu0 %2963, %v2511_v12   ;;  %v2514_v33 = vsel %vm2462_vm2, 1, %v7698_v54  ;;  %v5298_v12 = vsel %vm349_vm4, %v5027_v3, 0.0  ;;  %v7759_v2 = vld [vmem:[#allocation42_spill] sm:$0xff]  ;;  %vm649_vm15 = vcmp.eq.s32.totalorder %v7766_v20, 1 }
 0x2b5   :  { %7755 = vst [vmem:[#allocation20_spill] sm:$0xff] %v5298_v12  ;;  %vm353_vm10 = vcmp.eq.s32.totalorder %v7759_v2, 1  ;;  %v7763_v12 = vld [vmem:[#allocation44_spill] sm:$0xff]  ;;  %vm651_vm1 = vcmp.eq.s32.totalorder %v7768_v19, 1  ;;  %vm2466_vm2 = vcmp.eq.s32.totalorder %v4741_v28, 7  ;;  %v7773_v6 = vld [vmem:[#allocation51_spill] sm:$0xff] }
 0x2b6   :  { %vm355_vm12 = vcmp.eq.s32.totalorder %v7763_v12, 1  ;;  %v7767_v2 = vld [vmem:[#allocation48_spill] sm:$0xff]  ;;  %v2516_v12 = vsel %vm2464_vm8, 1, %v7698_v54  ;;  %vm653_vm5 = vcmp.eq.s32.totalorder %v7773_v6, 1  ;;  %v7779_v27 = vld [vmem:[#allocation57_spill] sm:$0xff] }
 0x2b7   :  { %v5313_v55 = vpop.permute.xlu1 %1999  ;;  %v5315_v15 = vpop.permute.xlu0 %1996  ;;  %vm652_vm0 = vcmp.eq.s32.totalorder %v7767_v2, 1  ;;  %v5388_v28 = vsel %vm653_vm5, %v5322_v0, %v5077_v37  ;;  %vm659_vm13 = vcmp.eq.s32.totalorder %v7779_v27, 1  ;;  %v7783_v37 = vld [vmem:[#allocation59_spill] sm:$0xff] }
 0x2b8   :  { %7761 = vst [vmem:[#allocation24_spill] sm:$0xff] %v5313_v55  ;;  %7762 = vst [vmem:[#allocation25_spill] sm:$0xff] %v5315_v15  ;;  %2585 = vperm.xlu1 %2964, %v2514_v33   ;;  %2582 = vperm.xlu0 %2963, %v2513_v7   ;;  %v5335_v15 = vsel %vm353_vm10, %v5027_v3, 0.0  ;;  %v5343_v33 = vsel %vm355_vm12, %v5027_v3, 0.0  ;;  %v5354_v7 = vsel %vm649_vm15, %v5322_v0, %v5057_v14  ;;  %v7772_v55 = vld [vmem:[#allocation50_spill] sm:$0xff]  ;;  %v7774_v14 = vld [vmem:[#allocation52_spill] sm:$0xff] }
 0x2b9   :  { %7769 = vst [vmem:[#allocation26_spill] sm:$0xff] %v5354_v7  ;;  %v5362_v19 = vsel %vm652_vm0, %v5322_v0, %v5064_v62  ;;  %v5366_v3 = vsel %vm651_vm1, %v5322_v0, %v5054_v9  ;;  %vm654_vm4 = vcmp.eq.s32.totalorder %v7772_v55, 1  ;;  %vm656_vm6 = vcmp.eq.s32.totalorder %v7774_v14, 1  ;;  %v7775_v7 = vld [vmem:[#allocation53_spill] sm:$0xff]  ;;  %v7776_v9 = vld [vmem:[#allocation54_spill] sm:$0xff]  ;;  %v7789_v27 = vld [vmem:[#allocation63_spill] sm:$0xff] }
 0x2ba   :  { %vm655_vm7 = vcmp.eq.s32.totalorder %v7775_v7, 1  ;;  %v2517_v62 = vsel %vm2465_vm3, 1, %v7698_v54  ;;  %vm658_vm8 = vcmp.eq.s32.totalorder %v7776_v9, 1  ;;  %vm2468_vm10 = vcmp.eq.s32.totalorder %v4759_v32, 7  ;;  %v7782_v14 = vld [vmem:[#allocation58_spill] sm:$0xff] }
 0x2bb   :  { %v5356_v20 = vpop.permute.xlu1 %2005  ;;  %v5358_v2 = vpop.permute.xlu0 %2002  ;;  %v5384_v55 = vsel %vm654_vm4, %v5322_v0, %v5074_v17  ;;  %v5398_v6 = vsel %vm656_vm6, %v5322_v0, %v5082_v46  ;;  %v5402_v17 = vsel %vm655_vm7, %v5322_v0, %v5085_v49  ;;  %vm662_vm14 = vcmp.eq.s32.totalorder %v7782_v14, 1  ;;  %v7788_v9 = vld [vmem:[#allocation62_spill] sm:$0xff]  ;;  %v7790_v14 = vld [vmem:[#allocation64_spill] sm:$0xff] }
 0x2bc   :  { %7770 = vst [vmem:[#allocation27_spill] sm:$0xff] %v5356_v20  ;;  %7771 = vst [vmem:[#allocation28_spill] sm:$0xff] %v5358_v2  ;;  %2591 = vperm.xlu1 %2964, %v2516_v12   ;;  %2588 = vperm.xlu0 %2963, %v2515_v51   ;;  %v2518_v2 = vsel %vm2466_vm2, 1, %v7698_v54  ;;  %v7777_v20 = vld [vmem:[#allocation55_spill] sm:$0xff]  ;;  %v7778_v12 = vld [vmem:[#allocation56_spill] sm:$0xff]  ;;  %vm661_vm15 = vcmp.eq.s32.totalorder %v7783_v37, 1  ;;  %v5436_v32 = vsel %vm662_vm14, %v5322_v0, %v5120_v42 }
 0x2bd   :  { %vm657_vm9 = vcmp.eq.s32.totalorder %v7777_v20, 1  ;;  %vm660_vm12 = vcmp.eq.s32.totalorder %v7778_v12, 1  ;;  %v5410_v12 = vsel %vm658_vm8, %v5322_v0, %v5106_v25  ;;  %v2520_v49 = vsel %vm2468_vm10, 1, %v7698_v54  ;;  %v7791_v42 = vld [vmem:[#allocation65_spill] sm:$0xff]  ;;  %v7793_v37 = vld [vmem:[#allocation67_spill] sm:$0xff] }
 0x2be   :  { %v5416_v46 = vsel %vm657_vm9, %v5322_v0, %v5109_v53  ;;  %v5430_v25 = vsel %vm659_vm13, %v5322_v0, %v5117_v45  ;;  %vm2470_vm0 = vcmp.eq.s32.totalorder %v4777_v36, 7  ;;  %vm2469_vm1 = vcmp.eq.s32.totalorder %v4783_v35, 7  ;;  %v7784_v53 = vld [vmem:[#allocation60_spill] sm:$0xff] }
 0x2bf   :  { %v5392_v51 = vpop.permute.xlu1 %2011  ;;  %v5394_v7 = vpop.permute.xlu0 %2008  ;;  %v5440_v31 = vsel %vm661_vm15, %v5322_v0, %v5123_v1  ;;  %vm664_vm2 = vcmp.eq.s32.totalorder %v7784_v53, 1  ;;  %vm666_vm4 = vcmp.eq.s32.totalorder %v7788_v9, 1  ;;  %vm665_vm5 = vcmp.eq.s32.totalorder %v7789_v27, 1  ;;  %v7792_v1 = vld [vmem:[#allocation66_spill] sm:$0xff] }
 0x2c0   :  { %7780 = vst [vmem:[#allocation29_spill] sm:$0xff] %v5392_v51  ;;  %7781 = vst [vmem:[#allocation30_spill] sm:$0xff] %v5394_v7  ;;  %2597 = vperm.xlu1 %2964, %v2518_v2   ;;  %2594 = vperm.xlu0 %2963, %v2517_v62   ;;  %v2519_v2 = vsel %vm2467_vm11, 1, %v7698_v54  ;;  %v5426_v62 = vsel %vm660_vm12, %v5322_v0, %v5114_v50  ;;  %v7785_v50 = vld [vmem:[#allocation61_spill] sm:$0xff]  ;;  %vm668_vm6 = vcmp.eq.s32.totalorder %v7790_v14, 1  ;;  %vm667_vm7 = vcmp.eq.s32.totalorder %v7791_v42, 1 }
 0x2c1   :  { %vm663_vm3 = vcmp.eq.s32.totalorder %v7785_v50, 1  ;;  %vm670_vm8 = vcmp.eq.s32.totalorder %v7792_v1, 1  ;;  %vm669_vm9 = vcmp.eq.s32.totalorder %v7793_v37, 1  ;;  %v2522_v53 = vsel %vm2470_vm0, 1, %v7698_v54  ;;  %v7796_v14 = vld [vmem:[#allocation68_spill] sm:$0xff]  ;;  %v7799_v42 = vld [vmem:[#allocation71_spill] sm:$0xff] }
 0x2c2   :  { %v2521_v50 = vsel %vm2469_vm1, 1, %v7698_v54  ;;  %v5462_v9 = vsel %vm664_vm2, %v5322_v0, %v5130_v38  ;;  %vm2472_vm10 = vcmp.eq.s32.totalorder %v4795_v40, 7  ;;  %vm2471_vm11 = vcmp.eq.s32.totalorder %v4801_v39, 7  ;;  %v7801_v37 = vld [vmem:[#allocation73_spill] sm:$0xff]  ;;  %v7803_v39 = vld [vmem:[#allocation75_spill] sm:$0xff]  ;;  %v7852_v7 = vld [vmem:[#allocation100_spill] sm:$0xff] }
 0x2c3   :  { %v5444_v20 = vpop.permute.xlu1 %2214  ;;  %v5446_v45 = vpop.permute.xlu0 %2211  ;;  %v5472_v36 = vsel %vm666_vm4, %v5322_v0, %v5150_v22  ;;  %v5476_v35 = vsel %vm665_vm5, %v5322_v0, %v5153_v57  ;;  %v5480_v38 = vsel %vm668_vm6, %v5322_v0, %v5162_v61  ;;  %v5492_v22 = vsel %vm670_vm8, %v5322_v0, %v5172_v34  ;;  %v7797_v61 = vld [vmem:[#allocation69_spill] sm:$0xff]  ;;  %v7855_v51 = vld [vmem:[#allocation103_spill] sm:$0xff] }
 0x2c4   :  { %7786 = vst [vmem:[#allocation31_spill] sm:$0xff] %v5444_v20  ;;  %7787 = vst [vmem:[#allocation32_spill] sm:$0xff] %v5446_v45  ;;  %2603 = vperm.xlu1 %2964, %v2520_v49   ;;  %2600 = vperm.xlu0 %2963, %v2519_v2   ;;  %v5466_v49 = vsel %vm663_vm3, %v5322_v0, %v5133_v4  ;;  %v5484_v4 = vsel %vm667_vm7, %v5322_v0, %v5165_v30  ;;  %vm672_vm12 = vcmp.eq.s32.totalorder %v7796_v14, 1  ;;  %v7798_v30 = vld [vmem:[#allocation70_spill] sm:$0xff]  ;;  %v7840_v20 = vld [vmem:[#allocation23_spill] sm:$0xff] }
 0x2c5   :  { %v5496_v57 = vsel %vm669_vm9, %v5322_v0, %v5177_v58  ;;  %vm671_vm13 = vcmp.eq.s32.totalorder %v7797_v61, 1  ;;  %vm674_vm14 = vcmp.eq.s32.totalorder %v7798_v30, 1  ;;  %vm673_vm15 = vcmp.eq.s32.totalorder %v7799_v42, 1  ;;  %v7800_v58 = vld [vmem:[#allocation72_spill] sm:$0xff] }
 0x2c6   :  { %v2524_v1 = vsel %vm2472_vm10, 1, %v7698_v54  ;;  %v2523_v34 = vsel %vm2471_vm11, 1, %v7698_v54  ;;  %vm676_vm0 = vcmp.eq.s32.totalorder %v7800_v58, 1  ;;  %vm675_vm1 = vcmp.eq.s32.totalorder %v7801_v37, 1  ;;  %v7806_v42 = vld [vmem:[#allocation76_spill] sm:$0xff] }
 0x2c7   :  { %v5486_v2 = vpop.permute.xlu1 %2220  ;;  %v5488_v27 = vpop.permute.xlu0 %2217  ;;  %vm2474_vm2 = vcmp.eq.s32.totalorder %v4813_v44, 7  ;;  %vm2473_vm3 = vcmp.eq.s32.totalorder %v4819_v43, 7  ;;  %v5518_v40 = vsel %vm671_vm13, %v5322_v0, %v5189_v26  ;;  %vm677_vm5 = vcmp.eq.s32.totalorder %v7803_v39, 1  ;;  %v7807_v26 = vld [vmem:[#allocation77_spill] sm:$0xff]  ;;  %v7812_v37 = vld [vmem:[#allocation80_spill] sm:$0xff] }
 0x2c8   :  { %7794 = vst [vmem:[#allocation33_spill] sm:$0xff] %v5486_v2  ;;  %7795 = vst [vmem:[#allocation34_spill] sm:$0xff] %v5488_v27  ;;  %2609 = vperm.xlu1 %2964, %v2522_v53   ;;  %2606 = vperm.xlu0 %2963, %v2521_v50   ;;  %v5514_v53 = vsel %vm672_vm12, %v5322_v0, %v5186_v21  ;;  %v7802_v50 = vld [vmem:[#allocation74_spill] sm:$0xff]  ;;  %v5528_v30 = vsel %vm674_vm14, %v5322_v0, %v5194_v29  ;;  %vm680_vm6 = vcmp.eq.s32.totalorder %v7806_v42, 1  ;;  %v7813_v39 = vld [vmem:[#allocation81_spill] sm:$0xff] }
 0x2c9   :  { %vm678_vm4 = vcmp.eq.s32.totalorder %v7802_v50, 1  ;;  %v5532_v21 = vsel %vm673_vm15, %v5322_v0, %v5197_v8  ;;  %vm679_vm7 = vcmp.eq.s32.totalorder %v7807_v26, 1  ;;  %v5540_v50 = vsel %vm676_vm0, %v5322_v0, %v5218_v13  ;;  %v7814_v42 = vld [vmem:[#allocation82_spill] sm:$0xff]  ;;  %v7817_v26 = vld [vmem:[#allocation85_spill] sm:$0xff] }
 0x2ca   :  { %v5546_v29 = vsel %vm675_vm1, %v5322_v0, %v5221_v63  ;;  %v2526_v8 = vsel %vm2474_vm2, 1, %v7698_v54  ;;  %v5560_v13 = vsel %vm677_vm5, %v5322_v0, %v5229_v59  ;;  %vm2476_vm8 = vcmp.eq.s32.totalorder %v4831_v48, 7  ;;  %v7808_v63 = vld [vmem:[#allocation78_spill] sm:$0xff] }
 0x2cb   :  { %v5522_v14 = vpop.permute.xlu1 %2226  ;;  %v5524_v61 = vpop.permute.xlu0 %2223  ;;  %vm2475_vm9 = vcmp.eq.s32.totalorder %v4837_v47, 7  ;;  %v5566_v44 = vsel %vm680_vm6, %v5322_v0, %v5232_v60  ;;  %v5570_v43 = vsel %vm679_vm7, %v5322_v0, %v5235_v11  ;;  %vm682_vm10 = vcmp.eq.s32.totalorder %v7808_v63, 1  ;;  %v7815_v60 = vld [vmem:[#allocation83_spill] sm:$0xff]  ;;  %v7816_v11 = vld [vmem:[#allocation84_spill] sm:$0xff]  ;;  %v7839_v2 = vld [vmem:[#allocation22_spill] sm:$0xff] }
 0x2cc   :  { %7804 = vst [vmem:[#allocation35_spill] sm:$0xff] %v5522_v14  ;;  %7805 = vst [vmem:[#allocation36_spill] sm:$0xff] %v5524_v61  ;;  %2615 = vperm.xlu1 %2964, %v2524_v1   ;;  %2612 = vperm.xlu0 %2963, %v2523_v34   ;;  %v2525_v1 = vsel %vm2473_vm3, 1, %v7698_v54  ;;  %v5556_v34 = vsel %vm678_vm4, %v5322_v0, %v5226_v5  ;;  %v7809_v5 = vld [vmem:[#allocation79_spill] sm:$0xff]  ;;  %vm684_vm12 = vcmp.eq.s32.totalorder %v7812_v37, 1  ;;  %vm683_vm13 = vcmp.eq.s32.totalorder %v7813_v39, 1 }
 0x2cd   :  { %vm681_vm11 = vcmp.eq.s32.totalorder %v7809_v5, 1  ;;  %vm686_vm14 = vcmp.eq.s32.totalorder %v7814_v42, 1  ;;  %vm685_vm15 = vcmp.eq.s32.totalorder %v7815_v60, 1  ;;  %vm688_vm0 = vcmp.eq.s32.totalorder %v7816_v11, 1  ;;  %v7818_v39 = vld [vmem:[#allocation15_spill] sm:$0xff]  ;;  %v7821_v60 = vld [vmem:[#allocation16_spill] sm:$0xff] }
 0x2ce   :  { %vm687_vm1 = vcmp.eq.s32.totalorder %v7817_v26, 1  ;;  %v2528_v63 = vsel %vm2476_vm8, 1, %v7698_v54  ;;  %v2527_v5 = vsel %vm2475_vm9, 1, %v7698_v54  ;;  %v5592_v37 = vsel %vm682_vm10, %v5322_v0, %v5242_v18  ;;  %v7820_v42 = vld [vmem:[#allocation247_spill] sm:$0xff]  ;;  %v7828_v61 = vld [vmem:[#allocation89_spill] sm:$0xff] }
 0x2cf   :  { %v5574_v58 = vpop.permute.xlu1 %2232  ;;  %v5576_v59 = vpop.permute.xlu0 %2229  ;;  %vm2477_vm3 = vcmp.eq.s32.totalorder %v7820_v42, 7  ;;  %v5602_v48 = vsel %vm684_vm12, %v5322_v0, %v7821_v60  ;;  %v5606_v47 = vsel %vm683_vm13, %v5322_v0, %v5265_v56  ;;  %v5610_v18 = vsel %vm686_vm14, %v5322_v0, %v5274_v41  ;;  %v7826_v41 = vld [vmem:[#allocation87_spill] sm:$0xff]  ;;  %v7836_v42 = vld [vmem:[#allocation93_spill] sm:$0xff] }
 0x2d0   :  { %7810 = vst [vmem:[#allocation37_spill] sm:$0xff] %v5574_v58  ;;  %7811 = vst [vmem:[#allocation38_spill] sm:$0xff] %v5576_v59  ;;  %2621 = vperm.xlu1 %2964, %v2526_v8   ;;  %2618 = vperm.xlu0 %2963, %v2525_v1   ;;  %v5596_v8 = vsel %vm681_vm11, %v5322_v0, %v7818_v39  ;;  %v7819_v1 = vld [vmem:[#allocation246_spill] sm:$0xff]  ;;  %v5614_v11 = vsel %vm685_vm15, %v5322_v0, %v5277_v10  ;;  %v7824_v59 = vld [vmem:[#allocation19_spill] sm:$0xff]  ;;  %vm689_vm5 = vcmp.eq.s32.totalorder %v7826_v41, 1 }
 0x2d1   :  { %vm2478_vm2 = vcmp.eq.s32.totalorder %v7819_v1, 7  ;;  %v5622_v60 = vsel %vm688_vm0, %v5322_v0, %v5284_v16  ;;  %v5626_v56 = vsel %vm687_vm1, %v5322_v0, %v7824_v59  ;;  %v7825_v58 = vld [vmem:[#allocation86_spill] sm:$0xff]  ;;  %v7827_v10 = vld [vmem:[#allocation88_spill] sm:$0xff]  ;;  %vm691_vm7 = vcmp.eq.s32.totalorder %v7828_v61, 1  ;;  %v7834_v61 = vld [vmem:[#allocation21_spill] sm:$0xff] }
 0x2d2   :  { %vm690_vm4 = vcmp.eq.s32.totalorder %v7825_v58, 1  ;;  %vm692_vm6 = vcmp.eq.s32.totalorder %v7827_v10, 1  ;;  %v2529_v16 = vsel %vm2477_vm3, 1, %v7698_v54  ;;  %v7829_v59 = vld [vmem:[#allocation90_spill] sm:$0xff]  ;;  %v5648_v1 = vsel %vm689_vm5, %v5322_v0, %v7834_v61  ;;  %v7835_v10 = vld [vmem:[#allocation92_spill] sm:$0xff] }
 0x2d3   :  { %v5616_v26 = vpop.permute.xlu1 %2238  ;;  %v5618_v39 = vpop.permute.xlu0 %2235  ;;  %vm694_vm8 = vcmp.eq.s32.totalorder %v7829_v59, 1  ;;  %v7831_v58 = vld [vmem:[#allocation250_spill] sm:$0xff]  ;;  %vm696_vm12 = vcmp.eq.s32.totalorder %v7835_v10, 1  ;;  %vm695_vm13 = vcmp.eq.s32.totalorder %v7836_v42, 1  ;;  %v5658_v45 = vsel %vm692_vm6, %v5322_v0, %v7839_v2  ;;  %v5667_v61 = vld [vmem:[%s7243_s2 + $0x2] ss:$0 sm:$0xff] }
 0x2d4   :  { %7822 = vst [vmem:[#allocation39_spill] sm:$0xff] %v5616_v26  ;;  %7823 = vst [vmem:[#allocation40_spill] sm:$0xff] %v5618_v39  ;;  %2627 = vperm.xlu1 %2964, %v2528_v63   ;;  %2624 = vperm.xlu0 %2963, %v2527_v5   ;;  %v2530_v39 = vsel %vm2478_vm2, 1, %v7698_v54  ;;  %v7830_v26 = vld [vmem:[#allocation91_spill] sm:$0xff]  ;;  %vm2480_vm10 = vcmp.eq.s32.totalorder %v7831_v58, 7  ;;  %v7833_v5 = vld [vmem:[#allocation20_spill] sm:$0xff]  ;;  %v5675_v2 = vsel %vm694_vm8, %v5322_v0, %v5335_v15 }
 0x2d5   :  { %vm693_vm9 = vcmp.eq.s32.totalorder %v7830_v26, 1  ;;  %v7832_v63 = vld [vmem:[#allocation251_spill] sm:$0xff]  ;;  %v5644_v41 = vsel %vm690_vm4, %v5322_v0, %v7833_v5  ;;  %v5662_v5 = vsel %vm691_vm7, %v5322_v0, %v7840_v20  ;;  %v7841_v10 = vld [vmem:[#allocation94_spill] sm:$0xff]  ;;  %v5695_v15 = vsel %vm695_vm13, %v5322_v0, %v5346_v24 }
 0x2d6   :  { %vm2479_vm11 = vcmp.eq.s32.totalorder %v7832_v63, 7  ;;  %vm991_vm14 = vcmp.eq.s32.totalorder %v7841_v10, 1  ;;  %v7842_v42 = vld [vmem:[#allocation95_spill] sm:$0xff]  ;;  %v5681_v20 = vsel %vm693_vm9, %v5322_v0, %v5338_v52  ;;  %v2532_v10 = vsel %vm2480_vm10, 1, %v7698_v54  ;;  %v7843_v59 = vld [vmem:[#allocation254_spill] sm:$0xff] }
 0x2d7   :  { %v5652_v14 = vpop.permute.xlu1 %2244  ;;  %v5654_v27 = vpop.permute.xlu0 %2241  ;;  %vm990_vm15 = vcmp.eq.s32.totalorder %v7842_v42, 1  ;;  %vm2482_vm0 = vcmp.eq.s32.totalorder %v7843_v59, 7  ;;  %v7844_v52 = vld [vmem:[#allocation255_spill] sm:$0xff]  ;;  %v5701_v26 = vsel %vm991_vm14, %v5667_v61, %v5350_v23  ;;  %v7845_v58 = vld [vmem:[#allocation26_spill] sm:$0xff]  ;;  %v7846_v42 = vld [vmem:[#allocation96_spill] sm:$0xff]  ;;  %vm997_vm6 = vcmp.eq.s32.totalorder %v7852_v7, 1 }
 0x2d8   :  { %7837 = vst [vmem:[#allocation41_spill] sm:$0xff] %v5652_v14  ;;  %7838 = vst [vmem:[#allocation42_spill] sm:$0xff] %v5654_v27  ;;  %2633 = vperm.xlu1 %2964, %v2530_v39   ;;  %2630 = vperm.xlu0 %2963, %v2529_v16   ;;  %v2531_v39 = vsel %vm2479_vm11, 1, %v7698_v54  ;;  %v5691_v16 = vsel %vm696_vm12, %v5322_v0, %v5343_v33  ;;  %vm2481_vm1 = vcmp.eq.s32.totalorder %v7844_v52, 7  ;;  %vm993_vm2 = vcmp.eq.s32.totalorder %v7846_v42, 1  ;;  %v7847_v33 = vld [vmem:[#allocation97_spill] sm:$0xff] }
 0x2d9   :  { %v5705_v63 = vsel %vm990_vm15, %v5667_v61, %v7845_v58  ;;  %vm992_vm3 = vcmp.eq.s32.totalorder %v7847_v33, 1  ;;  %v7850_v24 = vld [vmem:[#allocation98_spill] sm:$0xff]  ;;  %v7851_v14 = vld [vmem:[#allocation99_spill] sm:$0xff]  ;;  %v7853_v23 = vld [vmem:[#allocation101_spill] sm:$0xff]  ;;  %vm998_vm9 = vcmp.eq.s32.totalorder %v7855_v51, 1  ;;  %v2534_v42 = vsel %vm2482_vm0, 1, %v7698_v54 }
 0x2da   :  { %vm995_vm4 = vcmp.eq.s32.totalorder %v7850_v24, 1  ;;  %vm994_vm5 = vcmp.eq.s32.totalorder %v7851_v14, 1  ;;  %vm996_vm7 = vcmp.eq.s32.totalorder %v7853_v23, 1  ;;  %v7854_v58 = vld [vmem:[#allocation102_spill] sm:$0xff]  ;;  %v2533_v33 = vsel %vm2481_vm1, 1, %v7698_v54  ;;  %v7860_v23 = vld [vmem:[#allocation104_spill] sm:$0xff] }
 0x2db   :  { %v5709_v27 = vpop.permute.xlu1 %2250  ;;  %v5711_v0 = vpop.permute.xlu0 %2247  ;;  %vm999_vm8 = vcmp.eq.s32.totalorder %v7854_v58, 1  ;;  %v5727_v14 = vsel %vm993_vm2, %v5667_v61, %v5362_v19  ;;  %v5731_v7 = vsel %vm992_vm3, %v5667_v61, %v5366_v3  ;;  %v5737_v51 = vsel %vm995_vm4, %v5667_v61, %v5384_v55  ;;  %v7863_v58 = vld [vmem:[#allocation107_spill] sm:$0xff] }
 0x2dc   :  { %7848 = vst [vmem:[#allocation43_spill] sm:$0xff] %v5709_v27  ;;  %7849 = vst [vmem:[#allocation44_spill] sm:$0xff] %v5711_v0  ;;  %2639 = vperm.xlu1 %2964, %v2532_v10   ;;  %2636 = vperm.xlu0 %2963, %v2531_v39   ;;  %v7856_v10 = vld [vmem:[#allocation258_spill] sm:$0xff]  ;;  %v7857_v39 = vld [vmem:[#allocation259_spill] sm:$0xff]  ;;  %v5741_v59 = vsel %vm994_vm5, %v5667_v61, %v5388_v28  ;;  %v5745_v19 = vsel %vm997_vm6, %v5667_v61, %v5398_v6  ;;  %vm1001_vm12 = vcmp.eq.s32.totalorder %v7860_v23, 1 }
 0x2dd   :  { %vm2484_vm10 = vcmp.eq.s32.totalorder %v7856_v10, 7  ;;  %vm2483_vm11 = vcmp.eq.s32.totalorder %v7857_v39, 7  ;;  %v5749_v3 = vsel %vm996_vm7, %v5667_v61, %v5402_v17  ;;  %v5757_v55 = vsel %vm999_vm8, %v5667_v61, %v5410_v12  ;;  %v7861_v6 = vld [vmem:[#allocation105_spill] sm:$0xff]  ;;  %v7862_v17 = vld [vmem:[#allocation106_spill] sm:$0xff]  ;;  %v7869_v39 = vld [vmem:[#allocation111_spill] sm:$0xff] }
 0x2de   :  { %v5761_v28 = vsel %vm998_vm9, %v5667_v61, %v5416_v46  ;;  %vm1000_vm13 = vcmp.eq.s32.totalorder %v7861_v6, 1  ;;  %vm1003_vm14 = vcmp.eq.s32.totalorder %v7862_v17, 1  ;;  %vm1002_vm15 = vcmp.eq.s32.totalorder %v7863_v58, 1  ;;  %v7864_v46 = vld [vmem:[#allocation108_spill] sm:$0xff]  ;;  %v7866_v23 = vld [vmem:[#allocation262_spill] sm:$0xff] }
 0x2df   :  { %v5751_v52 = vpop.permute.xlu1 %2256  ;;  %v5753_v24 = vpop.permute.xlu0 %2253  ;;  %v2535_v12 = vsel %vm2483_vm11, 1, %v7698_v54  ;;  %vm1005_vm0 = vcmp.eq.s32.totalorder %v7864_v46, 1  ;;  %vm2486_vm2 = vcmp.eq.s32.totalorder %v7866_v23, 7  ;;  %v5783_v10 = vsel %vm1000_vm13, %v5667_v61, %v5430_v25  ;;  %v7868_v6 = vld [vmem:[#allocation110_spill] sm:$0xff]  ;;  %v7872_v27 = vld [vmem:[#allocation112_spill] sm:$0xff]  ;;  %v7873_v25 = vld [vmem:[#allocation113_spill] sm:$0xff] }
 0x2e0   :  { %7858 = vst [vmem:[#allocation45_spill] sm:$0xff] %v5751_v52  ;;  %7859 = vst [vmem:[#allocation46_spill] sm:$0xff] %v5753_v24  ;;  %2645 = vperm.xlu1 %2964, %v2534_v42   ;;  %2642 = vperm.xlu0 %2963, %v2533_v33   ;;  %v2536_v24 = vsel %vm2484_vm10, 1, %v7698_v54  ;;  %v7865_v52 = vld [vmem:[#allocation109_spill] sm:$0xff]  ;;  %v7867_v42 = vld [vmem:[#allocation263_spill] sm:$0xff]  ;;  %v5779_v33 = vsel %vm1001_vm12, %v5667_v61, %v5426_v62  ;;  %vm1007_vm4 = vcmp.eq.s32.totalorder %v7868_v6, 1 }
 0x2e1   :  { %vm1004_vm1 = vcmp.eq.s32.totalorder %v7865_v52, 1  ;;  %vm2485_vm3 = vcmp.eq.s32.totalorder %v7867_v42, 7  ;;  %vm1006_vm5 = vcmp.eq.s32.totalorder %v7869_v39, 1  ;;  %v5793_v0 = vsel %vm1003_vm14, %v5667_v61, %v5436_v32  ;;  %v7876_v23 = vld [vmem:[#allocation114_spill] sm:$0xff]  ;;  %v7880_v39 = vld [vmem:[#allocation116_spill] sm:$0xff] }
 0x2e2   :  { %v5797_v62 = vsel %vm1002_vm15, %v5667_v61, %v5440_v31  ;;  %vm1009_vm6 = vcmp.eq.s32.totalorder %v7872_v27, 1  ;;  %vm1008_vm7 = vcmp.eq.s32.totalorder %v7873_v25, 1  ;;  %v5805_v6 = vsel %vm1005_vm0, %v5667_v61, %v5462_v9  ;;  %v7881_v25 = vld [vmem:[#allocation117_spill] sm:$0xff] }
 0x2e3   :  { %v5787_v17 = vpop.permute.xlu1 %2262  ;;  %v5789_v58 = vpop.permute.xlu0 %2259  ;;  %v5811_v32 = vsel %vm1004_vm1, %v5667_v61, %v5466_v49  ;;  %v2538_v31 = vsel %vm2486_vm2, 1, %v7698_v54  ;;  %v2537_v27 = vsel %vm2485_vm3, 1, %v7698_v54  ;;  %v5825_v9 = vsel %vm1006_vm5, %v5667_v61, %v5476_v35  ;;  %v7875_v49 = vld [vmem:[#allocation267_spill] sm:$0xff] }
 0x2e4   :  { %7870 = vst [vmem:[#allocation47_spill] sm:$0xff] %v5787_v17  ;;  %7871 = vst [vmem:[#allocation48_spill] sm:$0xff] %v5789_v58  ;;  %2651 = vperm.xlu1 %2964, %v2536_v24   ;;  %2648 = vperm.xlu0 %2963, %v2535_v12   ;;  %v5821_v24 = vsel %vm1007_vm4, %v5667_v61, %v5472_v36  ;;  %v7874_v12 = vld [vmem:[#allocation266_spill] sm:$0xff]  ;;  %vm2487_vm9 = vcmp.eq.s32.totalorder %v7875_v49, 7  ;;  %v5831_v52 = vsel %vm1009_vm6, %v5667_v61, %v5480_v38  ;;  %v7877_v36 = vld [vmem:[#allocation115_spill] sm:$0xff] }
 0x2e5   :  { %vm2488_vm8 = vcmp.eq.s32.totalorder %v7874_v12, 7  ;;  %v5835_v46 = vsel %vm1008_vm7, %v5667_v61, %v5484_v4  ;;  %vm1011_vm10 = vcmp.eq.s32.totalorder %v7876_v23, 1  ;;  %vm1010_vm11 = vcmp.eq.s32.totalorder %v7877_v36, 1  ;;  %v7882_v58 = vld [vmem:[#allocation118_spill] sm:$0xff]  ;;  %v7883_v38 = vld [vmem:[#allocation119_spill] sm:$0xff]  ;;  %v7884_v4 = vld [vmem:[#allocation120_spill] sm:$0xff] }
 0x2e6   :  { %vm1013_vm12 = vcmp.eq.s32.totalorder %v7880_v39, 1  ;;  %vm1012_vm13 = vcmp.eq.s32.totalorder %v7881_v25, 1  ;;  %vm1015_vm14 = vcmp.eq.s32.totalorder %v7882_v58, 1  ;;  %vm1014_vm15 = vcmp.eq.s32.totalorder %v7883_v38, 1  ;;  %v7885_v17 = vld [vmem:[#allocation121_spill] sm:$0xff]  ;;  %v7890_v38 = vld [vmem:[#allocation122_spill] sm:$0xff] }
 0x2e7   :  { %v5839_v42 = vpop.permute.xlu1 %2268  ;;  %v5841_v35 = vpop.permute.xlu0 %2265  ;;  %vm1017_vm0 = vcmp.eq.s32.totalorder %v7884_v4, 1  ;;  %vm1016_vm1 = vcmp.eq.s32.totalorder %v7885_v17, 1  ;;  %v2540_v23 = vsel %vm2488_vm8, 1, %v7698_v54  ;;  %v2539_v36 = vsel %vm2487_vm9, 1, %v7698_v54  ;;  %v7893_v4 = vld [vmem:[#allocation125_spill] sm:$0xff] }
 0x2e8   :  { %7878 = vst [vmem:[#allocation49_spill] sm:$0xff] %v5839_v42  ;;  %7879 = vst [vmem:[#allocation50_spill] sm:$0xff] %v5841_v35  ;;  %2657 = vperm.xlu1 %2964, %v2538_v31   ;;  %2654 = vperm.xlu0 %2963, %v2537_v27   ;;  %v5857_v39 = vsel %vm1011_vm10, %v5667_v61, %v5492_v22  ;;  %v5861_v58 = vsel %vm1010_vm11, %v5667_v61, %v5496_v57  ;;  %v7886_v31 = vld [vmem:[#allocation270_spill] sm:$0xff]  ;;  %v7887_v27 = vld [vmem:[#allocation271_spill] sm:$0xff]  ;;  %vm1019_vm4 = vcmp.eq.s32.totalorder %v7890_v38, 1 }
 0x2e9   :  { %vm2490_vm2 = vcmp.eq.s32.totalorder %v7886_v31, 7  ;;  %vm2489_vm3 = vcmp.eq.s32.totalorder %v7887_v27, 7  ;;  %v5867_v17 = vsel %vm1013_vm12, %v5667_v61, %v5514_v53  ;;  %v5871_v12 = vsel %vm1012_vm13, %v5667_v61, %v5518_v40  ;;  %v7896_v38 = vld [vmem:[#allocation274_spill] sm:$0xff]  ;;  %v7899_v27 = vld [vmem:[#allocation129_spill] sm:$0xff] }
 0x2ea   :  { %v5875_v22 = vsel %vm1015_vm14, %v5667_v61, %v5528_v30  ;;  %v5879_v57 = vsel %vm1014_vm15, %v5667_v61, %v5532_v21  ;;  %v5887_v53 = vsel %vm1017_vm0, %v5667_v61, %v5540_v50  ;;  %v5891_v40 = vsel %vm1016_vm1, %v5667_v61, %v5546_v29  ;;  %v7891_v30 = vld [vmem:[#allocation123_spill] sm:$0xff]  ;;  %v7892_v21 = vld [vmem:[#allocation124_spill] sm:$0xff]  ;;  %v7894_v29 = vld [vmem:[#allocation126_spill] sm:$0xff] }
 0x2eb   :  { %v5881_v49 = vpop.permute.xlu1 %2274  ;;  %v5883_v25 = vpop.permute.xlu0 %2271  ;;  %vm1018_vm5 = vcmp.eq.s32.totalorder %v7891_v30, 1  ;;  %vm1021_vm6 = vcmp.eq.s32.totalorder %v7892_v21, 1  ;;  %vm1020_vm7 = vcmp.eq.s32.totalorder %v7893_v4, 1  ;;  %v2541_v50 = vsel %vm2489_vm3, 1, %v7698_v54  ;;  %v7898_v30 = vld [vmem:[#allocation128_spill] sm:$0xff]  ;;  %v7902_v42 = vld [vmem:[#allocation130_spill] sm:$0xff] }
 0x2ec   :  { %7888 = vst [vmem:[#allocation51_spill] sm:$0xff] %v5881_v49  ;;  %7889 = vst [vmem:[#allocation52_spill] sm:$0xff] %v5883_v25  ;;  %2663 = vperm.xlu1 %2964, %v2540_v23   ;;  %2660 = vperm.xlu0 %2963, %v2539_v36   ;;  %v2542_v25 = vsel %vm2490_vm2, 1, %v7698_v54  ;;  %vm1023_vm8 = vcmp.eq.s32.totalorder %v7894_v29, 1  ;;  %v7895_v49 = vld [vmem:[#allocation127_spill] sm:$0xff]  ;;  %vm2492_vm10 = vcmp.eq.s32.totalorder %v7896_v38, 7  ;;  %v5909_v36 = vsel %vm1019_vm4, %v5667_v61, %v5556_v34 }
 0x2ed   :  { %vm1022_vm9 = vcmp.eq.s32.totalorder %v7895_v49, 1  ;;  %v7897_v23 = vld [vmem:[#allocation275_spill] sm:$0xff]  ;;  %v5913_v31 = vsel %vm1018_vm5, %v5667_v61, %v5560_v13  ;;  %vm1025_vm12 = vcmp.eq.s32.totalorder %v7898_v30, 1  ;;  %vm1024_vm13 = vcmp.eq.s32.totalorder %v7899_v27, 1  ;;  %v7906_v38 = vld [vmem:[#allocation132_spill] sm:$0xff]  ;;  %v7910_v27 = vld [vmem:[#allocation134_spill] sm:$0xff] }
 0x2ee   :  { %vm2491_vm11 = vcmp.eq.s32.totalorder %v7897_v23, 7  ;;  %v5923_v35 = vsel %vm1021_vm6, %v5667_v61, %v5566_v44  ;;  %v5927_v34 = vsel %vm1020_vm7, %v5667_v61, %v5570_v43  ;;  %vm1027_vm14 = vcmp.eq.s32.totalorder %v7902_v42, 1  ;;  %v7903_v13 = vld [vmem:[#allocation131_spill] sm:$0xff] }
 0x2ef   :  { %v5917_v21 = vpop.permute.xlu1 %2280  ;;  %v5919_v4 = vpop.permute.xlu0 %2277  ;;  %vm1026_vm15 = vcmp.eq.s32.totalorder %v7903_v13, 1  ;;  %v5935_v30 = vsel %vm1023_vm8, %v5667_v61, %v5592_v37  ;;  %v5941_v44 = vsel %vm1022_vm9, %v5667_v61, %v5596_v8  ;;  %v2544_v43 = vsel %vm2492_vm10, 1, %v7698_v54  ;;  %v7905_v8 = vld [vmem:[#allocation279_spill] sm:$0xff] }
 0x2f0   :  { %7900 = vst [vmem:[#allocation53_spill] sm:$0xff] %v5917_v21  ;;  %7901 = vst [vmem:[#allocation54_spill] sm:$0xff] %v5919_v4  ;;  %2669 = vperm.xlu1 %2964, %v2542_v25   ;;  %2666 = vperm.xlu0 %2963, %v2541_v50   ;;  %v2543_v42 = vsel %vm2491_vm11, 1, %v7698_v54  ;;  %v5951_v25 = vsel %vm1025_vm12, %v5667_v61, %v5602_v48  ;;  %v5955_v37 = vsel %vm1024_vm13, %v5667_v61, %v5606_v47  ;;  %v7904_v50 = vld [vmem:[#allocation278_spill] sm:$0xff]  ;;  %v7907_v48 = vld [vmem:[#allocation133_spill] sm:$0xff] }
 0x2f1   :  { %vm2494_vm0 = vcmp.eq.s32.totalorder %v7904_v50, 7  ;;  %vm2493_vm1 = vcmp.eq.s32.totalorder %v7905_v8, 7  ;;  %v5961_v49 = vsel %vm1027_vm14, %v5667_v61, %v5610_v18  ;;  %v5965_v29 = vsel %vm1026_vm15, %v5667_v61, %v5614_v11  ;;  %v7911_v13 = vld [vmem:[#allocation135_spill] sm:$0xff]  ;;  %v7912_v4 = vld [vmem:[#allocation136_spill] sm:$0xff]  ;;  %v7913_v18 = vld [vmem:[#allocation137_spill] sm:$0xff] }
 0x2f2   :  { %vm1029_vm2 = vcmp.eq.s32.totalorder %v7906_v38, 1  ;;  %vm1028_vm3 = vcmp.eq.s32.totalorder %v7907_v48, 1  ;;  %vm1031_vm4 = vcmp.eq.s32.totalorder %v7910_v27, 1  ;;  %vm1030_vm5 = vcmp.eq.s32.totalorder %v7911_v13, 1  ;;  %v7914_v11 = vld [vmem:[#allocation138_spill] sm:$0xff]  ;;  %v7915_v21 = vld [vmem:[#allocation139_spill] sm:$0xff] }
 0x2f3   :  { %v5969_v23 = vpop.permute.xlu1 %2286  ;;  %v5971_v47 = vpop.permute.xlu0 %2283  ;;  %vm1033_vm6 = vcmp.eq.s32.totalorder %v7912_v4, 1  ;;  %vm1032_vm7 = vcmp.eq.s32.totalorder %v7913_v18, 1  ;;  %vm1035_vm8 = vcmp.eq.s32.totalorder %v7914_v11, 1  ;;  %vm1034_vm9 = vcmp.eq.s32.totalorder %v7915_v21, 1  ;;  %v7920_v18 = vld [vmem:[#allocation140_spill] sm:$0xff]  ;;  %v7922_v11 = vld [vmem:[#allocation142_spill] sm:$0xff] }
 0x2f4   :  { %7908 = vst [vmem:[#allocation55_spill] sm:$0xff] %v5969_v23  ;;  %7909 = vst [vmem:[#allocation56_spill] sm:$0xff] %v5971_v47  ;;  %2675 = vperm.xlu1 %2964, %v2544_v43   ;;  %2672 = vperm.xlu0 %2963, %v2543_v42   ;;  %v2546_v38 = vsel %vm2494_vm0, 1, %v7698_v54  ;;  %v2545_v48 = vsel %vm2493_vm1, 1, %v7698_v54  ;;  %v5987_v27 = vsel %vm1029_vm2, %v5667_v61, %v5622_v60  ;;  %v7916_v43 = vld [vmem:[#allocation282_spill] sm:$0xff]  ;;  %v7917_v42 = vld [vmem:[#allocation283_spill] sm:$0xff] }
 0x2f5   :  { %v5991_v4 = vsel %vm1028_vm3, %v5667_v61, %v5626_v56  ;;  %vm2496_vm10 = vcmp.eq.s32.totalorder %v7916_v43, 7  ;;  %vm2495_vm11 = vcmp.eq.s32.totalorder %v7917_v42, 7  ;;  %v5997_v21 = vsel %vm1031_vm4, %v5667_v61, %v5644_v41  ;;  %v7930_v42 = vld [vmem:[#allocation147_spill] sm:$0xff] }
 0x2f6   :  { %v6001_v50 = vsel %vm1030_vm5, %v5667_v61, %v5648_v1  ;;  %v6005_v60 = vsel %vm1033_vm6, %v5667_v61, %v5658_v45  ;;  %v6009_v56 = vsel %vm1032_vm7, %v5667_v61, %v5662_v5  ;;  %v6017_v41 = vsel %vm1035_vm8, %v5667_v61, %v5675_v2  ;;  %v7921_v45 = vld [vmem:[#allocation141_spill] sm:$0xff] }
 0x2f7   :  { %v6011_v8 = vpop.permute.xlu1 %2292  ;;  %v6013_v13 = vpop.permute.xlu0 %2289  ;;  %v6021_v1 = vsel %vm1034_vm9, %v5667_v61, %v5681_v20  ;;  %vm1037_vm12 = vcmp.eq.s32.totalorder %v7920_v18, 1  ;;  %vm1036_vm13 = vcmp.eq.s32.totalorder %v7921_v45, 1  ;;  %v6028_v5 = vld [vmem:[%s7243_s2 + $0x3] ss:$0 sm:$0xff]  ;;  %vm1332_vm14 = vcmp.eq.s32.totalorder %v7922_v11, 1  ;;  %v7924_v18 = vld [vmem:[#allocation144_spill] sm:$0xff] }
 0x2f8   :  { %7918 = vst [vmem:[#allocation57_spill] sm:$0xff] %v6011_v8  ;;  %7919 = vst [vmem:[#allocation58_spill] sm:$0xff] %v6013_v13  ;;  %2681 = vperm.xlu1 %2964, %v2546_v38   ;;  %2678 = vperm.xlu0 %2963, %v2545_v48   ;;  %v7923_v13 = vld [vmem:[#allocation143_spill] sm:$0xff]  ;;  %v2548_v2 = vsel %vm2496_vm10, 1, %v7698_v54  ;;  %v2547_v20 = vsel %vm2495_vm11, 1, %v7698_v54  ;;  %vm1334_vm0 = vcmp.eq.s32.totalorder %v7924_v18, 1  ;;  %v6044_v11 = vsel %vm1037_vm12, %v5667_v61, %v5691_v16 }
 0x2f9   :  { %vm1331_vm15 = vcmp.eq.s32.totalorder %v7923_v13, 1  ;;  %v7925_v38 = vld [vmem:[#allocation145_spill] sm:$0xff]  ;;  %v7926_v48 = vld [vmem:[#allocation286_spill] sm:$0xff]  ;;  %v7927_v45 = vld [vmem:[#allocation287_spill] sm:$0xff]  ;;  %7928 = vst [vmem:[#allocation59_spill] sm:$0xff] %v6044_v11  ;;  %v6048_v43 = vsel %vm1036_vm13, %v5667_v61, %v5695_v15  ;;  %vm1335_vm5 = vcmp.eq.s32.totalorder %v7930_v42, 1  ;;  %v6058_v23 = vsel %vm1332_vm14, %v6028_v5, %v5701_v26 }
 0x2fa   :  { %vm1333_vm1 = vcmp.eq.s32.totalorder %v7925_v38, 1  ;;  %vm2498_vm2 = vcmp.eq.s32.totalorder %v7926_v48, 7  ;;  %vm2497_vm3 = vcmp.eq.s32.totalorder %v7927_v45, 7  ;;  %v7929_v13 = vld [vmem:[#allocation146_spill] sm:$0xff]  ;;  %v6062_v16 = vsel %vm1331_vm15, %v6028_v5, %v5705_v63  ;;  %v7931_v11 = vld [vmem:[#allocation148_spill] sm:$0xff]  ;;  %v7932_v61 = vld [vmem:[#allocation149_spill] sm:$0xff] }
 0x2fb   :  { %vm1336_vm4 = vcmp.eq.s32.totalorder %v7929_v13, 1  ;;  %v6052_v8 = vpop.permute.xlu1 %2298  ;;  %v6054_v47 = vpop.permute.xlu0 %2295  ;;  %vm1338_vm6 = vcmp.eq.s32.totalorder %v7931_v11, 1  ;;  %vm1337_vm7 = vcmp.eq.s32.totalorder %v7932_v61, 1  ;;  %v6070_v15 = vsel %vm1334_vm0, %v6028_v5, %v5727_v14  ;;  %v7933_v18 = vld [vmem:[#allocation150_spill] sm:$0xff]  ;;  %v7938_v13 = vld [vmem:[#allocation155_spill] sm:$0xff]  ;;  %v7939_v42 = vld [vmem:[#allocation156_spill] sm:$0xff] }
 0x2fc   :  { %2687 = vperm.xlu1 %2964, %v2548_v2   ;;  %2684 = vperm.xlu0 %2963, %v2547_v20   ;;  %v6076_v26 = vsel %vm1333_vm1, %v6028_v5, %v5731_v7  ;;  %v2550_v63 = vsel %vm2498_vm2, 1, %v7698_v54  ;;  %v2549_v2 = vsel %vm2497_vm3, 1, %v7698_v54  ;;  %v6086_v20 = vsel %vm1336_vm4, %v6028_v5, %v5737_v51  ;;  %v7934_v7 = vld [vmem:[#allocation151_spill] sm:$0xff]  ;;  %v7935_v54 = vld [vmem:[#allocation152_spill] sm:$0xff]  ;;  %v7936_v51 = vld [vmem:[#allocation153_spill] sm:$0xff] }
 0x2fd   :  { %v6090_v14 = vsel %vm1335_vm5, %v6028_v5, %v5741_v59  ;;  %vm1340_vm8 = vcmp.eq.s32.totalorder %v7933_v18, 1  ;;  %vm1339_vm9 = vcmp.eq.s32.totalorder %v7934_v7, 1  ;;  %v6096_v38 = vsel %vm1338_vm6, %v6028_v5, %v5745_v19  ;;  %v7937_v11 = vld [vmem:[#allocation154_spill] sm:$0xff]  ;;  %v7940_v19 = vld [vmem:[#allocation157_spill] sm:$0xff]  ;;  %v7942_v7 = vld [vmem:[#allocation159_spill] sm:$0xff] }
 0x2fe   :  { %v6100_v48 = vsel %vm1337_vm7, %v6028_v5, %v5749_v3  ;;  %vm1342_vm10 = vcmp.eq.s32.totalorder %v7935_v54, 1  ;;  %vm1341_vm11 = vcmp.eq.s32.totalorder %v7936_v51, 1  ;;  %vm1344_vm12 = vcmp.eq.s32.totalorder %v7937_v11, 1  ;;  %v7941_v18 = vld [vmem:[#allocation158_spill] sm:$0xff] }
 0x2ff   :  { %v6104_v45 = vpop.permute.xlu1 %2304  ;;  %v6106_v59 = vpop.permute.xlu0 %2301  ;;  %vm1343_vm13 = vcmp.eq.s32.totalorder %v7938_v13, 1  ;;  %vm1346_vm14 = vcmp.eq.s32.totalorder %v7939_v42, 1  ;;  %vm1345_vm15 = vcmp.eq.s32.totalorder %v7940_v19, 1  ;;  %v6114_v3 = vsel %vm1340_vm8, %v6028_v5, %v5757_v55  ;;  %v7944_v55 = vld [vmem:[#allocation161_spill] sm:$0xff]  ;;  %v7945_v42 = vld [vmem:[#allocation162_spill] sm:$0xff] }
 0x300   :  { %2693 = vperm.xlu1 %2964, %v2550_v63   ;;  %2690 = vperm.xlu0 %2963, %v2549_v2   ;;  %v6118_v61 = vsel %vm1339_vm9, %v6028_v5, %v5761_v28  ;;  %vm1348_vm0 = vcmp.eq.s32.totalorder %v7941_v18, 1  ;;  %vm1347_vm1 = vcmp.eq.s32.totalorder %v7942_v7, 1  ;;  %v6124_v54 = vsel %vm1342_vm10, %v6028_v5, %v5779_v33  ;;  %v7943_v2 = vld [vmem:[#allocation160_spill] sm:$0xff]  ;;  %v7949_v7 = vld [vmem:[#allocation166_spill] sm:$0xff] }
 0x301   :  { %v6128_v63 = vsel %vm1341_vm11, %v6028_v5, %v5783_v10  ;;  %vm1350_vm2 = vcmp.eq.s32.totalorder %v7943_v2, 1  ;;  %vm1349_vm3 = vcmp.eq.s32.totalorder %v7944_v55, 1  ;;  %v6134_v28 = vsel %vm1344_vm12, %v6028_v5, %v5793_v0  ;;  %v7947_v18 = vld [vmem:[#allocation164_spill] sm:$0xff]  ;;  %v7952_v55 = vld [vmem:[#allocation169_spill] sm:$0xff] }
 0x302   :  { %v6138_v51 = vsel %vm1343_vm13, %v6028_v5, %v5797_v62  ;;  %v6142_v33 = vsel %vm1346_vm14, %v6028_v5, %v5805_v6  ;;  %v6146_v10 = vsel %vm1345_vm15, %v6028_v5, %v5811_v32  ;;  %v6154_v0 = vsel %vm1348_vm0, %v6028_v5, %v5821_v24  ;;  %v7946_v6 = vld [vmem:[#allocation163_spill] sm:$0xff]  ;;  %v7948_v24 = vld [vmem:[#allocation165_spill] sm:$0xff]  ;;  %v7951_v2 = vld [vmem:[#allocation168_spill] sm:$0xff] }
 0x303   :  { %v6148_v11 = vpop.permute.xlu1 %2310  ;;  %v6150_v13 = vpop.permute.xlu0 %2307  ;;  %v6158_v62 = vsel %vm1347_vm1, %v6028_v5, %v5825_v9  ;;  %vm1352_vm4 = vcmp.eq.s32.totalorder %v7945_v42, 1  ;;  %vm1351_vm5 = vcmp.eq.s32.totalorder %v7946_v6, 1  ;;  %v6164_v32 = vsel %vm1350_vm2, %v6028_v5, %v5831_v52  ;;  %v7950_v9 = vld [vmem:[#allocation167_spill] sm:$0xff]  ;;  %v7953_v42 = vld [vmem:[#allocation170_spill] sm:$0xff] }
 0x304   :  { %v6168_v19 = vsel %vm1349_vm3, %v6028_v5, %v5835_v46  ;;  %vm1354_vm6 = vcmp.eq.s32.totalorder %v7947_v18, 1  ;;  %vm1353_vm7 = vcmp.eq.s32.totalorder %v7948_v24, 1  ;;  %vm1356_vm8 = vcmp.eq.s32.totalorder %v7949_v7, 1  ;;  %v7954_v6 = vld [vmem:[#allocation171_spill] sm:$0xff] }
 0x305   :  { %vm1355_vm9 = vcmp.eq.s32.totalorder %v7950_v9, 1  ;;  %vm1358_vm10 = vcmp.eq.s32.totalorder %v7951_v2, 1  ;;  %vm1357_vm11 = vcmp.eq.s32.totalorder %v7952_v55, 1  ;;  %v6178_v52 = vsel %vm1352_vm4, %v6028_v5, %v5857_v39  ;;  %v7957_v9 = vld [vmem:[#allocation172_spill] sm:$0xff] }
 0x306   :  { %v6182_v46 = vsel %vm1351_vm5, %v6028_v5, %v5861_v58  ;;  %vm1360_vm12 = vcmp.eq.s32.totalorder %v7953_v42, 1  ;;  %vm1359_vm13 = vcmp.eq.s32.totalorder %v7954_v6, 1  ;;  %v6192_v7 = vsel %vm1354_vm6, %v6028_v5, %v5867_v17  ;;  %v7958_v58 = vld [vmem:[#allocation173_spill] sm:$0xff]  ;;  %v7959_v6 = vld [vmem:[#allocation174_spill] sm:$0xff] }
 0x307   :  { %v6186_v18 = vpop.permute.xlu1 %2316  ;;  %v6188_v24 = vpop.permute.xlu0 %2313  ;;  %v6196_v39 = vsel %vm1353_vm7, %v6028_v5, %v5871_v12  ;;  %vm1362_vm14 = vcmp.eq.s32.totalorder %v7957_v9, 1  ;;  %vm1361_vm15 = vcmp.eq.s32.totalorder %v7958_v58, 1  ;;  %v6202_v2 = vsel %vm1356_vm8, %v6028_v5, %v5875_v22  ;;  %v7961_v9 = vld [vmem:[#allocation176_spill] sm:$0xff] }
 0x308   :  { %7955 = vst [vmem:[#allocation60_spill] sm:$0xff] %v6186_v18  ;;  %7956 = vst [vmem:[#allocation61_spill] sm:$0xff] %v6188_v24  ;;  %v6206_v55 = vsel %vm1355_vm9, %v6028_v5, %v5879_v57  ;;  %v6210_v17 = vsel %vm1358_vm10, %v6028_v5, %v5887_v53  ;;  %v6214_v12 = vsel %vm1357_vm11, %v6028_v5, %v5891_v40  ;;  %vm1364_vm0 = vcmp.eq.s32.totalorder %v7959_v6, 1  ;;  %v7960_v57 = vld [vmem:[#allocation175_spill] sm:$0xff]  ;;  %v7965_v24 = vld [vmem:[#allocation178_spill] sm:$0xff] }
 0x309   :  { %v6218_v42 = vsel %vm1360_vm12, %v6028_v5, %v5909_v36  ;;  %v6222_v22 = vsel %vm1359_vm13, %v6028_v5, %v5913_v31  ;;  %vm1363_vm1 = vcmp.eq.s32.totalorder %v7960_v57, 1  ;;  %v6228_v53 = vsel %vm1362_vm14, %v6028_v5, %v5923_v35  ;;  %v7962_v36 = vld [vmem:[#allocation177_spill] sm:$0xff]  ;;  %v7966_v6 = vld [vmem:[#allocation179_spill] sm:$0xff]  ;;  %v7967_v57 = vld [vmem:[#allocation180_spill] sm:$0xff] }
 0x30a   :  { %v6232_v40 = vsel %vm1361_vm15, %v6028_v5, %v5927_v34  ;;  %vm1366_vm2 = vcmp.eq.s32.totalorder %v7961_v9, 1  ;;  %vm1365_vm3 = vcmp.eq.s32.totalorder %v7962_v36, 1  ;;  %vm1368_vm4 = vcmp.eq.s32.totalorder %v7965_v24, 1  ;;  %v7968_v35 = vld [vmem:[#allocation181_spill] sm:$0xff]  ;;  %v7969_v36 = vld [vmem:[#allocation182_spill] sm:$0xff] }
 0x30b   :  { %v6236_v58 = vpop.permute.xlu1 %2322  ;;  %v6238_v31 = vpop.permute.xlu0 %2319  ;;  %vm1367_vm5 = vcmp.eq.s32.totalorder %v7966_v6, 1  ;;  %vm1370_vm6 = vcmp.eq.s32.totalorder %v7967_v57, 1  ;;  %vm1369_vm7 = vcmp.eq.s32.totalorder %v7968_v35, 1  ;;  %v6246_v34 = vsel %vm1364_vm0, %v6028_v5, %v5935_v30  ;;  %v7971_v57 = vld [vmem:[#allocation184_spill] sm:$0xff]  ;;  %v7972_v30 = vld [vmem:[#allocation185_spill] sm:$0xff] }
 0x30c   :  { %7963 = vst [vmem:[#allocation62_spill] sm:$0xff] %v6236_v58  ;;  %7964 = vst [vmem:[#allocation63_spill] sm:$0xff] %v6238_v31  ;;  %v6250_v9 = vsel %vm1363_vm1, %v6028_v5, %v5941_v44  ;;  %vm1372_vm8 = vcmp.eq.s32.totalorder %v7969_v36, 1  ;;  %v7970_v58 = vld [vmem:[#allocation183_spill] sm:$0xff]  ;;  %v6256_v24 = vsel %vm1366_vm2, %v6028_v5, %v5951_v25  ;;  %v6260_v6 = vsel %vm1365_vm3, %v6028_v5, %v5955_v37  ;;  %v8025_v31 = vld [vmem:[#allocation32_spill] sm:$0xff] }
 0x30d   :  { %vm1371_vm9 = vcmp.eq.s32.totalorder %v7970_v58, 1  ;;  %vm1374_vm10 = vcmp.eq.s32.totalorder %v7971_v57, 1  ;;  %vm1373_vm11 = vcmp.eq.s32.totalorder %v7972_v30, 1  ;;  %v6266_v44 = vsel %vm1368_vm4, %v6028_v5, %v5961_v49  ;;  %v7979_v57 = vld [vmem:[#allocation186_spill] sm:$0xff] }
 0x30e   :  { %v6270_v35 = vsel %vm1367_vm5, %v6028_v5, %v5965_v29  ;;  %v6274_v25 = vsel %vm1370_vm6, %v6028_v5, %v5987_v27  ;;  %v6278_v37 = vsel %vm1369_vm7, %v6028_v5, %v5991_v4  ;;  %v6286_v49 = vsel %vm1372_vm8, %v6028_v5, %v5997_v21  ;;  %v7980_v27 = vld [vmem:[#allocation187_spill] sm:$0xff]  ;;  %v7984_v21 = vld [vmem:[#allocation189_spill] sm:$0xff] }
 0x30f   :  { %7973 = vst [vmem:[#allocation64_spill] sm:$0xff] %v6274_v25  ;;  %7974 = vst [vmem:[#allocation65_spill] sm:$0xff] %v6278_v37  ;;  %v6280_v58 = vpop.permute.xlu1 %2328  ;;  %v6282_v36 = vpop.permute.xlu0 %2325  ;;  %v6290_v29 = vsel %vm1371_vm9, %v6028_v5, %v6001_v50  ;;  %vm1376_vm12 = vcmp.eq.s32.totalorder %v7979_v57, 1  ;;  %vm1375_vm13 = vcmp.eq.s32.totalorder %v7980_v27, 1  ;;  %v6296_v4 = vsel %vm1374_vm10, %v6028_v5, %v6005_v60  ;;  %v6307_v50 = vld [vmem:[%s7243_s2 + $0x4] ss:$0 sm:$0xff] }
 0x310   :  { %7975 = vst [vmem:[#allocation66_spill] sm:$0xff] %v6280_v58  ;;  %7976 = vst [vmem:[#allocation67_spill] sm:$0xff] %v6282_v36  ;;  %v6300_v30 = vsel %vm1373_vm11, %v6028_v5, %v6009_v56  ;;  %v7983_v36 = vld [vmem:[#allocation188_spill] sm:$0xff]  ;;  %vm1377_vm15 = vcmp.eq.s32.totalorder %v7984_v21, 1  ;;  %v7985_v57 = vld [vmem:[#allocation190_spill] sm:$0xff]  ;;  %v6315_v56 = vsel %vm1376_vm12, %v6028_v5, %v6017_v41 }
 0x311   :  { %7977 = vst [vmem:[#allocation68_spill] sm:$0xff] %v6286_v49  ;;  %7978 = vst [vmem:[#allocation69_spill] sm:$0xff] %v6290_v29  ;;  %vm1378_vm14 = vcmp.eq.s32.totalorder %v7983_v36, 1  ;;  %vm1673_vm0 = vcmp.eq.s32.totalorder %v7985_v57, 1  ;;  %v7986_v27 = vld [vmem:[#allocation191_spill] sm:$0xff]  ;;  %v7987_v58 = vld [vmem:[#allocation192_spill] sm:$0xff]  ;;  %v6319_v36 = vsel %vm1375_vm13, %v6028_v5, %v6021_v1 }
 0x312   :  { %7981 = vst [vmem:[#allocation70_spill] sm:$0xff] %v6296_v4  ;;  %7982 = vst [vmem:[#allocation71_spill] sm:$0xff] %v6300_v30  ;;  %vm1672_vm1 = vcmp.eq.s32.totalorder %v7986_v27, 1  ;;  %vm1675_vm2 = vcmp.eq.s32.totalorder %v7987_v58, 1  ;;  %v7988_v60 = vld [vmem:[#allocation193_spill] sm:$0xff]  ;;  %v7991_v21 = vld [vmem:[#allocation194_spill] sm:$0xff]  ;;  %v6335_v1 = vsel %vm1673_vm0, %v6307_v50, %v6058_v23 }
 0x313   :  { %vm1674_vm3 = vcmp.eq.s32.totalorder %v7988_v60, 1  ;;  %7989 = vst [vmem:[#allocation72_spill] sm:$0xff] %v6315_v56  ;;  %7990 = vst [vmem:[#allocation73_spill] sm:$0xff] %v6319_v36  ;;  %vm1677_vm4 = vcmp.eq.s32.totalorder %v7991_v21, 1  ;;  %v7992_v30 = vld [vmem:[#allocation195_spill] sm:$0xff]  ;;  %v6323_v4 = vpop.permute.xlu1 %2334  ;;  %v6325_v57 = vpop.permute.xlu0 %2331  ;;  %v1425_v60 = vsel %vm1377_vm15, %v6028_v5, %v6048_v43  ;;  %v7996_v41 = vld [vmem:[#allocation196_spill] sm:$0xff]  ;;  %v6343_v21 = vsel %vm1675_vm2, %v6307_v50, %v6070_v15 }
 0x314   :  { %vm1676_vm5 = vcmp.eq.s32.totalorder %v7992_v30, 1  ;;  %7993 = vst [vmem:[#allocation74_spill] sm:$0xff] %v6323_v4  ;;  %7994 = vst [vmem:[#allocation75_spill] sm:$0xff] %v6325_v57  ;;  %v7995_v27 = vld [vmem:[#allocation59_spill] sm:$0xff]  ;;  %vm1679_vm6 = vcmp.eq.s32.totalorder %v7996_v41, 1  ;;  %v7997_v56 = vld [vmem:[#allocation197_spill] sm:$0xff]  ;;  %v6339_v30 = vsel %vm1672_vm1, %v6307_v50, %v6062_v16 }
 0x315   :  { %v1426_v58 = vsel %vm1378_vm14, %v6028_v5, %v7995_v27  ;;  %vm1678_vm7 = vcmp.eq.s32.totalorder %v7997_v56, 1  ;;  %v6347_v27 = vsel %vm1674_vm3, %v6307_v50, %v6076_v26  ;;  %v6351_v5 = vsel %vm1677_vm4, %v6307_v50, %v6086_v20  ;;  %v7998_v43 = vld [vmem:[#allocation198_spill] sm:$0xff]  ;;  %v7999_v16 = vld [vmem:[#allocation199_spill] sm:$0xff]  ;;  %v8000_v56 = vld [vmem:[#allocation200_spill] sm:$0xff] }
 0x316   :  { %v6355_v23 = vsel %vm1676_vm5, %v6307_v50, %v6090_v14  ;;  %vm1681_vm8 = vcmp.eq.s32.totalorder %v7998_v43, 1  ;;  %vm1680_vm9 = vcmp.eq.s32.totalorder %v7999_v16, 1  ;;  %v6361_v15 = vsel %vm1679_vm6, %v6307_v50, %v6096_v38  ;;  %v8001_v20 = vld [vmem:[#allocation201_spill] sm:$0xff]  ;;  %v8004_v36 = vld [vmem:[#allocation202_spill] sm:$0xff]  ;;  %v8005_v43 = vld [vmem:[#allocation203_spill] sm:$0xff] }
 0x317   :  { %v6365_v26 = vsel %vm1678_vm7, %v6307_v50, %v6100_v48  ;;  %vm1683_vm10 = vcmp.eq.s32.totalorder %v8000_v56, 1  ;;  %vm1682_vm11 = vcmp.eq.s32.totalorder %v8001_v20, 1  ;;  %v6369_v41 = vpop.permute.xlu1 %2340  ;;  %v6371_v14 = vpop.permute.xlu0 %2337  ;;  %vm1685_vm12 = vcmp.eq.s32.totalorder %v8004_v36, 1  ;;  %v8006_v16 = vld [vmem:[#allocation204_spill] sm:$0xff]  ;;  %v8007_v38 = vld [vmem:[#allocation205_spill] sm:$0xff]  ;;  %v8008_v20 = vld [vmem:[#allocation206_spill] sm:$0xff] }
 0x318   :  { %8002 = vst [vmem:[#allocation76_spill] sm:$0xff] %v6369_v41  ;;  %8003 = vst [vmem:[#allocation77_spill] sm:$0xff] %v6371_v14  ;;  %vm1684_vm13 = vcmp.eq.s32.totalorder %v8005_v43, 1  ;;  %vm1687_vm14 = vcmp.eq.s32.totalorder %v8006_v16, 1  ;;  %vm1686_vm15 = vcmp.eq.s32.totalorder %v8007_v38, 1  ;;  %v6379_v48 = vsel %vm1681_vm8, %v6307_v50, %v6114_v3  ;;  %v8009_v41 = vld [vmem:[#allocation207_spill] sm:$0xff] }
 0x319   :  { %v6383_v56 = vsel %vm1680_vm9, %v6307_v50, %v6118_v61  ;;  %vm1689_vm0 = vcmp.eq.s32.totalorder %v8008_v20, 1  ;;  %vm1688_vm1 = vcmp.eq.s32.totalorder %v8009_v41, 1  ;;  %v6389_v36 = vsel %vm1683_vm10, %v6307_v50, %v6124_v54  ;;  %v8010_v16 = vld [vmem:[#allocation208_spill] sm:$0xff]  ;;  %v8011_v3 = vld [vmem:[#allocation209_spill] sm:$0xff]  ;;  %v8033_v25 = vld [vmem:[#allocation215_spill] sm:$0xff] }
 0x31a   :  { %v6393_v43 = vsel %vm1682_vm11, %v6307_v50, %v6128_v63  ;;  %vm1691_vm2 = vcmp.eq.s32.totalorder %v8010_v16, 1  ;;  %vm1690_vm3 = vcmp.eq.s32.totalorder %v8011_v3, 1  ;;  %v6399_v61 = vsel %vm1685_vm12, %v6307_v50, %v6134_v28  ;;  %v8014_v16 = vld [vmem:[#allocation236_spill] sm:$0xff] }
 0x31b   :  { %v6403_v38 = vsel %vm1684_vm13, %v6307_v50, %v6138_v51  ;;  %v6407_v54 = vsel %vm1687_vm14, %v6307_v50, %v6142_v33  ;;  %v6411_v63 = vsel %vm1686_vm15, %v6307_v50, %v6146_v10  ;;  %v6413_v41 = vpop.permute.xlu1 %2346  ;;  %v6415_v20 = vpop.permute.xlu0 %2343  ;;  %v6419_v28 = vsel %vm1689_vm0, %v6307_v50, %v6154_v0  ;;  %v8015_v33 = vld [vmem:[#allocation237_spill] sm:$0xff]  ;;  %v8017_v0 = vld [vmem:[#allocation30_spill] sm:$0xff]  ;;  %v8020_v14 = vld [vmem:[#allocation212_spill] sm:$0xff] }
 0x31c   :  { %8012 = vst [vmem:[#allocation78_spill] sm:$0xff] %v6413_v41  ;;  %8013 = vst [vmem:[#allocation79_spill] sm:$0xff] %v6415_v20  ;;  %v6423_v51 = vsel %vm1688_vm1, %v6307_v50, %v6158_v62  ;;  %vm1719_vm4 = vcmp.eq.s32.totalorder %v8014_v16, 1  ;;  %vm1718_vm5 = vcmp.eq.s32.totalorder %v8015_v33, 1  ;;  %v6429_v10 = vsel %vm1691_vm2, %v6307_v50, %v6164_v32  ;;  %v8016_v20 = vld [vmem:[#allocation29_spill] sm:$0xff]  ;;  %v8018_v41 = vld [vmem:[#allocation210_spill] sm:$0xff] }
 0x31d   :  { %v6433_v3 = vsel %vm1690_vm3, %v6307_v50, %v6168_v19  ;;  %vm2060_vm6 = vcmp.eq.s32.totalorder %v8016_v20, 1  ;;  %vm2059_vm7 = vcmp.eq.s32.totalorder %v8017_v0, 1  ;;  %vm1693_vm8 = vcmp.eq.s32.totalorder %v8018_v41, 1  ;;  %v8019_v62 = vld [vmem:[#allocation211_spill] sm:$0xff]  ;;  %v8021_v16 = vld [vmem:[#allocation213_spill] sm:$0xff]  ;;  %v8022_v20 = vld [vmem:[#allocation238_spill] sm:$0xff] }
 0x31e   :  { %vm1692_vm9 = vcmp.eq.s32.totalorder %v8019_v62, 1  ;;  %vm1695_vm10 = vcmp.eq.s32.totalorder %v8020_v14, 1  ;;  %vm1694_vm11 = vcmp.eq.s32.totalorder %v8021_v16, 1  ;;  %v1767_v33 = vsel %vm1719_vm4, %v6307_v50, %v1426_v58  ;;  %v6446_v19 = vld [vmem:[%s7243_s2 + $0x5] ss:$0 sm:$0xff]  ;;  %v8023_v0 = vld [vmem:[#allocation239_spill] sm:$0xff] }
 0x31f   :  { %v1766_v32 = vsel %vm1718_vm5, %v6307_v50, %v1425_v60  ;;  %vm2014_vm12 = vcmp.eq.s32.totalorder %v8022_v20, 1  ;;  %vm2013_vm13 = vcmp.eq.s32.totalorder %v8023_v0, 1  ;;  %v2353_v57 = vpop.permute.xlu1 %2352  ;;  %v2350_v4 = vpop.permute.xlu0 %2349  ;;  %v2108_v29 = vsel %vm2060_vm6, %v6446_v19, %v1767_v33  ;;  %v6455_v58 = vld [vmem:[%s7243_s2 + $0x6] ss:$0 sm:$0xff]  ;;  %v8024_v60 = vld [vmem:[#allocation31_spill] sm:$0xff]  ;;  %v8031_v20 = vld [vmem:[#allocation34_spill] sm:$0xff] }
 0x320   :  { %v2107_v49 = vsel %vm2059_vm7, %v6446_v19, %v1766_v32  ;;  %vm2401_vm14 = vcmp.eq.s32.totalorder %v2353_v57, 1  ;;  %vm2400_vm15 = vcmp.eq.s32.totalorder %v2350_v4, 1  ;;  %vm2355_vm0 = vcmp.eq.s32.totalorder %v8024_v60, 1  ;;  %v8028_v57 = vld [vmem:[#allocation240_spill] sm:$0xff]  ;;  %v8029_v14 = vld [vmem:[#allocation241_spill] sm:$0xff] }
 0x321   :  { %vm2354_vm1 = vcmp.eq.s32.totalorder %v8025_v31, 1  ;;  %v6460_v18 = vsel %vm2401_vm14, %v6455_v58, %v2108_v29  ;;  %v6463_v37 = vsel %vm2400_vm15, %v6455_v58, %v2107_v49  ;;  %v6469_v33 = vsel %vm1693_vm8, %v6307_v50, %v6178_v52  ;;  %v6492_v52 = vld [vmem:[%s7243_s2 + $0x7] ss:$0 sm:$0xff] }
 0x322   :  { %8026 = vst [vmem:[#allocation80_spill] sm:$0xff] %v6460_v18  ;;  %8027 = vst [vmem:[#allocation81_spill] sm:$0xff] %v6463_v37  ;;  %v6475_v4 = vsel %vm1692_vm9, %v6307_v50, %v6182_v46  ;;  %v6481_v29 = vsel %vm1695_vm10, %v6307_v50, %v6192_v7  ;;  %v6487_v49 = vsel %vm1694_vm11, %v6307_v50, %v6196_v39  ;;  %vm2016_vm2 = vcmp.eq.s32.totalorder %v8028_v57, 1  ;;  %v2792_v39 = vld [vmem:[%s7242_s1 + $0x8] sm:$0xff]  ;;  %v2791_v62 = vld [vmem:[%s7242_s1] sm:$0xff] }
 0x323   :  { %v2062_v46 = vsel %vm2014_vm12, %v6446_v19, %v6335_v1  ;;  %v2061_v7 = vsel %vm2013_vm13, %v6446_v19, %v6339_v30  ;;  %vm2015_vm3 = vcmp.eq.s32.totalorder %v8029_v14, 1  ;;  %v2556_v41 = vpop.permute.xlu1 %2555  ;;  %v2553_v16 = vpop.permute.xlu0 %2552  ;;  %v8030_v32 = vld [vmem:[#allocation33_spill] sm:$0xff]  ;;  %vm2356_vm7 = vcmp.eq.s32.totalorder %v8031_v20, 1  ;;  %v8032_v18 = vld [vmem:[#allocation214_spill] sm:$0xff]  ;;  %v8036_v14 = vld [vmem:[#allocation35_spill] sm:$0xff] }
 0x324   :  { %v2403_v1 = vsel %vm2355_vm0, %v6455_v58, %v2062_v46  ;;  %v2402_v30 = vsel %vm2354_vm1, %v6455_v58, %v2061_v7  ;;  %vm2696_vm4 = vcmp.eq.s32.totalorder %v2556_v41, 1  ;;  %vm2695_vm5 = vcmp.eq.s32.totalorder %v2553_v16, 1  ;;  %v8034_v41 = vld [vmem:[#allocation242_spill] sm:$0xff]  ;;  %v8035_v16 = vld [vmem:[#allocation243_spill] sm:$0xff] }
 0x325   :  { %vm2357_vm6 = vcmp.eq.s32.totalorder %v8030_v32, 1  ;;  %v2744_v0 = vsel %vm2696_vm4, %v6492_v52, %v2403_v1  ;;  %v2743_v37 = vsel %vm2695_vm5, %v6492_v52, %v2402_v30  ;;  %vm1697_vm8 = vcmp.eq.s32.totalorder %v8032_v18, 1  ;;  %v2794_v1 = vld [vmem:[%s7242_s1 + $0x18] sm:$0xff] }
 0x326   :  { %vm1696_vm9 = vcmp.eq.s32.totalorder %v8033_v25, 1  ;;  %v2840_v60 = vmul.f32 %v2792_v39, %v2744_v0  ;;  %v2839_v46 = vmul.f32 %v2791_v62, %v2743_v37  ;;  %v2064_v31 = vsel %vm2016_vm2, %v6446_v19, %v6343_v21  ;;  %v2793_v37 = vld [vmem:[%s7242_s1 + $0x10] sm:$0xff]  ;;  %v8037_v62 = vld [vmem:[#allocation36_spill] sm:$0xff] }
 0x327   :  { %v2063_v7 = vsel %vm2015_vm3, %v6446_v19, %v6347_v27  ;;  %vm2018_vm10 = vcmp.eq.s32.totalorder %v8034_v41, 1  ;;  %vm2017_vm11 = vcmp.eq.s32.totalorder %v8035_v16, 1  ;;  %v2562_v39 = vpop.permute.xlu1 %2561  ;;  %v2559_v57 = vpop.permute.xlu0 %2558  ;;  %v2405_v21 = vsel %vm2357_vm6, %v6455_v58, %v2064_v31  ;;  %v8040_v16 = vld [vmem:[#allocation37_spill] sm:$0xff] }
 0x328   :  { %v2404_v27 = vsel %vm2356_vm7, %v6455_v58, %v2063_v7  ;;  %2888 = vst [vmem:[#allocation2 + $0x8] sm:$0xff] %v2840_v60  ;;  %2887 = vst [vmem:[#allocation2] sm:$0xff] %v2839_v46  ;;  %vm2698_vm12 = vcmp.eq.s32.totalorder %v2562_v39, 1  ;;  %vm2697_vm13 = vcmp.eq.s32.totalorder %v2559_v57, 1  ;;  %vm2359_vm14 = vcmp.eq.s32.totalorder %v8036_v14, 1  ;;  %v8039_v7 = vld [vmem:[#allocation245_spill] sm:$0xff] }
 0x329   :  { %vm2358_vm15 = vcmp.eq.s32.totalorder %v8037_v62, 1  ;;  %v2746_v30 = vsel %vm2698_vm12, %v6492_v52, %v2405_v21  ;;  %v2745_v0 = vsel %vm2697_vm13, %v6492_v52, %v2404_v27  ;;  %v6552_v32 = vsel %vm1697_vm8, %v6307_v50, %v6202_v2  ;;  %v8038_v2 = vld [vmem:[#allocation244_spill] sm:$0xff]  ;;  %v8041_v39 = vld [vmem:[#allocation38_spill] sm:$0xff]  ;;  %v8043_v27 = vld [vmem:[#allocation217_spill] sm:$0xff] }
 0x32a   :  { %v6558_v20 = vsel %vm1696_vm9, %v6307_v50, %v6206_v55  ;;  %v2842_v60 = vmul.f32 %v2794_v1, %v2746_v30  ;;  %v2841_v46 = vmul.f32 %v2793_v37, %v2745_v0  ;;  %v2066_v31 = vsel %vm2018_vm10, %v6446_v19, %v6351_v5  ;;  %v2796_v55 = vld [vmem:[%s7242_s1 + $0x28] sm:$0xff]  ;;  %v2795_v1 = vld [vmem:[%s7242_s1 + $0x20] sm:$0xff]  ;;  %v8042_v21 = vld [vmem:[#allocation216_spill] sm:$0xff] }
 0x32b   :  { %v2065_v18 = vsel %vm2017_vm11, %v6446_v19, %v6355_v23  ;;  %vm2020_vm0 = vcmp.eq.s32.totalorder %v8038_v2, 1  ;;  %vm2019_vm1 = vcmp.eq.s32.totalorder %v8039_v7, 1  ;;  %v2568_v25 = vpop.permute.xlu1 %2567  ;;  %v2565_v41 = vpop.permute.xlu0 %2564  ;;  %v2407_v5 = vsel %vm2359_vm14, %v6455_v58, %v2066_v31  ;;  %v2798_v31 = vld [vmem:[%s7242_s1 + $0x38] sm:$0xff]  ;;  %v8046_v7 = vld [vmem:[#allocation39_spill] sm:$0xff] }
 0x32c   :  { %v2406_v23 = vsel %vm2358_vm15, %v6455_v58, %v2065_v18  ;;  %2890 = vst [vmem:[#allocation2 + $0x18] sm:$0xff] %v2842_v60  ;;  %2889 = vst [vmem:[#allocation2 + $0x10] sm:$0xff] %v2841_v46  ;;  %vm2700_vm2 = vcmp.eq.s32.totalorder %v2568_v25, 1  ;;  %vm2699_vm3 = vcmp.eq.s32.totalorder %v2565_v41, 1  ;;  %vm2361_vm4 = vcmp.eq.s32.totalorder %v8040_v16, 1  ;;  %v8044_v60 = vld [vmem:[#allocation248_spill] sm:$0xff] }
 0x32d   :  { %vm2360_vm5 = vcmp.eq.s32.totalorder %v8041_v39, 1  ;;  %v2748_v37 = vsel %vm2700_vm2, %v6492_v52, %v2407_v5  ;;  %v2747_v57 = vsel %vm2699_vm3, %v6492_v52, %v2406_v23  ;;  %vm1699_vm6 = vcmp.eq.s32.totalorder %v8042_v21, 1  ;;  %v8045_v46 = vld [vmem:[#allocation249_spill] sm:$0xff]  ;;  %v8047_v25 = vld [vmem:[#allocation40_spill] sm:$0xff] }
 0x32e   :  { %vm1698_vm7 = vcmp.eq.s32.totalorder %v8043_v27, 1  ;;  %v2844_v14 = vmul.f32 %v2796_v55, %v2748_v37  ;;  %v2843_v30 = vmul.f32 %v2795_v1, %v2747_v57  ;;  %v2068_v62 = vsel %vm2020_vm0, %v6446_v19, %v6361_v15  ;;  %v2797_v55 = vld [vmem:[%s7242_s1 + $0x30] sm:$0xff]  ;;  %v8049_v21 = vld [vmem:[#allocation253_spill] sm:$0xff] }
 0x32f   :  { %v2067_v0 = vsel %vm2019_vm1, %v6446_v19, %v6365_v26  ;;  %vm2022_vm8 = vcmp.eq.s32.totalorder %v8044_v60, 1  ;;  %vm2021_vm9 = vcmp.eq.s32.totalorder %v8045_v46, 1  ;;  %v2574_v18 = vpop.permute.xlu1 %2573  ;;  %v2571_v2 = vpop.permute.xlu0 %2570  ;;  %v2409_v15 = vsel %vm2361_vm4, %v6455_v58, %v2068_v62  ;;  %v8050_v62 = vld [vmem:[#allocation41_spill] sm:$0xff] }
 0x330   :  { %v2408_v26 = vsel %vm2360_vm5, %v6455_v58, %v2067_v0  ;;  %2892 = vst [vmem:[#allocation2 + $0x28] sm:$0xff] %v2844_v14  ;;  %2891 = vst [vmem:[#allocation2 + $0x20] sm:$0xff] %v2843_v30  ;;  %vm2702_vm10 = vcmp.eq.s32.totalorder %v2574_v18, 1  ;;  %vm2701_vm11 = vcmp.eq.s32.totalorder %v2571_v2, 1  ;;  %vm2363_vm12 = vcmp.eq.s32.totalorder %v8046_v7, 1  ;;  %v2799_v14 = vld [vmem:[%s7242_s1 + $0x40] sm:$0xff] }
 0x331   :  { %vm2362_vm13 = vcmp.eq.s32.totalorder %v8047_v25, 1  ;;  %v2750_v1 = vsel %vm2702_vm10, %v6492_v52, %v2409_v15  ;;  %v2749_v41 = vsel %vm2701_vm11, %v6492_v52, %v2408_v26  ;;  %v6618_v5 = vsel %vm1699_vm6, %v6307_v50, %v6210_v17  ;;  %v8048_v17 = vld [vmem:[#allocation252_spill] sm:$0xff]  ;;  %v8051_v0 = vld [vmem:[#allocation42_spill] sm:$0xff]  ;;  %v8053_v18 = vld [vmem:[#allocation219_spill] sm:$0xff] }
 0x332   :  { %v6624_v23 = vsel %vm1698_vm7, %v6307_v50, %v6214_v12  ;;  %v2846_v16 = vmul.f32 %v2798_v31, %v2750_v1  ;;  %v2845_v39 = vmul.f32 %v2797_v55, %v2749_v41  ;;  %v2070_v37 = vsel %vm2022_vm8, %v6446_v19, %v6379_v48  ;;  %v2800_v12 = vld [vmem:[%s7242_s1 + $0x48] sm:$0xff]  ;;  %v8054_v7 = vld [vmem:[#allocation256_spill] sm:$0xff]  ;;  %v8055_v25 = vld [vmem:[#allocation257_spill] sm:$0xff] }
 0x333   :  { %v2069_v57 = vsel %vm2021_vm9, %v6446_v19, %v6383_v56  ;;  %vm2024_vm14 = vcmp.eq.s32.totalorder %v8048_v17, 1  ;;  %vm2023_vm15 = vcmp.eq.s32.totalorder %v8049_v21, 1  ;;  %v2580_v27 = vpop.permute.xlu1 %2579  ;;  %v2577_v30 = vpop.permute.xlu0 %2576  ;;  %v2411_v48 = vsel %vm2363_vm12, %v6455_v58, %v2070_v37  ;;  %v8052_v31 = vld [vmem:[#allocation218_spill] sm:$0xff]  ;;  %v2802_v1 = vld [vmem:[%s7242_s1 + $0x58] sm:$0xff]  ;;  %v8056_v37 = vld [vmem:[#allocation43_spill] sm:$0xff] }
 0x334   :  { %v2410_v56 = vsel %vm2362_vm13, %v6455_v58, %v2069_v57  ;;  %2894 = vst [vmem:[#allocation2 + $0x38] sm:$0xff] %v2846_v16  ;;  %2893 = vst [vmem:[#allocation2 + $0x30] sm:$0xff] %v2845_v39  ;;  %vm2704_vm0 = vcmp.eq.s32.totalorder %v2580_v27, 1  ;;  %vm2703_vm1 = vcmp.eq.s32.totalorder %v2577_v30, 1  ;;  %vm2365_vm2 = vcmp.eq.s32.totalorder %v8050_v62, 1  ;;  %v2801_v16 = vld [vmem:[%s7242_s1 + $0x50] sm:$0xff] }
 0x335   :  { %vm2364_vm3 = vcmp.eq.s32.totalorder %v8051_v0, 1  ;;  %v2752_v60 = vsel %vm2704_vm0, %v6492_v52, %v2411_v48  ;;  %v2751_v46 = vsel %vm2703_vm1, %v6492_v52, %v2410_v56  ;;  %vm1701_vm4 = vcmp.eq.s32.totalorder %v8052_v31, 1  ;;  %v8057_v57 = vld [vmem:[#allocation44_spill] sm:$0xff]  ;;  %v8059_v62 = vld [vmem:[#allocation261_spill] sm:$0xff] }
 0x336   :  { %vm1700_vm5 = vcmp.eq.s32.totalorder %v8053_v18, 1  ;;  %v2848_v55 = vmul.f32 %v2800_v12, %v2752_v60  ;;  %v2847_v2 = vmul.f32 %v2799_v14, %v2751_v46  ;;  %v2072_v15 = vsel %vm2024_vm14, %v6446_v19, %v6389_v36  ;;  %v2803_v60 = vld [vmem:[%s7242_s1 + $0x60] sm:$0xff]  ;;  %v8061_v18 = vld [vmem:[#allocation46_spill] sm:$0xff] }
 0x337   :  { %v2071_v26 = vsel %vm2023_vm15, %v6446_v19, %v6393_v43  ;;  %vm2026_vm6 = vcmp.eq.s32.totalorder %v8054_v7, 1  ;;  %vm2025_vm7 = vcmp.eq.s32.totalorder %v8055_v25, 1  ;;  %v2586_v41 = vpop.permute.xlu1 %2585  ;;  %v2583_v39 = vpop.permute.xlu0 %2582  ;;  %v2413_v36 = vsel %vm2365_vm2, %v6455_v58, %v2072_v15  ;;  %v8060_v31 = vld [vmem:[#allocation45_spill] sm:$0xff]  ;;  %v8062_v15 = vld [vmem:[#allocation220_spill] sm:$0xff] }
 0x338   :  { %v2412_v43 = vsel %vm2364_vm3, %v6455_v58, %v2071_v26  ;;  %2896 = vst [vmem:[#allocation2 + $0x48] sm:$0xff] %v2848_v55  ;;  %2895 = vst [vmem:[#allocation2 + $0x40] sm:$0xff] %v2847_v2  ;;  %vm2706_vm8 = vcmp.eq.s32.totalorder %v2586_v41, 1  ;;  %vm2705_vm9 = vcmp.eq.s32.totalorder %v2583_v39, 1  ;;  %vm2367_vm10 = vcmp.eq.s32.totalorder %v8056_v37, 1  ;;  %v8063_v26 = vld [vmem:[#allocation221_spill] sm:$0xff] }
 0x339   :  { %vm2366_vm11 = vcmp.eq.s32.totalorder %v8057_v57, 1  ;;  %v2754_v17 = vsel %vm2706_vm8, %v6492_v52, %v2413_v36  ;;  %v2753_v21 = vsel %vm2705_vm9, %v6492_v52, %v2412_v43  ;;  %v6684_v12 = vsel %vm1701_vm4, %v6307_v50, %v6218_v42  ;;  %v8058_v42 = vld [vmem:[#allocation260_spill] sm:$0xff]  ;;  %v8065_v39 = vld [vmem:[#allocation265_spill] sm:$0xff]  ;;  %v2805_v37 = vld [vmem:[%s7242_s1 + $0x70] sm:$0xff] }
 0x33a   :  { %v6690_v27 = vsel %vm1700_vm5, %v6307_v50, %v6222_v22  ;;  %v2850_v14 = vmul.f32 %v2802_v1, %v2754_v17  ;;  %v2849_v30 = vmul.f32 %v2801_v16, %v2753_v21  ;;  %v2074_v48 = vsel %vm2026_vm6, %v6446_v19, %v6399_v61  ;;  %v2804_v22 = vld [vmem:[%s7242_s1 + $0x68] sm:$0xff]  ;;  %v8064_v16 = vld [vmem:[#allocation264_spill] sm:$0xff]  ;;  %v8066_v17 = vld [vmem:[#allocation47_spill] sm:$0xff] }
 0x33b   :  { %v2073_v56 = vsel %vm2025_vm7, %v6446_v19, %v6403_v38  ;;  %vm2028_vm12 = vcmp.eq.s32.totalorder %v8058_v42, 1  ;;  %vm2027_vm13 = vcmp.eq.s32.totalorder %v8059_v62, 1  ;;  %v2592_v0 = vpop.permute.xlu1 %2591  ;;  %v2589_v46 = vpop.permute.xlu0 %2588  ;;  %v2415_v61 = vsel %vm2367_vm10, %v6455_v58, %v2074_v48  ;;  %v2806_v36 = vld [vmem:[%s7242_s1 + $0x78] sm:$0xff] }
 0x33c   :  { %v2414_v38 = vsel %vm2366_vm11, %v6455_v58, %v2073_v56  ;;  %2898 = vst [vmem:[#allocation2 + $0x58] sm:$0xff] %v2850_v14  ;;  %2897 = vst [vmem:[#allocation2 + $0x50] sm:$0xff] %v2849_v30  ;;  %vm2708_vm14 = vcmp.eq.s32.totalorder %v2592_v0, 1  ;;  %vm2707_vm15 = vcmp.eq.s32.totalorder %v2589_v46, 1  ;;  %vm2369_vm0 = vcmp.eq.s32.totalorder %v8060_v31, 1  ;;  %v8067_v21 = vld [vmem:[#allocation48_spill] sm:$0xff] }
 0x33d   :  { %vm2368_vm1 = vcmp.eq.s32.totalorder %v8061_v18, 1  ;;  %v2756_v55 = vsel %vm2708_vm14, %v6492_v52, %v2415_v61  ;;  %v2755_v2 = vsel %vm2707_vm15, %v6492_v52, %v2414_v38  ;;  %vm1703_vm2 = vcmp.eq.s32.totalorder %v8062_v15, 1  ;;  %v2807_v61 = vld [vmem:[%s7242_s1 + $0x80] sm:$0xff]  ;;  %v8071_v18 = vld [vmem:[#allocation50_spill] sm:$0xff] }
 0x33e   :  { %vm1702_vm3 = vcmp.eq.s32.totalorder %v8063_v26, 1  ;;  %v2852_v7 = vmul.f32 %v2804_v22, %v2756_v55  ;;  %v2851_v25 = vmul.f32 %v2803_v60, %v2755_v2  ;;  %v2076_v1 = vsel %vm2028_vm12, %v6446_v19, %v6407_v54  ;;  %v8069_v60 = vld [vmem:[#allocation269_spill] sm:$0xff]  ;;  %v8072_v15 = vld [vmem:[#allocation222_spill] sm:$0xff]  ;;  %v8073_v26 = vld [vmem:[#allocation223_spill] sm:$0xff] }
 0x33f   :  { %v2075_v41 = vsel %vm2027_vm13, %v6446_v19, %v6411_v63  ;;  %vm2030_vm4 = vcmp.eq.s32.totalorder %v8064_v16, 1  ;;  %vm2029_vm5 = vcmp.eq.s32.totalorder %v8065_v39, 1  ;;  %v2598_v43 = vpop.permute.xlu1 %2597  ;;  %v2595_v57 = vpop.permute.xlu0 %2594  ;;  %v2417_v54 = vsel %vm2369_vm0, %v6455_v58, %v2076_v1  ;;  %v8070_v31 = vld [vmem:[#allocation49_spill] sm:$0xff]  ;;  %v8074_v16 = vld [vmem:[#allocation272_spill] sm:$0xff] }
 0x340   :  { %v2416_v63 = vsel %vm2368_vm1, %v6455_v58, %v2075_v41  ;;  %2900 = vst [vmem:[#allocation2 + $0x68] sm:$0xff] %v2852_v7  ;;  %2899 = vst [vmem:[#allocation2 + $0x60] sm:$0xff] %v2851_v25  ;;  %vm2710_vm6 = vcmp.eq.s32.totalorder %v2598_v43, 1  ;;  %vm2709_vm7 = vcmp.eq.s32.totalorder %v2595_v57, 1  ;;  %vm2371_vm8 = vcmp.eq.s32.totalorder %v8066_v17, 1  ;;  %v8075_v39 = vld [vmem:[#allocation273_spill] sm:$0xff] }
 0x341   :  { %vm2370_vm9 = vcmp.eq.s32.totalorder %v8067_v21, 1  ;;  %v2758_v14 = vsel %vm2710_vm6, %v6492_v52, %v2417_v54  ;;  %v2757_v30 = vsel %vm2709_vm7, %v6492_v52, %v2416_v63  ;;  %v6750_v48 = vsel %vm1703_vm2, %v6307_v50, %v6228_v53  ;;  %v8068_v53 = vld [vmem:[#allocation268_spill] sm:$0xff]  ;;  %v8076_v54 = vld [vmem:[#allocation51_spill] sm:$0xff] }
 0x342   :  { %v6756_v56 = vsel %vm1702_vm3, %v6307_v50, %v6232_v40  ;;  %v2854_v42 = vmul.f32 %v2806_v36, %v2758_v14  ;;  %v2853_v62 = vmul.f32 %v2805_v37, %v2757_v30  ;;  %v2078_v22 = vsel %vm2030_vm4, %v6446_v19, %v6419_v28  ;;  %v2808_v40 = vld [vmem:[%s7242_s1 + $0x88] sm:$0xff]  ;;  %v2810_v36 = vld [vmem:[%s7242_s1 + $0x98] sm:$0xff]  ;;  %v2809_v37 = vld [vmem:[%s7242_s1 + $0x90] sm:$0xff] }
 0x343   :  { %v2077_v0 = vsel %vm2029_vm5, %v6446_v19, %v6423_v51  ;;  %vm2032_vm10 = vcmp.eq.s32.totalorder %v8068_v53, 1  ;;  %vm2031_vm11 = vcmp.eq.s32.totalorder %v8069_v60, 1  ;;  %v2604_v46 = vpop.permute.xlu1 %2603  ;;  %v2601_v38 = vpop.permute.xlu0 %2600  ;;  %v2419_v28 = vsel %vm2371_vm8, %v6455_v58, %v2078_v22  ;;  %v8077_v63 = vld [vmem:[#allocation52_spill] sm:$0xff]  ;;  %v8079_v53 = vld [vmem:[#allocation277_spill] sm:$0xff] }
 0x344   :  { %v2418_v51 = vsel %vm2370_vm9, %v6455_v58, %v2077_v0  ;;  %2902 = vst [vmem:[#allocation2 + $0x78] sm:$0xff] %v2854_v42  ;;  %2901 = vst [vmem:[#allocation2 + $0x70] sm:$0xff] %v2853_v62  ;;  %vm2712_vm12 = vcmp.eq.s32.totalorder %v2604_v46, 1  ;;  %vm2711_vm13 = vcmp.eq.s32.totalorder %v2601_v38, 1  ;;  %vm2373_vm14 = vcmp.eq.s32.totalorder %v8070_v31, 1  ;;  %v8081_v38 = vld [vmem:[#allocation54_spill] sm:$0xff] }
 0x345   :  { %vm2372_vm15 = vcmp.eq.s32.totalorder %v8071_v18, 1  ;;  %v2760_v55 = vsel %vm2712_vm12, %v6492_v52, %v2419_v28  ;;  %v2759_v2 = vsel %vm2711_vm13, %v6492_v52, %v2418_v51  ;;  %vm1705_vm0 = vcmp.eq.s32.totalorder %v8072_v15, 1  ;;  %v8082_v31 = vld [vmem:[#allocation224_spill] sm:$0xff]  ;;  %v8083_v18 = vld [vmem:[#allocation225_spill] sm:$0xff] }
 0x346   :  { %vm1704_vm1 = vcmp.eq.s32.totalorder %v8073_v26, 1  ;;  %v2856_v7 = vmul.f32 %v2808_v40, %v2760_v55  ;;  %v2855_v25 = vmul.f32 %v2807_v61, %v2759_v2  ;;  %v2080_v1 = vsel %vm2032_vm10, %v6446_v19, %v6429_v10  ;;  %v2811_v40 = vld [vmem:[%s7242_s1 + $0xa0] sm:$0xff] }
 0x347   :  { %v2079_v41 = vsel %vm2031_vm11, %v6446_v19, %v6433_v3  ;;  %vm2034_vm2 = vcmp.eq.s32.totalorder %v8074_v16, 1  ;;  %vm2033_vm3 = vcmp.eq.s32.totalorder %v8075_v39, 1  ;;  %v2610_v43 = vpop.permute.xlu1 %2609  ;;  %v2607_v57 = vpop.permute.xlu0 %2606  ;;  %v2421_v10 = vsel %vm2373_vm14, %v6455_v58, %v2080_v1  ;;  %v8080_v61 = vld [vmem:[#allocation53_spill] sm:$0xff]  ;;  %v2814_v1 = vld [vmem:[%s7242_s1 + $0xb8] sm:$0xff]  ;;  %v2813_v16 = vld [vmem:[%s7242_s1 + $0xb0] sm:$0xff] }
 0x348   :  { %v2420_v3 = vsel %vm2372_vm15, %v6455_v58, %v2079_v41  ;;  %2904 = vst [vmem:[#allocation2 + $0x88] sm:$0xff] %v2856_v7  ;;  %2903 = vst [vmem:[#allocation2 + $0x80] sm:$0xff] %v2855_v25  ;;  %vm2714_vm4 = vcmp.eq.s32.totalorder %v2610_v43, 1  ;;  %vm2713_vm5 = vcmp.eq.s32.totalorder %v2607_v57, 1  ;;  %vm2375_vm6 = vcmp.eq.s32.totalorder %v8076_v54, 1  ;;  %v8084_v7 = vld [vmem:[#allocation280_spill] sm:$0xff] }
 0x349   :  { %vm2374_vm7 = vcmp.eq.s32.totalorder %v8077_v63, 1  ;;  %v2762_v17 = vsel %vm2714_vm4, %v6492_v52, %v2421_v10  ;;  %v2761_v21 = vsel %vm2713_vm5, %v6492_v52, %v2420_v3  ;;  %v6816_v14 = vsel %vm1705_vm0, %v6307_v50, %v6246_v34  ;;  %v8078_v34 = vld [vmem:[#allocation276_spill] sm:$0xff]  ;;  %v8085_v25 = vld [vmem:[#allocation281_spill] sm:$0xff] }
 0x34a   :  { %v6822_v30 = vsel %vm1704_vm1, %v6307_v50, %v6250_v9  ;;  %v2858_v42 = vmul.f32 %v2810_v36, %v2762_v17  ;;  %v2857_v62 = vmul.f32 %v2809_v37, %v2761_v21  ;;  %v2082_v22 = vsel %vm2034_vm2, %v6446_v19, %v6469_v33  ;;  %v2812_v9 = vld [vmem:[%s7242_s1 + $0xa8] sm:$0xff]  ;;  %v8086_v36 = vld [vmem:[#allocation55_spill] sm:$0xff]  ;;  %v8087_v43 = vld [vmem:[#allocation56_spill] sm:$0xff] }
 0x34b   :  { %v2081_v0 = vsel %vm2033_vm3, %v6446_v19, %v6475_v4  ;;  %vm2036_vm8 = vcmp.eq.s32.totalorder %v8078_v34, 1  ;;  %vm2035_vm9 = vcmp.eq.s32.totalorder %v8079_v53, 1  ;;  %v2616_v60 = vpop.permute.xlu1 %2615  ;;  %v2613_v46 = vpop.permute.xlu0 %2612  ;;  %v2423_v33 = vsel %vm2375_vm6, %v6455_v58, %v2082_v22  ;;  %v2815_v22 = vld [vmem:[%s7242_s1 + $0xc0] sm:$0xff]  ;;  %v8091_v53 = vld [vmem:[#allocation58_spill] sm:$0xff] }
 0x34c   :  { %v2422_v4 = vsel %vm2374_vm7, %v6455_v58, %v2081_v0  ;;  %2906 = vst [vmem:[#allocation2 + $0x98] sm:$0xff] %v2858_v42  ;;  %2905 = vst [vmem:[#allocation2 + $0x90] sm:$0xff] %v2857_v62  ;;  %vm2716_vm10 = vcmp.eq.s32.totalorder %v2616_v60, 1  ;;  %vm2715_vm11 = vcmp.eq.s32.totalorder %v2613_v46, 1  ;;  %vm2377_vm12 = vcmp.eq.s32.totalorder %v8080_v61, 1  ;;  %v8089_v42 = vld [vmem:[#allocation285_spill] sm:$0xff] }
 0x34d   :  { %vm2376_vm13 = vcmp.eq.s32.totalorder %v8081_v38, 1  ;;  %v2764_v28 = vsel %vm2716_vm10, %v6492_v52, %v2423_v33  ;;  %v2763_v51 = vsel %vm2715_vm11, %v6492_v52, %v2422_v4  ;;  %vm1707_vm14 = vcmp.eq.s32.totalorder %v8082_v31, 1  ;;  %v8090_v34 = vld [vmem:[#allocation57_spill] sm:$0xff]  ;;  %v8093_v46 = vld [vmem:[#allocation227_spill] sm:$0xff]  ;;  %v2818_v31 = vld [vmem:[%s7242_s1 + $0xd8] sm:$0xff] }
 0x34e   :  { %vm1706_vm15 = vcmp.eq.s32.totalorder %v8083_v18, 1  ;;  %v2860_v55 = vmul.f32 %v2812_v9, %v2764_v28  ;;  %v2859_v2 = vmul.f32 %v2811_v40, %v2763_v51  ;;  %v2084_v15 = vsel %vm2036_vm8, %v6446_v19, %v6481_v29  ;;  %v8092_v40 = vld [vmem:[#allocation226_spill] sm:$0xff]  ;;  %v8094_v28 = vld [vmem:[#allocation288_spill] sm:$0xff]  ;;  %v8095_v51 = vld [vmem:[#allocation289_spill] sm:$0xff] }
 0x34f   :  { %v2083_v26 = vsel %vm2035_vm9, %v6446_v19, %v6487_v49  ;;  %vm2038_vm0 = vcmp.eq.s32.totalorder %v8084_v7, 1  ;;  %vm2037_vm1 = vcmp.eq.s32.totalorder %v8085_v25, 1  ;;  %v2622_v41 = vpop.permute.xlu1 %2621  ;;  %v2619_v39 = vpop.permute.xlu0 %2618  ;;  %v2425_v29 = vsel %vm2377_vm12, %v6455_v58, %v2084_v15 }
 0x350   :  { %v2424_v49 = vsel %vm2376_vm13, %v6455_v58, %v2083_v26  ;;  %2908 = vst [vmem:[#allocation2 + $0xa8] sm:$0xff] %v2860_v55  ;;  %2907 = vst [vmem:[#allocation2 + $0xa0] sm:$0xff] %v2859_v2  ;;  %vm2718_vm2 = vcmp.eq.s32.totalorder %v2622_v41, 1  ;;  %vm2717_vm3 = vcmp.eq.s32.totalorder %v2619_v39, 1  ;;  %vm2379_vm4 = vcmp.eq.s32.totalorder %v8086_v36, 1  ;;  %v2817_v55 = vld [vmem:[%s7242_s1 + $0xd0] sm:$0xff] }
 0x351   :  { %vm2378_vm5 = vcmp.eq.s32.totalorder %v8087_v43, 1  ;;  %v2766_v37 = vsel %vm2718_vm2, %v6492_v52, %v2425_v29  ;;  %v2765_v57 = vsel %vm2717_vm3, %v6492_v52, %v2424_v49  ;;  %v6882_v10 = vsel %vm1707_vm14, %v6307_v50, %v6256_v24  ;;  %v8088_v24 = vld [vmem:[#allocation284_spill] sm:$0xff]  ;;  %v8097_v29 = vld [vmem:[#allocation6_spill] sm:$0xff]  ;;  %v2819_v36 = vld [vmem:[%s7242_s1 + $0xe0] sm:$0xff] }
 0x352   :  { %v6888_v3 = vsel %vm1706_vm15, %v6307_v50, %v6260_v6  ;;  %v2862_v54 = vmul.f32 %v2814_v1, %v2766_v37  ;;  %v2861_v63 = vmul.f32 %v2813_v16, %v2765_v57  ;;  %v2086_v17 = vsel %vm2038_vm0, %v6446_v19, %v6552_v32  ;;  %v2816_v6 = vld [vmem:[%s7242_s1 + $0xc8] sm:$0xff] }
 0x353   :  { %v2085_v21 = vsel %vm2037_vm1, %v6446_v19, %v6558_v20  ;;  %vm2040_vm6 = vcmp.eq.s32.totalorder %v8088_v24, 1  ;;  %vm2039_vm7 = vcmp.eq.s32.totalorder %v8089_v42, 1  ;;  %v2628_v62 = vpop.permute.xlu1 %2627  ;;  %v2625_v0 = vpop.permute.xlu0 %2624  ;;  %v2427_v32 = vsel %vm2379_vm4, %v6455_v58, %v2086_v17  ;;  %v8100_v24 = vld [vmem:[#allocation7_spill] sm:$0xff]  ;;  %v8101_v42 = vld [vmem:[#allocation8_spill] sm:$0xff] }
 0x354   :  { %v2426_v20 = vsel %vm2378_vm5, %v6455_v58, %v2085_v21  ;;  %2910 = vst [vmem:[#allocation2 + $0xb8] sm:$0xff] %v2862_v54  ;;  %2909 = vst [vmem:[#allocation2 + $0xb0] sm:$0xff] %v2861_v63  ;;  %vm2720_vm8 = vcmp.eq.s32.totalorder %v2628_v62, 1  ;;  %vm2719_vm9 = vcmp.eq.s32.totalorder %v2625_v0, 1  ;;  %vm2381_vm10 = vcmp.eq.s32.totalorder %v8090_v34, 1  ;;  %v8098_v54 = vld [vmem:[#allocation228_spill] sm:$0xff] }
 0x355   :  { %vm2380_vm11 = vcmp.eq.s32.totalorder %v8091_v53, 1  ;;  %v2768_v9 = vsel %vm2720_vm8, %v6492_v52, %v2427_v32  ;;  %v2767_v60 = vsel %vm2719_vm9, %v6492_v52, %v2426_v20  ;;  %vm1709_vm12 = vcmp.eq.s32.totalorder %v8092_v40, 1  ;;  %v8102_v34 = vld [vmem:[#allocation64_spill] sm:$0xff] }
 0x356   :  { %vm1708_vm13 = vcmp.eq.s32.totalorder %v8093_v46, 1  ;;  %v2864_v33 = vmul.f32 %v2816_v6, %v2768_v9  ;;  %v2863_v4 = vmul.f32 %v2815_v22, %v2767_v60  ;;  %v2088_v61 = vsel %vm2040_vm6, %v6446_v19, %v6618_v5  ;;  %v2822_v6 = vld [vmem:[%s7242_s1 + $0xf8] sm:$0xff]  ;;  %v2821_v22 = vld [vmem:[%s7242_s1 + $0xf0] sm:$0xff] }
 0x357   :  { %v2087_v38 = vsel %vm2039_vm7, %v6446_v19, %v6624_v23  ;;  %vm2042_vm14 = vcmp.eq.s32.totalorder %v8094_v28, 1  ;;  %vm2041_vm15 = vcmp.eq.s32.totalorder %v8095_v51, 1  ;;  %v2634_v18 = vpop.permute.xlu1 %2633  ;;  %v2631_v2 = vpop.permute.xlu0 %2630  ;;  %v2429_v5 = vsel %vm2381_vm10, %v6455_v58, %v2088_v61  ;;  %v2824_v61 = vld [vmem:[%s7242_s1 + $0x108] sm:$0xff]  ;;  %v2823_v28 = vld [vmem:[%s7242_s1 + $0x100] sm:$0xff] }
 0x358   :  { %v2428_v23 = vsel %vm2380_vm11, %v6455_v58, %v2087_v38  ;;  %2912 = vst [vmem:[#allocation2 + $0xc8] sm:$0xff] %v2864_v33  ;;  %2911 = vst [vmem:[#allocation2 + $0xc0] sm:$0xff] %v2863_v4  ;;  %vm2722_vm0 = vcmp.eq.s32.totalorder %v2634_v18, 1  ;;  %vm2721_vm1 = vcmp.eq.s32.totalorder %v2631_v2, 1  ;;  %vm2383_vm2 = vcmp.eq.s32.totalorder %v6052_v8, 1  ;;  %v8099_v8 = vld [vmem:[#allocation229_spill] sm:$0xff] }
 0x359   :  { %vm2382_vm3 = vcmp.eq.s32.totalorder %v6054_v47, 1  ;;  %v2770_v15 = vsel %vm2722_vm0, %v6492_v52, %v2429_v5  ;;  %v2769_v26 = vsel %vm2721_vm1, %v6492_v52, %v2428_v23  ;;  %v6948_v7 = vsel %vm1709_vm12, %v6307_v50, %v6266_v44  ;;  %v8096_v44 = vld [vmem:[#allocation5_spill] sm:$0xff]  ;;  %v8105_v4 = vld [vmem:[#allocation10_spill] sm:$0xff] }
 0x35a   :  { %v6954_v25 = vsel %vm1708_vm13, %v6307_v50, %v6270_v35  ;;  %v2866_v1 = vmul.f32 %v2818_v31, %v2770_v15  ;;  %v2865_v41 = vmul.f32 %v2817_v55, %v2769_v26  ;;  %v2090_v16 = vsel %vm2042_vm14, %v6446_v19, %v6684_v12  ;;  %v2820_v35 = vld [vmem:[%s7242_s1 + $0xe8] sm:$0xff]  ;;  %v8104_v33 = vld [vmem:[#allocation9_spill] sm:$0xff]  ;;  %v8106_v31 = vld [vmem:[#allocation60_spill] sm:$0xff] }
 0x35b   :  { %v2089_v39 = vsel %vm2041_vm15, %v6446_v19, %v6690_v27  ;;  %vm2044_vm4 = vcmp.eq.s32.totalorder %v8096_v44, 1  ;;  %vm2043_vm5 = vcmp.eq.s32.totalorder %v8097_v29, 1  ;;  %v2640_v49 = vpop.permute.xlu1 %2639  ;;  %v2637_v43 = vpop.permute.xlu0 %2636  ;;  %v2431_v12 = vsel %vm2383_vm2, %v6455_v58, %v2090_v16  ;;  %v8107_v18 = vld [vmem:[#allocation61_spill] sm:$0xff]  ;;  %v8108_v5 = vld [vmem:[#allocation230_spill] sm:$0xff]  ;;  %v2826_v16 = vld [vmem:[%s7242_s1 + $0x118] sm:$0xff] }
 0x35c   :  { %v2430_v27 = vsel %vm2382_vm3, %v6455_v58, %v2089_v39  ;;  %2914 = vst [vmem:[#allocation2 + $0xd8] sm:$0xff] %v2866_v1  ;;  %2913 = vst [vmem:[#allocation2 + $0xd0] sm:$0xff] %v2865_v41  ;;  %vm2724_vm6 = vcmp.eq.s32.totalorder %v2640_v49, 1  ;;  %vm2723_vm7 = vcmp.eq.s32.totalorder %v2637_v43, 1  ;;  %vm2385_vm8 = vcmp.eq.s32.totalorder %v6104_v45, 1  ;;  %v8110_v1 = vld [vmem:[#allocation11_spill] sm:$0xff] }
 0x35d   :  { %vm2384_vm9 = vcmp.eq.s32.totalorder %v6106_v59, 1  ;;  %v2772_v37 = vsel %vm2724_vm6, %v6492_v52, %v2431_v12  ;;  %v2771_v57 = vsel %vm2723_vm7, %v6492_v52, %v2430_v27  ;;  %vm1711_vm10 = vcmp.eq.s32.totalorder %v8098_v54, 1  ;;  %v8103_v59 = vld [vmem:[#allocation65_spill] sm:$0xff]  ;;  %v8111_v41 = vld [vmem:[#allocation12_spill] sm:$0xff]  ;;  %v2825_v44 = vld [vmem:[%s7242_s1 + $0x110] sm:$0xff] }
 0x35e   :  { %vm1710_vm11 = vcmp.eq.s32.totalorder %v8099_v8, 1  ;;  %v2868_v63 = vmul.f32 %v2820_v35, %v2772_v37  ;;  %v2867_v17 = vmul.f32 %v2819_v36, %v2771_v57  ;;  %v2092_v47 = vsel %vm2044_vm4, %v6446_v19, %v6750_v48  ;;  %v8112_v35 = vld [vmem:[#allocation62_spill] sm:$0xff]  ;;  %v8113_v49 = vld [vmem:[#allocation63_spill] sm:$0xff]  ;;  %v8114_v12 = vld [vmem:[#allocation68_spill] sm:$0xff] }
 0x35f   :  { %v2091_v21 = vsel %vm2043_vm5, %v6446_v19, %v6756_v56  ;;  %vm2046_vm12 = vcmp.eq.s32.totalorder %v8100_v24, 1  ;;  %vm2045_vm13 = vcmp.eq.s32.totalorder %v8101_v42, 1  ;;  %v2646_v62 = vpop.permute.xlu1 %2645  ;;  %v2643_v0 = vpop.permute.xlu0 %2642  ;;  %v2433_v48 = vsel %vm2385_vm8, %v6455_v58, %v2092_v47  ;;  %v8115_v37 = vld [vmem:[#allocation69_spill] sm:$0xff] }
 0x360   :  { %v2432_v56 = vsel %vm2384_vm9, %v6455_v58, %v2091_v21  ;;  %2916 = vst [vmem:[#allocation2 + $0xe8] sm:$0xff] %v2868_v63  ;;  %2915 = vst [vmem:[#allocation2 + $0xe0] sm:$0xff] %v2867_v17  ;;  %vm2726_vm14 = vcmp.eq.s32.totalorder %v2646_v62, 1  ;;  %vm2725_vm15 = vcmp.eq.s32.totalorder %v2643_v0, 1  ;;  %vm2387_vm0 = vcmp.eq.s32.totalorder %v6148_v11, 1  ;;  %v8109_v11 = vld [vmem:[#allocation231_spill] sm:$0xff] }
 0x361   :  { %vm2386_vm1 = vcmp.eq.s32.totalorder %v6150_v13, 1  ;;  %v2774_v32 = vsel %vm2726_vm14, %v6492_v52, %v2433_v48  ;;  %v2773_v20 = vsel %vm2725_vm15, %v6492_v52, %v2432_v56  ;;  %v7014_v45 = vsel %vm1711_vm10, %v6307_v50, %v8102_v34  ;;  %v8116_v47 = vld [vmem:[#allocation13_spill] sm:$0xff]  ;;  %v8117_v21 = vld [vmem:[#allocation14_spill] sm:$0xff]  ;;  %v8120_v56 = vld [vmem:[#allocation232_spill] sm:$0xff] }
 0x362   :  { %v7020_v53 = vsel %vm1710_vm11, %v6307_v50, %v8103_v59  ;;  %v2870_v9 = vmul.f32 %v2822_v6, %v2774_v32  ;;  %v2869_v60 = vmul.f32 %v2821_v22, %v2773_v20  ;;  %v2094_v40 = vsel %vm2046_vm12, %v6446_v19, %v6816_v14  ;;  %v2827_v42 = vld [vmem:[%s7242_s1 + $0x120] sm:$0xff]  ;;  %v8118_v62 = vld [vmem:[#allocation66_spill] sm:$0xff]  ;;  %v8119_v22 = vld [vmem:[#allocation67_spill] sm:$0xff] }
 0x363   :  { %v2093_v46 = vsel %vm2045_vm13, %v6446_v19, %v6822_v30  ;;  %vm2048_vm2 = vcmp.eq.s32.totalorder %v8104_v33, 1  ;;  %vm2047_vm3 = vcmp.eq.s32.totalorder %v8105_v4, 1  ;;  %v2652_v38 = vpop.permute.xlu1 %2651  ;;  %v2649_v51 = vpop.permute.xlu0 %2648  ;;  %v2435_v14 = vsel %vm2387_vm0, %v6455_v58, %v2094_v40  ;;  %v8121_v32 = vld [vmem:[#allocation233_spill] sm:$0xff]  ;;  %v8123_v40 = vld [vmem:[#allocation18_spill] sm:$0xff]  ;;  %v2829_v4 = vld [vmem:[%s7242_s1 + $0x130] sm:$0xff] }
 0x364   :  { %v2434_v30 = vsel %vm2386_vm1, %v6455_v58, %v2093_v46  ;;  %2918 = vst [vmem:[#allocation2 + $0xf8] sm:$0xff] %v2870_v9  ;;  %2917 = vst [vmem:[#allocation2 + $0xf0] sm:$0xff] %v2869_v60  ;;  %vm2728_vm4 = vcmp.eq.s32.totalorder %v2652_v38, 1  ;;  %vm2727_vm5 = vcmp.eq.s32.totalorder %v2649_v51, 1  ;;  %vm2389_vm6 = vcmp.eq.s32.totalorder %v8106_v31, 1  ;;  %v8122_v60 = vld [vmem:[#allocation17_spill] sm:$0xff] }
 0x365   :  { %vm2388_vm7 = vcmp.eq.s32.totalorder %v8107_v18, 1  ;;  %v2776_v55 = vsel %vm2728_vm4, %v6492_v52, %v2435_v14  ;;  %v2775_v2 = vsel %vm2727_vm5, %v6492_v52, %v2434_v30  ;;  %vm1713_vm8 = vcmp.eq.s32.totalorder %v8108_v5, 1  ;;  %v2830_v46 = vld [vmem:[%s7242_s1 + $0x138] sm:$0xff]  ;;  %v8124_v38 = vld [vmem:[#allocation74_spill] sm:$0xff]  ;;  %v3061_v30 = vld [vmem:[%s7243_s2 + $0x4] ss:$0 sm:$0xff] }
 0x366   :  { %vm1712_vm9 = vcmp.eq.s32.totalorder %v8109_v11, 1  ;;  %v2872_v23 = vmul.f32 %v2824_v61, %v2776_v55  ;;  %v2871_v15 = vmul.f32 %v2823_v28, %v2775_v2  ;;  %v2096_v13 = vsel %vm2048_vm2, %v6446_v19, %v6882_v10  ;;  %v8125_v28 = vld [vmem:[#allocation75_spill] sm:$0xff]  ;;  %v8126_v31 = vld [vmem:[#allocation70_spill] sm:$0xff] }
 0x367   :  { %v2095_v26 = vsel %vm2047_vm3, %v6446_v19, %v6888_v3  ;;  %vm2050_vm10 = vcmp.eq.s32.totalorder %v8110_v1, 1  ;;  %vm2049_vm11 = vcmp.eq.s32.totalorder %v8111_v41, 1  ;;  %v2658_v39 = vpop.permute.xlu1 %2657  ;;  %v2655_v29 = vpop.permute.xlu0 %2654  ;;  %v2437_v10 = vsel %vm2389_vm6, %v6455_v58, %v2096_v13  ;;  %v8127_v55 = vld [vmem:[#allocation71_spill] sm:$0xff]  ;;  %v8128_v13 = vld [vmem:[#allocation24_spill] sm:$0xff]  ;;  %v2832_v1 = vld [vmem:[%s7242_s1 + $0x148] sm:$0xff] }
 0x368   :  { %v2436_v3 = vsel %vm2388_vm7, %v6455_v58, %v2095_v26  ;;  %2920 = vst [vmem:[#allocation2 + $0x108] sm:$0xff] %v2872_v23  ;;  %2919 = vst [vmem:[#allocation2 + $0x100] sm:$0xff] %v2871_v15  ;;  %vm2730_vm12 = vcmp.eq.s32.totalorder %v2658_v39, 1  ;;  %vm2729_vm13 = vcmp.eq.s32.totalorder %v2655_v29, 1  ;;  %vm2391_vm14 = vcmp.eq.s32.totalorder %v8112_v35, 1  ;;  %v8129_v26 = vld [vmem:[#allocation25_spill] sm:$0xff] }
 0x369   :  { %vm2390_vm15 = vcmp.eq.s32.totalorder %v8113_v49, 1  ;;  %v2778_v36 = vsel %vm2730_vm12, %v6492_v52, %v2437_v10  ;;  %v2777_v43 = vsel %vm2729_vm13, %v6492_v52, %v2436_v3  ;;  %v1761_v27 = vsel %vm1713_vm8, %v6307_v50, %v8114_v12  ;;  %v8130_v10 = vld [vmem:[#allocation76_spill] sm:$0xff]  ;;  %v8131_v3 = vld [vmem:[#allocation77_spill] sm:$0xff] }
 0x36a   :  { %v1760_v57 = vsel %vm1712_vm9, %v6307_v50, %v8115_v37  ;;  %v2874_v54 = vmul.f32 %v2826_v16, %v2778_v36  ;;  %v2873_v8 = vmul.f32 %v2825_v44, %v2777_v43  ;;  %v2098_v63 = vsel %vm2050_vm10, %v6446_v19, %v6948_v7  ;;  %v2828_v50 = vld [vmem:[%s7242_s1 + $0x128] sm:$0xff]  ;;  %v2831_v16 = vld [vmem:[%s7242_s1 + $0x140] sm:$0xff]  ;;  %v8133_v43 = vld [vmem:[#allocation235_spill] sm:$0xff] }
 0x36b   :  { %v2097_v17 = vsel %vm2049_vm11, %v6446_v19, %v6954_v25  ;;  %vm2052_vm0 = vcmp.eq.s32.totalorder %v8116_v47, 1  ;;  %vm2051_vm1 = vcmp.eq.s32.totalorder %v8117_v21, 1  ;;  %v2664_v24 = vpop.permute.xlu1 %2663  ;;  %v2661_v6 = vpop.permute.xlu0 %2660  ;;  %v2439_v7 = vsel %vm2391_vm14, %v6455_v58, %v2098_v63  ;;  %v8132_v36 = vld [vmem:[#allocation234_spill] sm:$0xff]  ;;  %v2834_v63 = vld [vmem:[%s7242_s1 + $0x158] sm:$0xff]  ;;  %v2833_v47 = vld [vmem:[%s7242_s1 + $0x150] sm:$0xff] }
 0x36c   :  { %v2438_v25 = vsel %vm2390_vm15, %v6455_v58, %v2097_v17  ;;  %2922 = vst [vmem:[#allocation2 + $0x118] sm:$0xff] %v2874_v54  ;;  %2921 = vst [vmem:[#allocation2 + $0x110] sm:$0xff] %v2873_v8  ;;  %vm2732_vm2 = vcmp.eq.s32.totalorder %v2664_v24, 1  ;;  %vm2731_vm3 = vcmp.eq.s32.totalorder %v2661_v6, 1  ;;  %vm2393_vm4 = vcmp.eq.s32.totalorder %v8118_v62, 1  ;;  %v8134_v54 = vld [vmem:[#allocation27_spill] sm:$0xff] }
 0x36d   :  { %vm2392_vm5 = vcmp.eq.s32.totalorder %v8119_v22, 1  ;;  %v2780_v0 = vsel %vm2732_vm2, %v6492_v52, %v2439_v7  ;;  %v2779_v48 = vsel %vm2731_vm3, %v6492_v52, %v2438_v25  ;;  %vm1715_vm6 = vcmp.eq.s32.totalorder %v8120_v56, 1  ;;  %v8135_v8 = vld [vmem:[#allocation28_spill] sm:$0xff]  ;;  %v8137_v6 = vld [vmem:[#allocation79_spill] sm:$0xff] }
 0x36e   :  { %vm1714_vm7 = vcmp.eq.s32.totalorder %v8121_v32, 1  ;;  %v2876_v20 = vmul.f32 %v2828_v50, %v2780_v0  ;;  %v2875_v34 = vmul.f32 %v2827_v42, %v2779_v48  ;;  %v2100_v59 = vsel %vm2052_vm0, %v6446_v19, %v7014_v45  ;;  %v8136_v42 = vld [vmem:[#allocation78_spill] sm:$0xff]  ;;  %v8138_v62 = vld [vmem:[#allocation72_spill] sm:$0xff]  ;;  %v8139_v0 = vld [vmem:[#allocation73_spill] sm:$0xff] }
 0x36f   :  { %v2099_v9 = vsel %vm2051_vm1, %v6446_v19, %v7020_v53  ;;  %vm2054_vm8 = vcmp.eq.s32.totalorder %v8122_v60, 1  ;;  %vm2053_vm9 = vcmp.eq.s32.totalorder %v8123_v40, 1  ;;  %v2670_v33 = vpop.permute.xlu1 %2669  ;;  %v2667_v61 = vpop.permute.xlu0 %2666  ;;  %v2441_v45 = vsel %vm2393_vm4, %v6455_v58, %v2100_v59  ;;  %v2836_v59 = vld [vmem:[%s7242_s1 + $0x168] sm:$0xff]  ;;  %v2835_v60 = vld [vmem:[%s7242_s1 + $0x160] sm:$0xff] }
 0x370   :  { %v2440_v53 = vsel %vm2392_vm5, %v6455_v58, %v2099_v9  ;;  %2924 = vst [vmem:[#allocation2 + $0x128] sm:$0xff] %v2876_v20  ;;  %2923 = vst [vmem:[#allocation2 + $0x120] sm:$0xff] %v2875_v34  ;;  %vm2734_vm10 = vcmp.eq.s32.totalorder %v2670_v33, 1  ;;  %vm2733_vm11 = vcmp.eq.s32.totalorder %v2667_v61, 1  ;;  %vm2395_vm12 = vcmp.eq.s32.totalorder %v8124_v38, 1 }
 0x371   :  { %vm2394_vm13 = vcmp.eq.s32.totalorder %v8125_v28, 1  ;;  %v2782_v51 = vsel %vm2734_vm10, %v6492_v52, %v2441_v45  ;;  %v2781_v14 = vsel %vm2733_vm11, %v6492_v52, %v2440_v53  ;;  %v1763_v18 = vsel %vm1715_vm6, %v3061_v30, %v8126_v31  ;;  %v2838_v53 = vld [vmem:[%s7242_s1 + $0x178] sm:$0xff]  ;;  %v2837_v28 = vld [vmem:[%s7242_s1 + $0x170] sm:$0xff] }
 0x372   :  { %v1762_v2 = vsel %vm1714_vm7, %v3061_v30, %v8127_v55  ;;  %v2878_v5 = vmul.f32 %v2830_v46, %v2782_v51  ;;  %v2877_v11 = vmul.f32 %v2829_v4, %v2781_v14  ;;  %v2102_v23 = vsel %vm2054_vm8, %v6446_v19, %v1761_v27  ;;  %v8140_v51 = vld [vmem:[#allocation80_spill] sm:$0xff] }
 0x373   :  { %v2101_v15 = vsel %vm2053_vm9, %v6446_v19, %v1760_v57  ;;  %vm2056_vm14 = vcmp.eq.s32.totalorder %v8128_v13, 1  ;;  %vm2055_vm15 = vcmp.eq.s32.totalorder %v8129_v26, 1  ;;  %v2676_v41 = vpop.permute.xlu1 %2675  ;;  %v2673_v39 = vpop.permute.xlu0 %2672  ;;  %v2443_v44 = vsel %vm2395_vm12, %v6455_v58, %v2102_v23 }
 0x374   :  { %v2442_v29 = vsel %vm2394_vm13, %v6455_v58, %v2101_v15  ;;  %2926 = vst [vmem:[#allocation2 + $0x138] sm:$0xff] %v2878_v5  ;;  %2925 = vst [vmem:[#allocation2 + $0x130] sm:$0xff] %v2877_v11  ;;  %vm2736_vm0 = vcmp.eq.s32.totalorder %v2676_v41, 1  ;;  %vm2735_vm1 = vcmp.eq.s32.totalorder %v2673_v39, 1  ;;  %vm2397_vm2 = vcmp.eq.s32.totalorder %v8130_v10, 1 }
 0x375   :  { %vm2396_vm3 = vcmp.eq.s32.totalorder %v8131_v3, 1  ;;  %v2784_v35 = vsel %vm2736_vm0, %v6492_v52, %v2443_v44  ;;  %v2783_v49 = vsel %vm2735_vm1, %v6492_v52, %v2442_v29  ;;  %vm1717_vm4 = vcmp.eq.s32.totalorder %v8132_v36, 1 }
 0x376   :  { %vm1716_vm5 = vcmp.eq.s32.totalorder %v8133_v43, 1  ;;  %v2880_v12 = vmul.f32 %v2832_v1, %v2784_v35  ;;  %v2879_v27 = vmul.f32 %v2831_v16, %v2783_v49  ;;  %v2104_v37 = vsel %vm2056_vm14, %v6446_v19, %v1763_v18 }
 0x377   :  { %v2103_v57 = vsel %vm2055_vm15, %v6446_v19, %v1762_v2  ;;  %vm2058_vm6 = vcmp.eq.s32.totalorder %v8134_v54, 1  ;;  %vm2057_vm7 = vcmp.eq.s32.totalorder %v8135_v8, 1  ;;  %v2682_v17 = vpop.permute.xlu1 %2681  ;;  %v2679_v21 = vpop.permute.xlu0 %2678  ;;  %v2445_v50 = vsel %vm2397_vm2, %v6455_v58, %v2104_v37 }
 0x378   :  { %v2444_v24 = vsel %vm2396_vm3, %v6455_v58, %v2103_v57  ;;  %2928 = vst [vmem:[#allocation2 + $0x148] sm:$0xff] %v2880_v12  ;;  %2927 = vst [vmem:[#allocation2 + $0x140] sm:$0xff] %v2879_v27  ;;  %vm2738_vm8 = vcmp.eq.s32.totalorder %v2682_v17, 1  ;;  %vm2737_vm9 = vcmp.eq.s32.totalorder %v2679_v21, 1  ;;  %vm2399_vm10 = vcmp.eq.s32.totalorder %v8136_v42, 1 }
 0x379   :  { %vm2398_vm11 = vcmp.eq.s32.totalorder %v8137_v6, 1  ;;  %v2786_v7 = vsel %vm2738_vm8, %v6492_v52, %v2445_v50  ;;  %v2785_v25 = vsel %vm2737_vm9, %v6492_v52, %v2444_v24  ;;  %v1765_v22 = vsel %vm1717_vm4, %v3061_v30, %v8138_v62 }
 0x37a   :  { %v1764_v48 = vsel %vm1716_vm5, %v3061_v30, %v8139_v0  ;;  %v2882_v56 = vmul.f32 %v2834_v63, %v2786_v7  ;;  %v2881_v32 = vmul.f32 %v2833_v47, %v2785_v25  ;;  %v2106_v20 = vsel %vm2058_vm6, %v6446_v19, %v1765_v22  ;;  %v8141_v30 = vld [vmem:[#allocation81_spill] sm:$0xff] }
 0x37b   :  { %v2105_v34 = vsel %vm2057_vm7, %v6446_v19, %v1764_v48  ;;  %v2688_v9 = vpop.permute.xlu1 %2687  ;;  %v2685_v40 = vpop.permute.xlu0 %2684  ;;  %v2447_v46 = vsel %vm2399_vm10, %v6455_v58, %v2106_v20 }
 0x37c   :  { %v2446_v33 = vsel %vm2398_vm11, %v6455_v58, %v2105_v34  ;;  %2930 = vst [vmem:[#allocation2 + $0x158] sm:$0xff] %v2882_v56  ;;  %2929 = vst [vmem:[#allocation2 + $0x150] sm:$0xff] %v2881_v32  ;;  %vm2740_vm12 = vcmp.eq.s32.totalorder %v2688_v9, 1  ;;  %vm2739_vm13 = vcmp.eq.s32.totalorder %v2685_v40, 1 }
 0x37d   :  { %v2788_v19 = vsel %vm2740_vm12, %v6492_v52, %v2447_v46  ;;  %v2787_v4 = vsel %vm2739_vm13, %v6492_v52, %v2446_v33 }
 0x37e   :  { %v2884_v61 = vmul.f32 %v2836_v59, %v2788_v19  ;;  %v2883_v45 = vmul.f32 %v2835_v60, %v2787_v4 }
 0x37f   :  { %v2694_v38 = vpop.permute.xlu1 %2693  ;;  %v2691_v58 = vpop.permute.xlu0 %2690 }
 0x380   :  { %2932 = vst [vmem:[#allocation2 + $0x168] sm:$0xff] %v2884_v61  ;;  %2931 = vst [vmem:[#allocation2 + $0x160] sm:$0xff] %v2883_v45  ;;  %vm2742_vm14 = vcmp.eq.s32.totalorder %v2694_v38, 1  ;;  %vm2741_vm15 = vcmp.eq.s32.totalorder %v2691_v58, 1 }
 0x381   :  { %v2790_v14 = vsel %vm2742_vm14, %v6492_v52, %v8140_v51  ;;  %v2789_v31 = vsel %vm2741_vm15, %v6492_v52, %v8141_v30 }
 0x382   :  { %v2886_v18 = vmul.f32 %v2838_v53, %v2790_v14  ;;  %v2885_v55 = vmul.f32 %v2837_v28, %v2789_v31 }
 0x384   :  { %2934 = vst [vmem:[#allocation2 + $0x178] sm:$0xff] %v2886_v18  ;;  %2933 = vst [vmem:[#allocation2 + $0x170] sm:$0xff] %v2885_v55 }
 0x385   :  { %2939 = vsyncadd [#allocation3], 1280  ;;  %s3087_s4 = smov [#allocation2]  }
 0x386   :  { %s2940_s0 = sshll.u32 %s3087_s4, 4  ;;  %s2941_s0 = int_to_ptr.vmem [resolvable:$true] %s2940_s0 }
 0x387   :  { %s3062_s1 = scalar_lea.vmem %s2941_s0, 4864  ;;  %s3066_s5 = scalar_lea.vmem %s2941_s0, 6144 }
 0x388   :  { %p3063_p0 = scmp.ne.s32.totalorder %s2941_s0, %s3062_s1  ;;  %p3067_p1 = scmp.lt.s32.totalorder %s2941_s0, %s2941_s0 }
 0x389   :  { %p3068_p2 = scmp.lt.s32.totalorder %s3066_s5, %s3062_s1 }
 0x38b   :  { %p3069_p3 = por %p3068_p2, %p3067_p1 }
 0x38d   :  { %p3070_p4 = pnand %p3069_p3, %p3063_p0 }
 0x38f   :  { %3073 = shalt.err (!%p3070_p4)
}
 0x390   :  { %s3074_s8 = scalar_lea.hbm %s7244_s3, 4864 }
 0x391   :  { %p3075_p5 = scmp.ne.s32.totalorder %s7244_s3, %s3074_s8  ;;  %p3078_p6 = scmp.lt.u32.totalorder %s3074_s8, %s7244_s3 }
 0x393   :  { %p3080_p7 = pnand %p3078_p6, %p3075_p5 }
 0x395   :  { %3083 = shalt.err (!%p3080_p7)
}
 0x396   :  { %s3088_s13 = smov 128   ;;  %s3089_s14 = smov 8  }
 0x397   :  { %2946 = dma.vmem_to_hbm [thread:$0]  %s2941_s0, 4864, %s7244_s3, [#allocation3], %s3088_s13, %s3088_s13, %s3089_s14  }
 0x398   :  { %3084 = dma.done.wait [#allocation3], 6144  }
 0x399   :  { %3085 = vsyncadd [#allocation3], 4294961152 }
 0x39a   :  { %2950 = vsyncpa [#allocation3], 1 }

</bundles_post_ra>
